<compile_context>
chip_gen: v7x
topology: tpu7x:2x2x1
jax: 0.10.0
libtpu: 0.0.40
codegen_flags: <defaults>
</compile_context>

<pallas_src>
import functools
import math

import numpy as np
import jax
import jax.numpy as jnp
from jax.experimental import pallas as pl
from jax.experimental.pallas import tpu as pltpu

LANE = 128


def _round_up(x, m):
    return (x + m - 1) // m * m


# ----------------------------------------------------------------------------
# Fused Pallas kernel: conv1+BN1+ReLU -> conv2+BN2+residual+ReLU -> InstanceL2Norm
# ----------------------------------------------------------------------------
def _fused_resblock_kernel(x_ref, w1_ref, b1_ref, w2_ref, b2_ref, o_ref,
                           pad_ref, col_ref, *, c_true, norm_scale, eps):
    """One batch sample per grid step.

    x_ref   : (1, H, W, Cp)   f32  unpadded NHWC input (also the residual)
    w1_ref  : (9*Cp, Cp)      f32  conv1 weights, BN1 scale folded, im2col row layout
    b1_ref  : (1, Cp)         f32  BN1 bias
    w2_ref  : (9*Cp, Cp)      f32  conv2 weights, BN2 scale folded
    b2_ref  : (1, Cp)         f32  BN2 bias
    o_ref   : (1, H, W, Cp)   f32  output
    pad_ref : (H+2, W+2, Cp)  f32  VMEM scratch: zero-bordered padded activation
    col_ref : (H*W, 9*Cp)     f32  VMEM scratch: im2col matrix (reused by both convs)
    """
    _, H, W, Cp = o_ref.shape

    def build_im2col():
        xp = pad_ref[...]                                   # (H+2, W+2, Cp)
        for k in range(9):                                  # 9 shifted taps -> one matrix
            dy, dx = divmod(k, 3)
            tap = xp[dy:dy + H, dx:dx + W, :].reshape(H * W, Cp)
            col_ref[:, k * Cp:(k + 1) * Cp] = tap

    # ---- conv1 + BN1 + ReLU (input zero-padded in VMEM, never in HBM) ----
    # Zero every grid step (scratch is per-core under megacore split, so no first-step init).
    pad_ref[...] = jnp.zeros_like(pad_ref)
    pad_ref[pl.ds(1, H), pl.ds(1, W), :] = x_ref[0]
    build_im2col()
    y1 = jnp.dot(col_ref[...], w1_ref[...], preferred_element_type=jnp.float32)
    y1 = jnp.maximum(y1 + b1_ref[0], 0.0)

    # ---- conv2 + BN2 + residual + ReLU (y1 stays in VMEM; border is still zero) ----
    pad_ref[pl.ds(1, H), pl.ds(1, W), :] = y1.reshape(H, W, Cp)
    build_im2col()
    y2 = jnp.dot(col_ref[...], w2_ref[...], preferred_element_type=jnp.float32)
    y2 = y2 + b2_ref[0] + x_ref[0].reshape(H * W, Cp)
    y2 = jnp.maximum(y2, 0.0)

    # ---- InstanceL2Norm (size_average=True). Padded lanes are exactly zero, so the
    #      sum is unaffected; the C*H*W factor uses the true channel count. ----
    ssum = jnp.sum(y2 * y2)
    factor = (norm_scale * math.sqrt(c_true * H * W)) * jax.lax.rsqrt(ssum + eps)
    o_ref[0] = (y2 * factor).reshape(H, W, Cp)


def fused_resblock(x_nhwc, params, *, c_true, norm_scale=1.0, eps=1e-5):
    N, H, W, Cp = x_nhwc.shape
    kernel = functools.partial(_fused_resblock_kernel, c_true=int(c_true),
                               norm_scale=float(norm_scale), eps=float(eps))
    return pl.pallas_call(
        kernel,
        out_shape=jax.ShapeDtypeStruct((N, H, W, Cp), jnp.float32),
        grid=(N,),
        in_specs=[
            pl.BlockSpec((1, H, W, Cp), lambda n: (n, 0, 0, 0)),
            pl.BlockSpec((9 * Cp, Cp), lambda n: (0, 0)),
            pl.BlockSpec((1, Cp), lambda n: (0, 0)),
            pl.BlockSpec((9 * Cp, Cp), lambda n: (0, 0)),
            pl.BlockSpec((1, Cp), lambda n: (0, 0)),
        ],
        out_specs=pl.BlockSpec((1, H, W, Cp), lambda n: (n, 0, 0, 0)),
        scratch_shapes=[
            pltpu.VMEM((H + 2, W + 2, Cp), jnp.float32),       # padded activation
            pltpu.VMEM((H * W, 9 * Cp), jnp.float32),          # im2col matrix
        ],
        compiler_params=pltpu.CompilerParams(dimension_semantics=("parallel",)),
    )(x_nhwc, params['w1'], params['b1'], params['w2'], params['b2'])


# ----------------------------------------------------------------------------
# Plain-JAX glue: adaptive_cat (bilinear resize + concat), layout & param packing
# ----------------------------------------------------------------------------
def bilinear_resize_nchw(x, out_h, out_w):
    """F.interpolate(x, (out_h,out_w), mode='bilinear', align_corners=False)."""
    n, c, in_h, in_w = x.shape
    if (in_h, in_w) == (out_h, out_w):
        return x

    def coords(out_size, in_size):
        scale = in_size / out_size
        src = (jnp.arange(out_size, dtype=jnp.float32) + 0.5) * scale - 0.5
        src = jnp.maximum(src, 0.0)
        i0 = jnp.minimum(jnp.floor(src).astype(jnp.int32), in_size - 1)
        i1 = jnp.minimum(i0 + 1, in_size - 1)
        frac = src - i0.astype(jnp.float32)
        return i0, i1, frac

    h0, h1, fh = coords(out_h, in_h)
    w0, w1, fw = coords(out_w, in_w)
    top, bot = x[:, :, h0, :], x[:, :, h1, :]
    fh = fh[None, None, :, None]
    xh = top * (1.0 - fh) + bot * fh
    left, right = xh[:, :, :, w0], xh[:, :, :, w1]
    fw = fw[None, None, None, :]
    return left * (1.0 - fw) + right * fw


def adaptive_cat_nchw(features, layer_names, ref_idx):
    sz = features[layer_names[ref_idx]].shape[-2:]
    return jnp.concatenate(
        [bilinear_resize_nchw(features[L], sz[0], sz[1]) for L in layer_names], axis=1)


def prepare_params(w1, w2, s1, b1, s2, b2):
    """Pack OIHW conv weights + folded-BN affines for the fused kernel.

    - BN scale is folded into the weights (only bias add remains in-kernel).
    - Channels are zero-padded to a multiple of 128 (lane-dense MXU/store path).
    - Weights are reshaped to (9*Cp, Cp) im2col layout; kept in f32 so the kernel matches
      the f32 reference (bf16 operands would be used for large channel counts).
    """
    cout, cin = w1.shape[:2]
    assert cout == cin
    cp = _round_up(cout, LANE)

    def pack_w(w, s):
        wk = jnp.transpose(w, (2, 3, 1, 0))                    # OIHW -> (3,3,Cin,Cout)
        wk = wk * s[None, None, None, :]                       # fold BN scale
        wk = jnp.pad(wk, ((0, 0), (0, 0), (0, cp - cin), (0, cp - cout)))
        return wk.reshape(9 * cp, cp).astype(jnp.float32)

    def pack_b(b):
        return jnp.pad(b, (0, cp - b.shape[0])).reshape(1, cp).astype(jnp.float32)

    return dict(w1=pack_w(w1, s1), b1=pack_b(b1),
                w2=pack_w(w2, s2), b2=pack_b(b2)), cp


def resblock_multilayer_forward(features, params, layer_names=('layer2', 'layer3'),
                                sizing_layer='layer2', norm_scale=1.0):
    ref_idx = layer_names.index(sizing_layer)
    x = adaptive_cat_nchw(features, layer_names, ref_idx)        # (N, C, H, W)
    N, C, H, W = x.shape
    cp = params['w1'].shape[1]
    x_nhwc = jnp.transpose(x, (0, 2, 3, 1)).astype(jnp.float32)  # NCHW -> NHWC
    if cp != C:
        x_nhwc = jnp.pad(x_nhwc, ((0, 0), (0, 0), (0, 0), (0, cp - C)))
    out = fused_resblock(x_nhwc, params, c_true=C, norm_scale=norm_scale)
    return jnp.transpose(out[..., :C], (0, 3, 1, 2))             # crop pad, back to NCHW


# ----------------------------------------------------------------------------
# Pure-JAX reference (for correctness check)
# ----------------------------------------------------------------------------
def ref_forward(features, w1, w2, s1, b1, s2, b2, layer_names=('layer2', 'layer3'),
                sizing_layer='layer2', norm_scale=1.0):
    ref_idx = layer_names.index(sizing_layer)
    x = adaptive_cat_nchw(features, layer_names, ref_idx)

    def conv3x3(inp, w):
        return jax.lax.conv_general_dilated(
            inp, w, (1, 1), ((1, 1), (1, 1)),
            dimension_numbers=('NCHW', 'OIHW', 'NCHW'),
            precision=jax.lax.Precision.HIGHEST)

    y = conv3x3(x, w1)
    y = y * s1[None, :, None, None] + b1[None, :, None, None]
    y = jnp.maximum(y, 0.0)
    y = conv3x3(y, w2)
    y = y * s2[None, :, None, None] + b2[None, :, None, None]
    y = jnp.maximum(y + x, 0.0)
    C, H, W = y.shape[1:]
    ssum = jnp.sum(y * y, axis=(1, 2, 3), keepdims=True)
    return y * (norm_scale * jnp.sqrt(C * H * W / (ssum + 1e-5)))


# ----------------------------------------------------------------------------
if __name__ == "__main__":
    key = jax.random.PRNGKey(0)
    keys = jax.random.split(key, 6)

    # Small shapes consistent with the module: feature_dims=(4, 4) -> feature_dim=8
    N = 2
    C2, C3 = 4, 4
    layer2 = jax.random.normal(keys[0], (N, C2, 16, 16), jnp.float32)
    layer3 = jax.random.normal(keys[1], (N, C3, 8, 8), jnp.float32)
    features = {'layer2': layer2, 'layer3': layer3}
    Cfeat = C2 + C3

    # Deterministic BasicBlock parameters (conv3x3 no-bias + BatchNorm2d eval stats)
    w1 = jax.random.normal(keys[2], (Cfeat, Cfeat, 3, 3), jnp.float32) * 0.1  # OIHW
    w2 = jax.random.normal(keys[3], (Cfeat, Cfeat, 3, 3), jnp.float32) * 0.1

    def bn_params(k):
        k1, k2, k3, k4 = jax.random.split(k, 4)
        gamma = 1.0 + 0.1 * jax.random.normal(k1, (Cfeat,), jnp.float32)
        beta = 0.1 * jax.random.normal(k2, (Cfeat,), jnp.float32)
        mean = 0.1 * jax.random.normal(k3, (Cfeat,), jnp.float32)
        var = 1.0 + 0.1 * jnp.abs(jax.random.normal(k4, (Cfeat,), jnp.float32))
        return gamma, beta, mean, var

    bn_eps = 1e-5
    g1, be1, m1, v1 = bn_params(keys[4])
    g2, be2, m2, v2 = bn_params(keys[5])
    s1 = g1 / jnp.sqrt(v1 + bn_eps); b1 = be1 - m1 * s1
    s2 = g2 / jnp.sqrt(v2 + bn_eps); b2 = be2 - m2 * s2

    params, _cp = prepare_params(w1, w2, s1, b1, s2, b2)

    out = resblock_multilayer_forward(features, params, norm_scale=1.0)
    out = jax.block_until_ready(out)

    ref = ref_forward(features, w1, w2, s1, b1, s2, b2, norm_scale=1.0)
    # Kernel matmuls use f32 operands; tolerance leaves head-room for TPU hardware that
    # lowers f32 MXU matmuls with reduced-precision (bf16) passes by default.
    np.testing.assert_allclose(np.asarray(out), np.asarray(ref), rtol=2e-2, atol=2e-2)

    print("KERNEL_OK")
</pallas_src>

<mosaic_0001>
module attributes {stable_mosaic.version = 11 : i64} {
  func.func @_fused_resblock_kernel(%arg0: i32, %arg1: memref<1x16x16x128xf32, #tpu.memory_space<vmem>>, %arg2: memref<1152x128xf32, #tpu.memory_space<vmem>>, %arg3: memref<1x128xf32, #tpu.memory_space<vmem>>, %arg4: memref<1152x128xf32, #tpu.memory_space<vmem>>, %arg5: memref<1x128xf32, #tpu.memory_space<vmem>>, %arg6: memref<1x16x16x128xf32, #tpu.memory_space<vmem>>, %arg7: memref<18x18x128xf32, #tpu.memory_space<vmem>>, %arg8: memref<256x1152xf32, #tpu.memory_space<vmem>>) attributes {dimension_semantics = [#tpu.dimension_semantics<parallel>], iteration_bounds = array<i64: 2>, scalar_prefetch = 0 : i64, scratch_operands = 2 : i64, tpu.core_type = #tpu.core_type<tc>, window_params = [{transform_indices = @transform_0, window_bounds = array<i64: 1, 16, 16, 128>}, {pipeline_mode = #tpu.pipeline_mode<synchronous>, transform_indices = @transform_1, window_bounds = array<i64: 1152, 128>}, {pipeline_mode = #tpu.pipeline_mode<synchronous>, transform_indices = @transform_2, window_bounds = array<i64: 1, 128>}, {pipeline_mode = #tpu.pipeline_mode<synchronous>, transform_indices = @transform_3, window_bounds = array<i64: 1152, 128>}, {pipeline_mode = #tpu.pipeline_mode<synchronous>, transform_indices = @transform_4, window_bounds = array<i64: 1, 128>}, {transform_indices = @transform_5, window_bounds = array<i64: 1, 16, 16, 128>}]} {
    %cst = arith.constant 0.000000e+00 : f32
    %0 = vector.broadcast %cst : f32 to vector<18x18x128xf32>
    %c0 = arith.constant 0 : index
    %c0_0 = arith.constant 0 : index
    %c0_1 = arith.constant 0 : index
    %1 = vector.load %arg7[%c0, %c0_0, %c0_1] : memref<18x18x128xf32, #tpu.memory_space<vmem>>, vector<18x18x128xf32>
    tpu.vector_store %arg7[%c0, %c0_0, %c0_1], %0 {strides = array<i32>} : memref<18x18x128xf32, #tpu.memory_space<vmem>>, vector<18x18x128xf32>,
    %c0_2 = arith.constant 0 : index
    %c0_3 = arith.constant 0 : index
    %c0_4 = arith.constant 0 : index
    %c0_5 = arith.constant 0 : index
    %2 = vector.load %arg1[%c0_2, %c0_3, %c0_4, %c0_5] : memref<1x16x16x128xf32, #tpu.memory_space<vmem>>, vector<1x16x16x128xf32>
    %3 = vector.shape_cast %2 : vector<1x16x16x128xf32> to vector<16x16x128xf32>
    %c1 = arith.constant 1 : index
    %c1_6 = arith.constant 1 : index
    %c0_7 = arith.constant 0 : index
    %4 = vector.load %arg7[%c1, %c1_6, %c0_7] : memref<18x18x128xf32, #tpu.memory_space<vmem>>, vector<16x16x128xf32>
    tpu.vector_store %arg7[%c1, %c1_6, %c0_7], %3 {strides = array<i32>} : memref<18x18x128xf32, #tpu.memory_space<vmem>>, vector<16x16x128xf32>,
    %c0_8 = arith.constant 0 : index
    %c0_9 = arith.constant 0 : index
    %c0_10 = arith.constant 0 : index
    %5 = vector.load %arg7[%c0_8, %c0_9, %c0_10] : memref<18x18x128xf32, #tpu.memory_space<vmem>>, vector<18x18x128xf32>
    %6 = vector.extract_strided_slice %5 {offsets = [0, 0, 0], sizes = [16, 16, 128], strides = [1, 1, 1]} : vector<18x18x128xf32> to vector<16x16x128xf32>
    %7 = vector.shape_cast %6 : vector<16x16x128xf32> to vector<256x128xf32>
    %c0_11 = arith.constant 0 : index
    %c0_12 = arith.constant 0 : index
    %8 = vector.load %arg8[%c0_11, %c0_12] : memref<256x1152xf32, #tpu.memory_space<vmem>>, vector<256x128xf32>
    tpu.vector_store %arg8[%c0_11, %c0_12], %7 {strides = array<i32>} : memref<256x1152xf32, #tpu.memory_space<vmem>>, vector<256x128xf32>,
    %9 = vector.extract_strided_slice %5 {offsets = [0, 1, 0], sizes = [16, 16, 128], strides = [1, 1, 1]} : vector<18x18x128xf32> to vector<16x16x128xf32>
    %10 = vector.shape_cast %9 : vector<16x16x128xf32> to vector<256x128xf32>
    %c0_13 = arith.constant 0 : index
    %c128 = arith.constant 128 : index
    %11 = vector.load %arg8[%c0_13, %c128] : memref<256x1152xf32, #tpu.memory_space<vmem>>, vector<256x128xf32>
    tpu.vector_store %arg8[%c0_13, %c128], %10 {strides = array<i32>} : memref<256x1152xf32, #tpu.memory_space<vmem>>, vector<256x128xf32>,
    %12 = vector.extract_strided_slice %5 {offsets = [0, 2, 0], sizes = [16, 16, 128], strides = [1, 1, 1]} : vector<18x18x128xf32> to vector<16x16x128xf32>
    %13 = vector.shape_cast %12 : vector<16x16x128xf32> to vector<256x128xf32>
    %c0_14 = arith.constant 0 : index
    %c256 = arith.constant 256 : index
    %14 = vector.load %arg8[%c0_14, %c256] : memref<256x1152xf32, #tpu.memory_space<vmem>>, vector<256x128xf32>
    tpu.vector_store %arg8[%c0_14, %c256], %13 {strides = array<i32>} : memref<256x1152xf32, #tpu.memory_space<vmem>>, vector<256x128xf32>,
    %15 = vector.extract_strided_slice %5 {offsets = [1, 0, 0], sizes = [16, 16, 128], strides = [1, 1, 1]} : vector<18x18x128xf32> to vector<16x16x128xf32>
    %16 = vector.shape_cast %15 : vector<16x16x128xf32> to vector<256x128xf32>
    %c0_15 = arith.constant 0 : index
    %c384 = arith.constant 384 : index
    %17 = vector.load %arg8[%c0_15, %c384] : memref<256x1152xf32, #tpu.memory_space<vmem>>, vector<256x128xf32>
    tpu.vector_store %arg8[%c0_15, %c384], %16 {strides = array<i32>} : memref<256x1152xf32, #tpu.memory_space<vmem>>, vector<256x128xf32>,
    %18 = vector.extract_strided_slice %5 {offsets = [1, 1, 0], sizes = [16, 16, 128], strides = [1, 1, 1]} : vector<18x18x128xf32> to vector<16x16x128xf32>
    %19 = vector.shape_cast %18 : vector<16x16x128xf32> to vector<256x128xf32>
    %c0_16 = arith.constant 0 : index
    %c512 = arith.constant 512 : index
    %20 = vector.load %arg8[%c0_16, %c512] : memref<256x1152xf32, #tpu.memory_space<vmem>>, vector<256x128xf32>
    tpu.vector_store %arg8[%c0_16, %c512], %19 {strides = array<i32>} : memref<256x1152xf32, #tpu.memory_space<vmem>>, vector<256x128xf32>,
    %21 = vector.extract_strided_slice %5 {offsets = [1, 2, 0], sizes = [16, 16, 128], strides = [1, 1, 1]} : vector<18x18x128xf32> to vector<16x16x128xf32>
    %22 = vector.shape_cast %21 : vector<16x16x128xf32> to vector<256x128xf32>
    %c0_17 = arith.constant 0 : index
    %c640 = arith.constant 640 : index
    %23 = vector.load %arg8[%c0_17, %c640] : memref<256x1152xf32, #tpu.memory_space<vmem>>, vector<256x128xf32>
    tpu.vector_store %arg8[%c0_17, %c640], %22 {strides = array<i32>} : memref<256x1152xf32, #tpu.memory_space<vmem>>, vector<256x128xf32>,
    %24 = vector.extract_strided_slice %5 {offsets = [2, 0, 0], sizes = [16, 16, 128], strides = [1, 1, 1]} : vector<18x18x128xf32> to vector<16x16x128xf32>
    %25 = vector.shape_cast %24 : vector<16x16x128xf32> to vector<256x128xf32>
    %c0_18 = arith.constant 0 : index
    %c768 = arith.constant 768 : index
    %26 = vector.load %arg8[%c0_18, %c768] : memref<256x1152xf32, #tpu.memory_space<vmem>>, vector<256x128xf32>
    tpu.vector_store %arg8[%c0_18, %c768], %25 {strides = array<i32>} : memref<256x1152xf32, #tpu.memory_space<vmem>>, vector<256x128xf32>,
    %27 = vector.extract_strided_slice %5 {offsets = [2, 1, 0], sizes = [16, 16, 128], strides = [1, 1, 1]} : vector<18x18x128xf32> to vector<16x16x128xf32>
    %28 = vector.shape_cast %27 : vector<16x16x128xf32> to vector<256x128xf32>
    %c0_19 = arith.constant 0 : index
    %c896 = arith.constant 896 : index
    %29 = vector.load %arg8[%c0_19, %c896] : memref<256x1152xf32, #tpu.memory_space<vmem>>, vector<256x128xf32>
    tpu.vector_store %arg8[%c0_19, %c896], %28 {strides = array<i32>} : memref<256x1152xf32, #tpu.memory_space<vmem>>, vector<256x128xf32>,
    %30 = vector.extract_strided_slice %5 {offsets = [2, 2, 0], sizes = [16, 16, 128], strides = [1, 1, 1]} : vector<18x18x128xf32> to vector<16x16x128xf32>
    %31 = vector.shape_cast %30 : vector<16x16x128xf32> to vector<256x128xf32>
    %c0_20 = arith.constant 0 : index
    %c1024 = arith.constant 1024 : index
    %32 = vector.load %arg8[%c0_20, %c1024] : memref<256x1152xf32, #tpu.memory_space<vmem>>, vector<256x128xf32>
    tpu.vector_store %arg8[%c0_20, %c1024], %31 {strides = array<i32>} : memref<256x1152xf32, #tpu.memory_space<vmem>>, vector<256x128xf32>,
    %c0_21 = arith.constant 0 : index
    %c0_22 = arith.constant 0 : index
    %33 = vector.load %arg8[%c0_21, %c0_22] : memref<256x1152xf32, #tpu.memory_space<vmem>>, vector<256x1152xf32>
    %c0_23 = arith.constant 0 : index
    %c0_24 = arith.constant 0 : index
    %34 = vector.load %arg2[%c0_23, %c0_24] : memref<1152x128xf32, #tpu.memory_space<vmem>>, vector<1152x128xf32>
    %cst_25 = arith.constant dense<0.000000e+00> : vector<256x128xf32>
    %35 = tpu.matmul %33, %34, %cst_25 {dimension_numbers = #tpu.dot_dimension_numbers<[1], [0], [0], [1], [0, 0, 1, 1], [], []>} : vector<256x1152xf32>, vector<1152x128xf32>, vector<256x128xf32> -> vector<256x128xf32>
    %c0_26 = arith.constant 0 : index
    %c0_27 = arith.constant 0 : index
    %36 = vector.load %arg3[%c0_26, %c0_27] : memref<1x128xf32, #tpu.memory_space<vmem>>, vector<1x128xf32>
    %37 = vector.shape_cast %36 : vector<1x128xf32> to vector<128xf32>
    %38 = vector.shape_cast %37 : vector<128xf32> to vector<1x128xf32>
    %39 = vector.broadcast %38 : vector<1x128xf32> to vector<256x128xf32>
    %40 = arith.addf %35, %39 : vector<256x128xf32>
    %cst_28 = arith.constant 0.000000e+00 : f32
    %41 = vector.broadcast %cst_28 : f32 to vector<256x128xf32>
    %42 = arith.maximumf %40, %41 : vector<256x128xf32>
    %43 = vector.shape_cast %42 : vector<256x128xf32> to vector<16x16x128xf32>
    %c1_29 = arith.constant 1 : index
    %c1_30 = arith.constant 1 : index
    %c0_31 = arith.constant 0 : index
    %44 = vector.load %arg7[%c1_29, %c1_30, %c0_31] : memref<18x18x128xf32, #tpu.memory_space<vmem>>, vector<16x16x128xf32>
    tpu.vector_store %arg7[%c1_29, %c1_30, %c0_31], %43 {strides = array<i32>} : memref<18x18x128xf32, #tpu.memory_space<vmem>>, vector<16x16x128xf32>,
    %c0_32 = arith.constant 0 : index
    %c0_33 = arith.constant 0 : index
    %c0_34 = arith.constant 0 : index
    %45 = vector.load %arg7[%c0_32, %c0_33, %c0_34] : memref<18x18x128xf32, #tpu.memory_space<vmem>>, vector<18x18x128xf32>
    %46 = vector.extract_strided_slice %45 {offsets = [0, 0, 0], sizes = [16, 16, 128], strides = [1, 1, 1]} : vector<18x18x128xf32> to vector<16x16x128xf32>
    %47 = vector.shape_cast %46 : vector<16x16x128xf32> to vector<256x128xf32>
    %c0_35 = arith.constant 0 : index
    %c0_36 = arith.constant 0 : index
    %48 = vector.load %arg8[%c0_35, %c0_36] : memref<256x1152xf32, #tpu.memory_space<vmem>>, vector<256x128xf32>
    tpu.vector_store %arg8[%c0_35, %c0_36], %47 {strides = array<i32>} : memref<256x1152xf32, #tpu.memory_space<vmem>>, vector<256x128xf32>,
    %49 = vector.extract_strided_slice %45 {offsets = [0, 1, 0], sizes = [16, 16, 128], strides = [1, 1, 1]} : vector<18x18x128xf32> to vector<16x16x128xf32>
    %50 = vector.shape_cast %49 : vector<16x16x128xf32> to vector<256x128xf32>
    %c0_37 = arith.constant 0 : index
    %c128_38 = arith.constant 128 : index
    %51 = vector.load %arg8[%c0_37, %c128_38] : memref<256x1152xf32, #tpu.memory_space<vmem>>, vector<256x128xf32>
    tpu.vector_store %arg8[%c0_37, %c128_38], %50 {strides = array<i32>} : memref<256x1152xf32, #tpu.memory_space<vmem>>, vector<256x128xf32>,
    %52 = vector.extract_strided_slice %45 {offsets = [0, 2, 0], sizes = [16, 16, 128], strides = [1, 1, 1]} : vector<18x18x128xf32> to vector<16x16x128xf32>
    %53 = vector.shape_cast %52 : vector<16x16x128xf32> to vector<256x128xf32>
    %c0_39 = arith.constant 0 : index
    %c256_40 = arith.constant 256 : index
    %54 = vector.load %arg8[%c0_39, %c256_40] : memref<256x1152xf32, #tpu.memory_space<vmem>>, vector<256x128xf32>
    tpu.vector_store %arg8[%c0_39, %c256_40], %53 {strides = array<i32>} : memref<256x1152xf32, #tpu.memory_space<vmem>>, vector<256x128xf32>,
    %55 = vector.extract_strided_slice %45 {offsets = [1, 0, 0], sizes = [16, 16, 128], strides = [1, 1, 1]} : vector<18x18x128xf32> to vector<16x16x128xf32>
    %56 = vector.shape_cast %55 : vector<16x16x128xf32> to vector<256x128xf32>
    %c0_41 = arith.constant 0 : index
    %c384_42 = arith.constant 384 : index
    %57 = vector.load %arg8[%c0_41, %c384_42] : memref<256x1152xf32, #tpu.memory_space<vmem>>, vector<256x128xf32>
    tpu.vector_store %arg8[%c0_41, %c384_42], %56 {strides = array<i32>} : memref<256x1152xf32, #tpu.memory_space<vmem>>, vector<256x128xf32>,
    %58 = vector.extract_strided_slice %45 {offsets = [1, 1, 0], sizes = [16, 16, 128], strides = [1, 1, 1]} : vector<18x18x128xf32> to vector<16x16x128xf32>
    %59 = vector.shape_cast %58 : vector<16x16x128xf32> to vector<256x128xf32>
    %c0_43 = arith.constant 0 : index
    %c512_44 = arith.constant 512 : index
    %60 = vector.load %arg8[%c0_43, %c512_44] : memref<256x1152xf32, #tpu.memory_space<vmem>>, vector<256x128xf32>
    tpu.vector_store %arg8[%c0_43, %c512_44], %59 {strides = array<i32>} : memref<256x1152xf32, #tpu.memory_space<vmem>>, vector<256x128xf32>,
    %61 = vector.extract_strided_slice %45 {offsets = [1, 2, 0], sizes = [16, 16, 128], strides = [1, 1, 1]} : vector<18x18x128xf32> to vector<16x16x128xf32>
    %62 = vector.shape_cast %61 : vector<16x16x128xf32> to vector<256x128xf32>
    %c0_45 = arith.constant 0 : index
    %c640_46 = arith.constant 640 : index
    %63 = vector.load %arg8[%c0_45, %c640_46] : memref<256x1152xf32, #tpu.memory_space<vmem>>, vector<256x128xf32>
    tpu.vector_store %arg8[%c0_45, %c640_46], %62 {strides = array<i32>} : memref<256x1152xf32, #tpu.memory_space<vmem>>, vector<256x128xf32>,
    %64 = vector.extract_strided_slice %45 {offsets = [2, 0, 0], sizes = [16, 16, 128], strides = [1, 1, 1]} : vector<18x18x128xf32> to vector<16x16x128xf32>
    %65 = vector.shape_cast %64 : vector<16x16x128xf32> to vector<256x128xf32>
    %c0_47 = arith.constant 0 : index
    %c768_48 = arith.constant 768 : index
    %66 = vector.load %arg8[%c0_47, %c768_48] : memref<256x1152xf32, #tpu.memory_space<vmem>>, vector<256x128xf32>
    tpu.vector_store %arg8[%c0_47, %c768_48], %65 {strides = array<i32>} : memref<256x1152xf32, #tpu.memory_space<vmem>>, vector<256x128xf32>,
    %67 = vector.extract_strided_slice %45 {offsets = [2, 1, 0], sizes = [16, 16, 128], strides = [1, 1, 1]} : vector<18x18x128xf32> to vector<16x16x128xf32>
    %68 = vector.shape_cast %67 : vector<16x16x128xf32> to vector<256x128xf32>
    %c0_49 = arith.constant 0 : index
    %c896_50 = arith.constant 896 : index
    %69 = vector.load %arg8[%c0_49, %c896_50] : memref<256x1152xf32, #tpu.memory_space<vmem>>, vector<256x128xf32>
    tpu.vector_store %arg8[%c0_49, %c896_50], %68 {strides = array<i32>} : memref<256x1152xf32, #tpu.memory_space<vmem>>, vector<256x128xf32>,
    %70 = vector.extract_strided_slice %45 {offsets = [2, 2, 0], sizes = [16, 16, 128], strides = [1, 1, 1]} : vector<18x18x128xf32> to vector<16x16x128xf32>
    %71 = vector.shape_cast %70 : vector<16x16x128xf32> to vector<256x128xf32>
    %c0_51 = arith.constant 0 : index
    %c1024_52 = arith.constant 1024 : index
    %72 = vector.load %arg8[%c0_51, %c1024_52] : memref<256x1152xf32, #tpu.memory_space<vmem>>, vector<256x128xf32>
    tpu.vector_store %arg8[%c0_51, %c1024_52], %71 {strides = array<i32>} : memref<256x1152xf32, #tpu.memory_space<vmem>>, vector<256x128xf32>,
    %c0_53 = arith.constant 0 : index
    %c0_54 = arith.constant 0 : index
    %73 = vector.load %arg8[%c0_53, %c0_54] : memref<256x1152xf32, #tpu.memory_space<vmem>>, vector<256x1152xf32>
    %c0_55 = arith.constant 0 : index
    %c0_56 = arith.constant 0 : index
    %74 = vector.load %arg4[%c0_55, %c0_56] : memref<1152x128xf32, #tpu.memory_space<vmem>>, vector<1152x128xf32>
    %cst_57 = arith.constant dense<0.000000e+00> : vector<256x128xf32>
    %75 = tpu.matmul %73, %74, %cst_57 {dimension_numbers = #tpu.dot_dimension_numbers<[1], [0], [0], [1], [0, 0, 1, 1], [], []>} : vector<256x1152xf32>, vector<1152x128xf32>, vector<256x128xf32> -> vector<256x128xf32>
    %c0_58 = arith.constant 0 : index
    %c0_59 = arith.constant 0 : index
    %76 = vector.load %arg5[%c0_58, %c0_59] : memref<1x128xf32, #tpu.memory_space<vmem>>, vector<1x128xf32>
    %77 = vector.shape_cast %76 : vector<1x128xf32> to vector<128xf32>
    %78 = vector.shape_cast %77 : vector<128xf32> to vector<1x128xf32>
    %79 = vector.broadcast %78 : vector<1x128xf32> to vector<256x128xf32>
    %80 = arith.addf %75, %79 : vector<256x128xf32>
    %c0_60 = arith.constant 0 : index
    %c0_61 = arith.constant 0 : index
    %c0_62 = arith.constant 0 : index
    %c0_63 = arith.constant 0 : index
    %81 = vector.load %arg1[%c0_60, %c0_61, %c0_62, %c0_63] : memref<1x16x16x128xf32, #tpu.memory_space<vmem>>, vector<1x16x16x128xf32>
    %82 = vector.shape_cast %81 : vector<1x16x16x128xf32> to vector<16x16x128xf32>
    %83 = vector.shape_cast %82 : vector<16x16x128xf32> to vector<256x128xf32>
    %84 = arith.addf %80, %83 : vector<256x128xf32>
    %cst_64 = arith.constant 0.000000e+00 : f32
    %85 = vector.broadcast %cst_64 : f32 to vector<256x128xf32>
    %86 = arith.maximumf %84, %85 : vector<256x128xf32>
    %87 = arith.mulf %86, %86 : vector<256x128xf32>
    %88 = vector.shape_cast %87 : vector<256x128xf32> to vector<1x256x128xf32>
    %cst_65 = arith.constant dense<0.000000e+00> : vector<1xf32>
    %89 = vector.multi_reduction <add>, %88, %cst_65 [1, 2] : vector<1x256x128xf32> to vector<1xf32>
    %90 = vector.shape_cast %89 : vector<1xf32> to vector<1x1x1xf32>
    %91 = vector.extract %90[0, 0, 0] : f32 from vector<1x1x1xf32>
    %cst_66 = arith.constant 9.99999974E-6 : f32
    %92 = arith.addf %91, %cst_66 : f32
    %93 = math.rsqrt %92 : f32
    %cst_67 = arith.constant 45.2548332 : f32
    %94 = arith.mulf %cst_67, %93 : f32
    %95 = vector.broadcast %94 : f32 to vector<256x128xf32>
    %96 = arith.mulf %86, %95 : vector<256x128xf32>
    %97 = vector.shape_cast %96 : vector<256x128xf32> to vector<16x16x128xf32>
    %c0_68 = arith.constant 0 : index
    %c0_69 = arith.constant 0 : index
    %c0_70 = arith.constant 0 : index
    %c0_71 = arith.constant 0 : index
    %98 = vector.load %arg6[%c0_68, %c0_69, %c0_70, %c0_71] : memref<1x16x16x128xf32, #tpu.memory_space<vmem>>, vector<1x16x16x128xf32>
    %99 = vector.shape_cast %98 : vector<1x16x16x128xf32> to vector<16x16x128xf32>
    %100 = vector.shape_cast %97 : vector<16x16x128xf32> to vector<1x16x16x128xf32>
    tpu.vector_store %arg6[%c0_68, %c0_69, %c0_70, %c0_71], %100 {strides = array<i32>} : memref<1x16x16x128xf32, #tpu.memory_space<vmem>>, vector<1x16x16x128xf32>,
    return
  }
  func.func @transform_0(%arg0: i32) -> (i32, i32, i32, i32) {
    %c0_i32 = arith.constant 0 : i32
    %c0_i32_0 = arith.constant 0 : i32
    %c0_i32_1 = arith.constant 0 : i32
    %c0_i32_2 = arith.constant 0 : i32
    return %arg0, %c0_i32, %c0_i32_0, %c0_i32_1 : i32, i32, i32, i32
  }
  func.func @transform_1(%arg0: i32) -> (i32, i32) {
    %c0_i32 = arith.constant 0 : i32
    %c0_i32_0 = arith.constant 0 : i32
    %c0_i32_1 = arith.constant 0 : i32
    return %c0_i32, %c0_i32_0 : i32, i32
  }
  func.func @transform_2(%arg0: i32) -> (i32, i32) {
    %c0_i32 = arith.constant 0 : i32
    %c0_i32_0 = arith.constant 0 : i32
    %c0_i32_1 = arith.constant 0 : i32
    return %c0_i32, %c0_i32_0 : i32, i32
  }
  func.func @transform_3(%arg0: i32) -> (i32, i32) {
    %c0_i32 = arith.constant 0 : i32
    %c0_i32_0 = arith.constant 0 : i32
    %c0_i32_1 = arith.constant 0 : i32
    return %c0_i32, %c0_i32_0 : i32, i32
  }
  func.func @transform_4(%arg0: i32) -> (i32, i32) {
    %c0_i32 = arith.constant 0 : i32
    %c0_i32_0 = arith.constant 0 : i32
    %c0_i32_1 = arith.constant 0 : i32
    return %c0_i32, %c0_i32_0 : i32, i32
  }
  func.func @transform_5(%arg0: i32) -> (i32, i32, i32, i32) {
    %c0_i32 = arith.constant 0 : i32
    %c0_i32_0 = arith.constant 0 : i32
    %c0_i32_1 = arith.constant 0 : i32
    %c0_i32_2 = arith.constant 0 : i32
    return %arg0, %c0_i32, %c0_i32_0, %c0_i32_1 : i32, i32, i32, i32
  }
}

</mosaic_0001>

<bundles_post_ra>
// kernel: tpu_custom_call.1
= control target key start
LH: loop header
LB: loop body
LE: loop exit
PB: predicated region body
PF: predicated region fallthrough
CT: control target
= control target key end

     0   :  { %10 = vsyncpa [#allocation5], 0  ;;  %s9073_s0 = inlined_call_operand.hbm [shape: f32[2,16,16,128], index: 0, kind: input, shape index: {}]   ;;  %s9074_s1 = inlined_call_operand.hbm [shape: f32[1152,128], index: 1, kind: input, shape index: {}]   ;;  %s9075_s2 = inlined_call_operand.vmem [shape: f32[1,128], index: 2, kind: input, shape index: {}]   ;;  %s9076_s3 = inlined_call_operand.hbm [shape: f32[1152,128], index: 3, kind: input, shape index: {}]   ;;  %s9077_s4 = inlined_call_operand.vmem [shape: f32[1,128], index: 4, kind: input, shape index: {}]   ;;  %s9078_s5 = inlined_call_operand.hbm [shape: f32[2,16,16,128], index: 5, kind: output, shape index: {}]  }
   0x1   :  { %12 = vsyncpa [#allocation5 + $0x1], 0 }
   0x2   :  { %13 = vsyncpa [#allocation8], 0 }
   0x3   :  { %14 = vsyncpa [#allocation6], 0 }
   0x4   :  { %16 = vsyncpa [#allocation6 + $0x1], 0  ;;  %s6743_s18 = smov 0   ;;  %s6745_s19 = smov 0  }
   0x5   :  { %s6747_s20 = smov 0   ;;  %s6749_s21 = smov 0  }
   0x6 LB: > { %s6764_s22 = sadd.s32 4294967295, %s6701_s21   ;;  %s5225_s23 = sadd.s32 4294967294, %s6701_s21   ;;  %s6701_s21 = sphi %s6749_s21, %s9424_s21   ;;  %s6697_s20 = sphi %s6747_s20, %s9423_s20   ;;  %s6693_s19 = sphi %s6745_s19, %s9422_s19   ;;  %s6689_s18 = sphi %s6743_s18, %s9421_s18  }
   0x7   : > { %p42_p0 = scmp.ne.s32.totalorder %s6693_s19, %s6689_s18  ;;  %p9079_p1 = scmp.eq.s32.totalorder %s6764_s22, 0 }
   0x8   : > { %p156_p3 = scmp.eq.s32.totalorder %s5225_s23, 1  ;;  %p5226_p5 = scmp.ge.s32.totalorder %s6701_s21, 1 }
   0x9   : > { %p6773_p4 = por %p9079_p1, %p42_p0  ;;  %p163_p7 = scmp.lt.s32.totalorder %s6701_s21, 3 }
   0xa   : > { %p6778_p6 = por %p156_p3, %p42_p0  ;;  %s6703_s27 = smov [#allocation7]  }
   0xb   : > { %s9229_s24 = scalar_select %p6773_p4, 1, 0 }
   0xc   : > { %s9230_s25 = scalar_select %p6778_p6, 1, 0 }
   0xd   : > { %p6783_p8 = pnand %p5226_p5, %p163_p7  ;;  %s175_s28 = sshll.u32 %s6703_s27, 4  ;;  %s6787_s28 = int_to_ptr.vmem [resolvable:$true] %s175_s28 }
   0xe   : > { %s6704_s30 = smov [#allocation9]   ;;  %s6545_s9 = scalar_lea.hbm %s9074_s1, 18432 }
   0xf   : > { %p6431_p9 = pneg %p6783_p8  ;;  %s191_s6 = sshll.u32 %s6704_s30, 4  ;;  %s6798_s6 = int_to_ptr.vmem [resolvable:$true] %s191_s6 }
  0x10   : > { %p6546_p12 = scmp.ne.s32.totalorder %s9074_s1, %s6545_s9  ;;  %p6552_p5 = scmp.lt.u32.totalorder %s6545_s9, %s9074_s1 }
  0x11   : > { %p6794_p11 = pnand %p6431_p9, %p9079_p1 }
  0x13   : > { %p6547_p13 = pneg %p6794_p11 }
  0x15   : > { %p6548_p0 = pnand %p6547_p13, %p6546_p12 }
  0x17   : > { %p6549_p3 = pneg %p6548_p0 }
  0x19   : > { %p6554_p7 = pnand %p6552_p5, %p6549_p3 }
  0x1b   : > { %6557 = shalt.err (!%p6554_p7)
}
  0x1c   : > { %s6558_s14 = scalar_lea.vmem %s6787_s28, 18432  ;;  %p6566_p2 = scmp.lt.s32.totalorder %s6787_s28, %s6787_s28 }
  0x1d   : > { %p6559_p9 = scmp.ne.s32.totalorder %s6787_s28, %s6558_s14  ;;  %p6567_p12 = scmp.lt.s32.totalorder %s6558_s14, %s6558_s14 }
  0x1f   : > { %p6561_p10 = pnand %p6559_p9, %p6547_p13  ;;  %p6568_p0 = por %p6567_p12, %p6566_p2 }
  0x21   : > { %p6562_p1 = pneg %p6561_p10 }
  0x23   : > { %p6569_p6 = pnand %p6568_p0, %p6562_p1 }
  0x25   : > { %6572 = shalt.err (!%p6569_p6)
}
  0x26   : > { %s6705_s15 = smov 128   ;;  %s6706_s16 = smov 8  }
  0x27   : > { %6434 = dma.hbm_to_vmem [thread:$0]  (!%p6794_p11), %s9074_s1, 18432, %s6787_s28, [#allocation8], %s6705_s15, %s6705_s15, %s6706_s16  }
  0x28   : > { %s6573_s7 = scalar_lea.hbm %s9076_s3, 18432 }
  0x29   : > { %p6574_p1 = scmp.ne.s32.totalorder %s9076_s3, %s6573_s7  ;;  %p6580_p10 = scmp.lt.u32.totalorder %s6573_s7, %s9076_s3 }
  0x2b   : > { %p6576_p2 = pnand %p6574_p1, %p6547_p13 }
  0x2d   : > { %p6577_p6 = pneg %p6576_p2 }
  0x2f   : > { %p6582_p3 = pnand %p6580_p10, %p6577_p6 }
  0x31   : > { %6585 = shalt.err (!%p6582_p3)
}
  0x32   : > { %s6586_s28 = scalar_lea.vmem %s6798_s6, 18432  ;;  %p6594_p12 = scmp.lt.s32.totalorder %s6798_s6, %s6798_s6 }
  0x33   : > { %p6587_p5 = scmp.ne.s32.totalorder %s6798_s6, %s6586_s28  ;;  %p6595_p0 = scmp.lt.s32.totalorder %s6586_s28, %s6586_s28 }
  0x35   : > { %p6589_p7 = pnand %p6587_p5, %p6547_p13  ;;  %p6596_p1 = por %p6595_p0, %p6594_p12 }
  0x37   : > { %p6590_p9 = pneg %p6589_p7 }
  0x39   : > { %p6597_p2 = pnand %p6596_p1, %p6590_p9 }
  0x3b   : > { %6600 = shalt.err (!%p6597_p2)
}
  0x3c   : > { %6437 = dma.hbm_to_vmem [thread:$0]  (!%p6794_p11), %s9076_s3, 18432, %s6798_s6, [#allocation8], %s6705_s15, %s6705_s15, %s6706_s16  }
  0x3d   : > { %s6859_s29 = sadd.s32 1, %s6701_s21   ;;  %s29_s14 = sadd.s32 1, %s6697_s20 }
  0x3e   : > { %s26_s17 = ssub.s32 %s6701_s21, %s6859_s29  ;;  %p36_p13 = scmp.ne.s32.totalorder %s6697_s20, %s6693_s19 }
  0x3f   : > { %p27_p6 = scmp.eq.s32.totalorder %s26_s17, 0  ;;  %p37_p10 = scmp.eq.s32.totalorder %s6701_s21, 0 }
  0x40   : > { %p9233_p3 = scmp.eq.s32.totalorder %s6764_s22, 1  ;;  %p6448_p7 = scmp.lt.s32.totalorder %s6701_s21, 2 }
  0x41   : > { %s6875_s27 = scalar_select %p27_p6, %s6697_s20, %s29_s14  }
  0x42   : > { %p6869_p5 = por %p9233_p3, %p36_p13  ;;  %p38_p9 = por %p37_p10, %p36_p13 }
  0x43   : > { %s208_s30 = sand.u32 1, %s6697_s20   ;;  %s5245_s6 = sshll.u32 %s6701_s21, 12 }
  0x44   : > { %s9234_s23 = scalar_select %p6869_p5, 1, 0 }
  0x45   : > { %s5230_s7 = sshll.u32 %s208_s30, 8  ;;  %s6882_s10 = scalar_lea.hbm %s9073_s0, %s5245_s6 }
  0x46   : > { %s212_s11 = scalar_lea.vmem [#allocation4], %s5230_s7  ;;  %p6886_p11 = pnand %p6448_p7, %p38_p9 }
  0x47   : > { %s219_s28 = sshll.u32 %s212_s11, 4  ;;  %s6890_s13 = scalar_lea.sflag [#allocation5], %s208_s30  ;;  %s6884_s28 = int_to_ptr.vmem [resolvable:$true] %s219_s28 }
  0x48   : > { %s6601_s14 = scalar_lea.hbm %s6882_s10, 4096  ;;  %p6603_p0 = pneg %p6886_p11 }
  0x49   : > { %p6602_p12 = scmp.ne.s32.totalorder %s6882_s10, %s6601_s14  ;;  %s6606_s6 = scalar_lea.hbm %s9073_s0, 8192 }
  0x4a   : > { %p6607_p13 = scmp.lt.u32.totalorder %s6882_s10, %s9073_s0  ;;  %p6608_p6 = scmp.lt.u32.totalorder %s6606_s6, %s6601_s14 }
  0x4b   : > { %p6604_p1 = pnand %p6603_p0, %p6602_p12  ;;  %p6610_p3 = scmp.lt.u32.totalorder %s6601_s14, %s6882_s10 }
  0x4c   : > { %p6609_p10 = por %p6608_p6, %p6607_p13 }
  0x4d   : > { %p6605_p2 = pneg %p6604_p1 }
  0x4e   : > { %p6611_p7 = por %p6610_p3, %p6609_p10 }
  0x50   : > { %p6612_p9 = pnand %p6611_p7, %p6605_p2 }
  0x52   : > { %6615 = shalt.err (!%p6612_p9)
}
  0x53   : > { %s6616_s30 = scalar_lea.vmem %s6884_s28, 4096  ;;  %s6707_s11 = smov [#allocation4]  }
  0x54   : > { %p6617_p12 = scmp.ne.s32.totalorder %s6884_s28, %s6616_s30  ;;  %s6621_s17 = sshll.u32 %s6707_s11, 4  ;;  %s6622_s17 = int_to_ptr.vmem [resolvable:$false] %s6621_s17 }
  0x55   : > { %s6623_s7 = scalar_lea.vmem %s6622_s17, 8192  ;;  %p6624_p4 = scmp.lt.s32.totalorder %s6884_s28, %s6622_s17 }
  0x56   : > { %p6619_p1 = pnand %p6617_p12, %p6603_p0  ;;  %p6625_p13 = scmp.lt.s32.totalorder %s6623_s7, %s6616_s30 }
  0x58   : > { %p6620_p5 = pneg %p6619_p1  ;;  %p6626_p6 = por %p6625_p13, %p6624_p4 }
  0x5a   : > { %p6627_p10 = pnand %p6626_p6, %p6620_p5 }
  0x5c   : > { %6630 = shalt.err (!%p6627_p10)
}
  0x5d   : > { %6441 = dma.hbm_to_vmem [thread:$0]  (!%p6886_p11), %s6882_s10, 4096, %s6884_s28, %s6890_s13, %s6705_s15, %s6705_s15, %s6706_s16  }
  0x5e   : > { %231 = sbr.rel (%p6783_p8) target bundleno = 1837 (0x72d), region = 40 }
  0x65   : > { %s6924_s14 = sand.u32 1, %s6693_s19   ;;  %p9236_p4 = scmp.ne.s32.totalorder %s9229_s24, 0 }
  0x66   : > { %s5234_s6 = sshll.u32 %s6924_s14, 8  ;;  %s234_s8 = scalar_lea.sflag [#allocation5], %s6924_s14 }
  0x67   : > { %s6930_s12 = scalar_lea.vmem [#allocation4], %s5234_s6 }
  0x68   : > { %6676 = dma.done.wait (%p9236_p4), %s234_s8, 4096  }
  0x69   : > { %6678 = vsyncadd (%p9236_p4), %s234_s8, 4294963200  ;;  %p9237_p5 = scmp.eq.s32.totalorder %s6764_s22, 0 }
  0x6b   : > { %6680 = dma.done.wait (%p9237_p5), [#allocation8], 36864   ;;  %p9238_p8 = pmov %p9237_p5 }
  0x6c   : > { %vm525_vm0 = vcmask 1046528   ;;  %v9083_v0 = vmov 0.0|0.0   ;;  %v9085_v1 = vmov 0.0   ;;  %v1329_v3 = vld [vmem:[#allocation7] sm:$0xff]  ;;  %v1330_v4 = vld [vmem:[#allocation7 + $0x8] sm:$0xff]  ;;  %v1331_v5 = vld [vmem:[#allocation7 + $0x10] sm:$0xff] }
  0x6d   : > { %6682 = vsyncadd (%p9238_p8), [#allocation8], 4294930432  ;;  %5503 = vmatprep.subr.bf16.mxu0 %v9083_v0  ;;  %272 = vst [vmem:[#allocation2] sm:$0xff] %v9085_v1  ;;  %v6943_v2 = vrot.slane %v9085_v1, 1  ;;  %v5504_v6 = vpack.c.bf16 %v1330_v4, %v1329_v3  ;;  %v1332_v7 = vld [vmem:[#allocation7 + $0x18] sm:$0xff]  ;;  %v1333_v9 = vld [vmem:[#allocation7 + $0x20] sm:$0xff] }
  0x6e   : > { %274 = vst [vmem:[#allocation2 + $0x10] sm:$0x3] %v9085_v1  ;;  %275 = vst [vmem:[#allocation2 + $0x18] sm:$0xff] %v9085_v1  ;;  %v5507_v8 = vpack.c.bf16 %v1332_v7, %v1331_v5  ;;  %v1334_v10 = vld [vmem:[#allocation7 + $0x28] sm:$0xff]  ;;  %v1335_v12 = vld [vmem:[#allocation7 + $0x30] sm:$0xff]  ;;  %vm670_vm1 = vcmask 1045504  }
  0x6f   : > { %276 = vst [vmem:[#allocation2 + $0x20] sm:$0xff] %v9085_v1  ;;  %277 = vst [vmem:[#allocation2 + $0x28] sm:$0x3] %v9085_v1  ;;  %1544 = vmatprep.mubr.f32.mxu0 %v6943_v2  ;;  %5505 = vmatpush1.bf16.msra.mxu0 %v5504_v6  ;;  %v5510_v11 = vpack.c.bf16 %v1334_v10, %v1333_v9  ;;  %v1336_v13 = vld [vmem:[#allocation7 + $0x38] sm:$0xff]  ;;  %v326_v15 = vld [vmem:[%s6930_s12] sm:$0xff]  ;;  %s8968_s30 = scalar_lea.vmem [#allocation10], %s5234_s6 }
  0x70   : > { %278 = vst [vmem:[#allocation2 + $0x30] sm:$0xff] %v9085_v1  ;;  %279 = vst [vmem:[#allocation2 + $0x38] sm:$0xff] %v9085_v1  ;;  %5506 = vmatprep.subr.bf16.mxu0 %v9083_v0  ;;  %v5513_v14 = vpack.c.bf16 %v1336_v13, %v1335_v12  ;;  %v1337_v16 = vld [vmem:[#allocation7 + $0x40] sm:$0xff]  ;;  %v1338_v17 = vld [vmem:[#allocation7 + $0x48] sm:$0xff]  ;;  %s5246_s11 = sshll.u32 %s6764_s22, 12  ;;  %s5133_s17 = sshll.u32 %s8968_s30, 4  ;;  %s9013_s17 = int_to_ptr.vmem [resolvable:$true] %s5133_s17 }
  0x71   : > { %280 = vst [vmem:[#allocation2 + $0x40] sm:$0x3] %v9085_v1  ;;  %281 = vst [vmem:[#allocation2 + $0x48] sm:$0xff] %v9085_v1  ;;  %v327_v18 = vld [vmem:[%s6930_s12 + $0x8] sm:$0xff]  ;;  %v328_v19 = vld [vmem:[%s6930_s12 + $0x10] sm:$0xff]  ;;  %v5516_v23 = vpack.c.bf16 %v1338_v17, %v1337_v16  ;;  %s9011_s6 = scalar_lea.hbm %s9078_s5, %s5246_s11  ;;  %s5120_s8 = scalar_lea.sflag [#allocation6], %s6924_s14 }
  0x72   : > { %282 = vst [vmem:[#allocation2 + $0x50] sm:$0xff] %v9085_v1  ;;  %283 = vst [vmem:[#allocation2 + $0x58] sm:$0x3] %v9085_v1  ;;  %v329_v20 = vld [vmem:[%s6930_s12 + $0x18] sm:$0xff]  ;;  %v330_v21 = vld [vmem:[%s6930_s12 + $0x20] sm:$0xff]  ;;  %p9418_p0 = scmp.ne.s32.totalorder %s9234_s23, 0 }
  0x73   : > { %284 = vst [vmem:[#allocation2 + $0x60] sm:$0xff] %v9085_v1  ;;  %285 = vst [vmem:[#allocation2 + $0x68] sm:$0xff] %v9085_v1  ;;  %5508 = vmatpush1.bf16.msra.mxu0 %v5507_v8  ;;  %v331_v22 = vld [vmem:[%s6930_s12 + $0x28] sm:$0xff]  ;;  %v332_v24 = vld [vmem:[%s6930_s12 + $0x30] sm:$0xff]  ;;  %s6710_s24 = smov [#allocation10]  }
  0x74   : > { %286 = vst [vmem:[#allocation2 + $0x70] sm:$0x3] %v9085_v1  ;;  %287 = vst [vmem:[#allocation2 + $0x78] sm:$0xff] %v9085_v1  ;;  %5509 = vmatprep.subr.bf16.mxu0 %v9083_v0  ;;  %v1339_v25 = vld [vmem:[#allocation7 + $0x50] sm:$0xff]  ;;  %v1340_v26 = vld [vmem:[#allocation7 + $0x58] sm:$0xff]  ;;  %s6635_s26 = sshll.u32 %s6710_s24, 4  ;;  %s6636_s26 = int_to_ptr.vmem [resolvable:$false] %s6635_s26 }
  0x75   : > { %288 = vst [vmem:[#allocation2 + $0x80] sm:$0xff] %v9085_v1  ;;  %289 = vst [vmem:[#allocation2 + $0x88] sm:$0x3] %v9085_v1  ;;  %v333_v27 = vld [vmem:[%s6930_s12 + $0x38] sm:$0xff]  ;;  %v334_v28 = vld [vmem:[%s6930_s12 + $0x40] sm:$0xff]  ;;  %v5519_v32 = vpack.c.bf16 %v1340_v26, %v1339_v25  ;;  %s6637_s15 = scalar_lea.vmem %s6636_s26, 8192  ;;  %p6638_p7 = scmp.lt.s32.totalorder %s9013_s17, %s6636_s26 }
  0x76   : > { %290 = vst [vmem:[#allocation2 + $0x90] sm:$0xff] %v9085_v1  ;;  %291 = vst [vmem:[#allocation2 + $0x98] sm:$0xff] %v9085_v1  ;;  %v335_v29 = vld [vmem:[%s6930_s12 + $0x48] sm:$0xff]  ;;  %v336_v30 = vld [vmem:[%s6930_s12 + $0x50] sm:$0xff] }
  0x77   : > { %292 = vst [vmem:[#allocation2 + $0xa0] sm:$0x3] %v9085_v1  ;;  %293 = vst [vmem:[#allocation2 + $0xa8] sm:$0xff] %v9085_v1  ;;  %5511 = vmatpush1.bf16.msra.mxu0 %v5510_v11  ;;  %v337_v31 = vld [vmem:[%s6930_s12 + $0x58] sm:$0xff]  ;;  %v1341_v33 = vld [vmem:[#allocation7 + $0x60] sm:$0xff] }
  0x78   : > { %294 = vst [vmem:[#allocation2 + $0xb0] sm:$0xff] %v9085_v1  ;;  %295 = vst [vmem:[#allocation2 + $0xb8] sm:$0x3] %v9085_v1  ;;  %5512 = vmatprep.subr.bf16.mxu0 %v9083_v0  ;;  %v1342_v34 = vld [vmem:[#allocation7 + $0x68] sm:$0xff]  ;;  %v338_v35 = vld [vmem:[%s6930_s12 + $0x60] sm:$0xff] }
  0x79   : > { %296 = vst [vmem:[#allocation2 + $0xc0] sm:$0xff] %v9085_v1  ;;  %297 = vst [vmem:[#allocation2 + $0xc8] sm:$0xff] %v9085_v1  ;;  %v339_v36 = vld [vmem:[%s6930_s12 + $0x68] sm:$0xff]  ;;  %v5522_v37 = vpack.c.bf16 %v1342_v34, %v1341_v33  ;;  %v1343_v38 = vld [vmem:[#allocation7 + $0x70] sm:$0xff] }
  0x7a   : > { %298 = vst [vmem:[#allocation2 + $0xd0] sm:$0x3] %v9085_v1  ;;  %299 = vst [vmem:[#allocation2 + $0xd8] sm:$0xff] %v9085_v1  ;;  %v1344_v39 = vld [vmem:[#allocation7 + $0x78] sm:$0xff]  ;;  %v340_v40 = vld [vmem:[%s6930_s12 + $0x70] sm:$0xff] }
  0x7b   : > { %300 = vst [vmem:[#allocation2 + $0xe0] sm:$0xff] %v9085_v1  ;;  %301 = vst [vmem:[#allocation2 + $0xe8] sm:$0x3] %v9085_v1  ;;  %5514 = vmatpush1.bf16.msra.mxu0 %v5513_v14  ;;  %v5525_v41 = vpack.c.bf16 %v1344_v39, %v1343_v38  ;;  %v341_v42 = vld [vmem:[%s6930_s12 + $0x78] sm:$0xff]  ;;  %v1345_v43 = vld [vmem:[#allocation7 + $0x80] sm:$0xff] }
  0x7c   : > { %302 = vst [vmem:[#allocation2 + $0xf0] sm:$0xff] %v9085_v1  ;;  %303 = vst [vmem:[#allocation2 + $0xf8] sm:$0xff] %v9085_v1  ;;  %5515 = vmatprep.subr.bf16.mxu0 %v9083_v0  ;;  %v1346_v44 = vld [vmem:[#allocation7 + $0x88] sm:$0xff]  ;;  %v342_v45 = vld [vmem:[%s6930_s12 + $0x80] sm:$0xff] }
  0x7d   : > { %304 = vst [vmem:[#allocation2 + $0x100] sm:$0x3] %v9085_v1  ;;  %305 = vst [vmem:[#allocation2 + $0x108] sm:$0xff] %v9085_v1  ;;  %v343_v46 = vld [vmem:[%s6930_s12 + $0x88] sm:$0xff]  ;;  %v344_v47 = vld [vmem:[%s6930_s12 + $0x90] sm:$0xff]  ;;  %v5528_v48 = vpack.c.bf16 %v1346_v44, %v1345_v43 }
  0x7e   : > { %306 = vst [vmem:[#allocation2 + $0x110] sm:$0xff] %v9085_v1  ;;  %307 = vst [vmem:[#allocation2 + $0x118] sm:$0x3] %v9085_v1  ;;  %v1347_v49 = vld [vmem:[#allocation7 + $0x90] sm:$0xff]  ;;  %v345_v50 = vld [vmem:[%s6930_s12 + $0x98] sm:$0xff] }
  0x7f   : > { %308 = vst [vmem:[#allocation2 + $0x120] sm:$0xff] %v9085_v1  ;;  %309 = vst [vmem:[#allocation2 + $0x128] sm:$0xff] %v9085_v1  ;;  %5517 = vmatpush1.bf16.msra.mxu0 %v5516_v23  ;;  %v1348_v51 = vld [vmem:[#allocation7 + $0x98] sm:$0xff]  ;;  %v346_v52 = vld [vmem:[%s6930_s12 + $0xa0] sm:$0xff] }
  0x80   : > { %310 = vst [vmem:[#allocation2 + $0x130] sm:$0x3] %v9085_v1  ;;  %311 = vst [vmem:[#allocation2 + $0x138] sm:$0xff] %v9085_v1  ;;  %5518 = vmatprep.subr.bf16.mxu0 %v9083_v0  ;;  %v347_v53 = vld [vmem:[%s6930_s12 + $0xa8] sm:$0xff]  ;;  %v348_v54 = vld [vmem:[%s6930_s12 + $0xb0] sm:$0xff]  ;;  %v5531_v56 = vpack.c.bf16 %v1348_v51, %v1347_v49 }
  0x81   : > { %312 = vst [vmem:[#allocation2 + $0x140] sm:$0xff] %v9085_v1  ;;  %313 = vst [vmem:[#allocation2 + $0x148] sm:$0x3] %v9085_v1  ;;  %v349_v55 = vld [vmem:[%s6930_s12 + $0xb8] sm:$0xff]  ;;  %v350_v57 = vld [vmem:[%s6930_s12 + $0xc0] sm:$0xff] }
  0x82   : > { %314 = vst [vmem:[#allocation2 + $0x150] sm:$0xff] %v9085_v1  ;;  %315 = vst [vmem:[#allocation2 + $0x158] sm:$0xff] %v9085_v1  ;;  %v1349_v58 = vld [vmem:[#allocation7 + $0xa0] sm:$0xff]  ;;  %v1350_v59 = vld [vmem:[#allocation7 + $0xa8] sm:$0xff] }
  0x83   : > { %316 = vst [vmem:[#allocation2 + $0x160] sm:$0x3] %v9085_v1  ;;  %317 = vst [vmem:[#allocation2 + $0x168] sm:$0xff] %v9085_v1  ;;  %5520 = vmatpush1.bf16.msra.mxu0 %v5519_v32  ;;  %v351_v60 = vld [vmem:[%s6930_s12 + $0xc8] sm:$0xff]  ;;  %v352_v61 = vld [vmem:[%s6930_s12 + $0xd0] sm:$0xff]  ;;  %v5534_v63 = vpack.c.bf16 %v1350_v59, %v1349_v58 }
  0x84   : > { %318 = vst [vmem:[#allocation2 + $0x170] sm:$0xff] %v9085_v1  ;;  %319 = vst [vmem:[#allocation2 + $0x178] sm:$0x3] %v9085_v1  ;;  %5521 = vmatprep.subr.bf16.mxu0 %v9083_v0  ;;  %v353_v62 = vld [vmem:[%s6930_s12 + $0xd8] sm:$0xff]  ;;  %v1351_v3 = vld [vmem:[#allocation7 + $0xb0] sm:$0xff] }
  0x85   : > { %320 = vst [vmem:[#allocation2 + $0x180] sm:$0xff] %v9085_v1  ;;  %321 = vst [vmem:[#allocation2 + $0x188] sm:$0xff] %v9085_v1  ;;  %v1352_v4 = vld [vmem:[#allocation7 + $0xb8] sm:$0xff]  ;;  %v1353_v6 = vld [vmem:[#allocation7 + $0xc0] sm:$0xff] }
  0x86   : > { %322 = vst [vmem:[#allocation2 + $0x190] sm:$0x3] %v9085_v1  ;;  %325 = vst [vmem:[#allocation2 + $0x1a8] sm:$0x3] %v9085_v1  ;;  %v5537_v5 = vpack.c.bf16 %v1352_v4, %v1351_v3  ;;  %v1354_v7 = vld [vmem:[#allocation7 + $0xc8] sm:$0xff]  ;;  %v354_v8 = vld [vmem:[%s6930_s12 + $0xe0] sm:$0xff] }
  0x87   : > { %359 = vst [vmem:[#allocation2 + $0x19] sm:$0xff] %v326_v15  ;;  %360 = vst [vmem:[#allocation2 + $0x21] sm:$0xff] %v327_v18  ;;  %5523 = vmatpush1.bf16.msra.mxu0 %v5522_v37  ;;  %v355_v9 = vld [vmem:[%s6930_s12 + $0xe8] sm:$0xff]  ;;  %v5540_v10 = vpack.c.bf16 %v1354_v7, %v1353_v6  ;;  %v1355_v11 = vld [vmem:[#allocation7 + $0xd0] sm:$0xff] }
  0x88   : > { %361 = vst [vmem:[#allocation2 + $0x31] sm:$0xff] %v328_v19  ;;  %362 = vst [vmem:[#allocation2 + $0x39] sm:$0xff] %v329_v20  ;;  %5524 = vmatprep.subr.bf16.mxu0 %v9083_v0  ;;  %v1356_v12 = vld [vmem:[#allocation7 + $0xd8] sm:$0xff]  ;;  %v1357_v14 = vld [vmem:[#allocation7 + $0xe0] sm:$0xff] }
  0x89   : > { %363 = vst [vmem:[#allocation2 + $0x49] sm:$0xff] %v330_v21  ;;  %364 = vst [vmem:[#allocation2 + $0x51] sm:$0xff] %v331_v22  ;;  %v5543_v13 = vpack.c.bf16 %v1356_v12, %v1355_v11  ;;  %v1358_v15 = vld [vmem:[#allocation7 + $0xe8] sm:$0xff]  ;;  %v1359_v17 = vld [vmem:[#allocation7 + $0xf0] sm:$0xff] }
  0x8a   : > { %365 = vst [vmem:[#allocation2 + $0x61] sm:$0xff] %v332_v24  ;;  %366 = vst [vmem:[#allocation2 + $0x69] sm:$0xff] %v333_v27  ;;  %v5546_v16 = vpack.c.bf16 %v1358_v15, %v1357_v14  ;;  %v1360_v18 = vld [vmem:[#allocation7 + $0xf8] sm:$0xff]  ;;  %v7040_v19 = vld [vmem:[#allocation2 + $0x10] sm:$0x3] }
  0x8b   : > { %367 = vst [vmem:[#allocation2 + $0x79] sm:$0xff] %v334_v28  ;;  %368 = vst [vmem:[#allocation2 + $0x81] sm:$0xff] %v335_v29  ;;  %5526 = vmatpush1.bf16.msra.mxu0 %v5525_v41  ;;  %v5549_v20 = vpack.c.bf16 %v1360_v18, %v1359_v17  ;;  %v1361_v21 = vld [vmem:[#allocation7 + $0x100] sm:$0xff]  ;;  %v1362_v22 = vld [vmem:[#allocation7 + $0x108] sm:$0xff]  ;;  %v529_v23 = vrot.slane %v7040_v19, 1 }
  0x8c   : > { %369 = vst [vmem:[#allocation2 + $0x91] sm:$0xff] %v336_v30  ;;  %370 = vst [vmem:[#allocation2 + $0x99] sm:$0xff] %v337_v31  ;;  %5527 = vmatprep.subr.bf16.mxu0 %v9083_v0  ;;  %v5552_v26 = vpack.c.bf16 %v1362_v22, %v1361_v21  ;;  %v1363_v30 = vld [vmem:[#allocation7 + $0x110] sm:$0xff]  ;;  %v1364_v31 = vld [vmem:[#allocation7 + $0x118] sm:$0xff] }
  0x8d   : > { %371 = vst [vmem:[#allocation2 + $0xa9] sm:$0xff] %v338_v35  ;;  %372 = vst [vmem:[#allocation2 + $0xb1] sm:$0xff] %v339_v36  ;;  %v530_v27 = vsel %vm525_vm0, %v6943_v2, %v529_v23  ;;  %v5555_v33 = vpack.c.bf16 %v1364_v31, %v1363_v30  ;;  %v1365_v35 = vld [vmem:[#allocation7 + $0x120] sm:$0xff]  ;;  %v1366_v36 = vld [vmem:[#allocation7 + $0x128] sm:$0xff] }
  0x8e   : > { %373 = vst [vmem:[#allocation2 + $0xc1] sm:$0xff] %v340_v40  ;;  %374 = vst [vmem:[#allocation2 + $0xc9] sm:$0xff] %v341_v42  ;;  %v7044_v24 = vld [vmem:[#allocation2 + $0x18] sm:$0xff]  ;;  %v7046_v25 = vld [vmem:[#allocation2 + $0x20] sm:$0xff]  ;;  %v5558_v39 = vpack.c.bf16 %v1366_v36, %v1365_v35 }
  0x8f   : > { %375 = vst [vmem:[#allocation2 + $0xd9] sm:$0xff] %v342_v45  ;;  %376 = vst [vmem:[#allocation2 + $0xe1] sm:$0xff] %v343_v46  ;;  %5529 = vmatpush1.bf16.msra.mxu0 %v5528_v48  ;;  %v531_v28 = vrot.slane %v7044_v24, 1  ;;  %v532_v29 = vrot.slane %v7046_v25, 1  ;;  %v7053_v32 = vld [vmem:[#allocation2 + $0x28] sm:$0x3] }
  0x90   : > { %377 = vst [vmem:[#allocation2 + $0xf1] sm:$0xff] %v344_v47  ;;  %378 = vst [vmem:[#allocation2 + $0xf9] sm:$0xff] %v345_v50  ;;  %5530 = vmatprep.subr.bf16.mxu0 %v9083_v0  ;;  %v534_v2 = vrot.slane %v7053_v32, 1  ;;  %v7061_v37 = vld [vmem:[#allocation2 + $0x30] sm:$0xff]  ;;  %v7063_v38 = vld [vmem:[#allocation2 + $0x38] sm:$0xff] }
  0x91   : > { %379 = vst [vmem:[#allocation2 + $0x109] sm:$0xff] %v346_v52  ;;  %380 = vst [vmem:[#allocation2 + $0x111] sm:$0xff] %v347_v53  ;;  %v7057_v34 = vsel %vm525_vm0, %v531_v28, %v532_v29  ;;  %v536_v41 = vrot.slane %v7061_v37, 1  ;;  %v537_v42 = vrot.slane %v7063_v38, 1  ;;  %v1367_v43 = vld [vmem:[#allocation7 + $0x130] sm:$0xff]  ;;  %v1368_v44 = vld [vmem:[#allocation7 + $0x138] sm:$0xff] }
  0x92   : > { %381 = vst [vmem:[#allocation2 + $0x121] sm:$0xff] %v348_v54  ;;  %382 = vst [vmem:[#allocation2 + $0x129] sm:$0xff] %v349_v55  ;;  %v7068_v40 = vsel %vm525_vm0, %v532_v29, %v534_v2  ;;  %v7073_v45 = vld [vmem:[#allocation2 + $0x40] sm:$0x3]  ;;  %v5561_v46 = vpack.c.bf16 %v1368_v44, %v1367_v43  ;;  %v1369_v49 = vld [vmem:[#allocation7 + $0x140] sm:$0xff]  ;;  %v681_v54 = vrot.slane %v7061_v37, 2 }
  0x93   : > { %383 = vst [vmem:[#allocation2 + $0x139] sm:$0xff] %v350_v57  ;;  %384 = vst [vmem:[#allocation2 + $0x141] sm:$0xff] %v351_v60  ;;  %5532 = vmatpush1.bf16.msra.mxu0 %v5531_v56  ;;  %v7078_v47 = vsel %vm525_vm0, %v536_v41, %v537_v42  ;;  %v539_v48 = vrot.slane %v7073_v45, 1  ;;  %v1370_v50 = vld [vmem:[#allocation7 + $0x148] sm:$0xff]  ;;  %v7082_v51 = vld [vmem:[#allocation2 + $0x48] sm:$0xff]  ;;  %v9082_v55 = vrot.slane %v7063_v38, 2 }
  0x94   : > { %385 = vst [vmem:[#allocation2 + $0x151] sm:$0xff] %v352_v61  ;;  %386 = vst [vmem:[#allocation2 + $0x159] sm:$0xff] %v353_v62  ;;  %5533 = vmatprep.subr.bf16.mxu0 %v9083_v0  ;;  %v7084_v52 = vld [vmem:[#allocation2 + $0x50] sm:$0xff]  ;;  %v5564_v53 = vpack.c.bf16 %v1370_v50, %v1369_v49  ;;  %v541_v57 = vrot.slane %v7082_v51, 1  ;;  %v1371_v59 = vld [vmem:[#allocation7 + $0x150] sm:$0xff] }
  0x95   : > { %387 = vst [vmem:[#allocation2 + $0x169] sm:$0xff] %v354_v8  ;;  %388 = vst [vmem:[#allocation2 + $0x171] sm:$0xff] %v355_v9  ;;  %v7091_v56 = vsel %vm525_vm0, %v537_v42, %v539_v48  ;;  %v542_v58 = vrot.slane %v7084_v52, 1  ;;  %v1372_v60 = vld [vmem:[#allocation7 + $0x158] sm:$0xff]  ;;  %v7096_v61 = vld [vmem:[#allocation2 + $0x58] sm:$0x3]  ;;  %v7101_v62 = vsel %vm670_vm1, %v681_v54, %v9082_v55 }
  0x96   : > { %9239 = vst [vmem:[#allocation14_spill] sm:$0xff] %v7091_v56  ;;  %5375 = vmatprep.mubr.f32.mxu1 %v7101_v62  ;;  %v544_v4 = vrot.slane %v7096_v61, 1  ;;  %v1374_v6 = vld [vmem:[#allocation7 + $0x168] sm:$0xff]  ;;  %v7111_v7 = vld [vmem:[#allocation2 + $0x60] sm:$0xff]  ;;  %v7113_v8 = vld [vmem:[#allocation2 + $0x68] sm:$0xff] }
  0x97   : > { %5535 = vmatpush1.bf16.msra.mxu0 %v5534_v63  ;;  %v5567_v63 = vpack.c.bf16 %v1372_v60, %v1371_v59  ;;  %v7107_v3 = vsel %vm525_vm0, %v541_v57, %v542_v58  ;;  %v546_v11 = vrot.slane %v7111_v7, 1  ;;  %v547_v12 = vrot.slane %v7113_v8, 1  ;;  %v1376_v14 = vld [vmem:[#allocation7 + $0x178] sm:$0xff]  ;;  %v7123_v15 = vld [vmem:[#allocation2 + $0x70] sm:$0x3]  ;;  %v1378_v21 = vld [vmem:[#allocation7 + $0x188] sm:$0xff] }
  0x98   : > { %5536 = vmatprep.subr.bf16.mxu0 %v9083_v0  ;;  %9240 = vst [vmem:[#allocation15_spill] sm:$0xff] %v7107_v3  ;;  %v549_v18 = vrot.slane %v7123_v15, 1  ;;  %v7132_v22 = vld [vmem:[#allocation2 + $0x78] sm:$0xff]  ;;  %v7134_v23 = vld [vmem:[#allocation2 + $0x80] sm:$0xff]  ;;  %v1380_v31 = vld [vmem:[#allocation7 + $0x198] sm:$0xff] }
  0x99   : > { %v7128_v17 = vsel %vm525_vm0, %v546_v11, %v547_v12  ;;  %v551_v28 = vrot.slane %v7132_v22, 1  ;;  %v552_v29 = vrot.slane %v7134_v23, 1  ;;  %v1379_v30 = vld [vmem:[#allocation7 + $0x190] sm:$0xff]  ;;  %v1382_v41 = vld [vmem:[#allocation7 + $0x1a8] sm:$0xff]  ;;  %v7153_v42 = vld [vmem:[#allocation2 + $0x90] sm:$0xff] }
  0x9a   : > { %9242 = vst [vmem:[#allocation17_spill] sm:$0xff] %v7128_v17  ;;  %v5579_v2 = vpack.c.bf16 %v1380_v31, %v1379_v30  ;;  %v7155_v43 = vld [vmem:[#allocation2 + $0x98] sm:$0xff]  ;;  %v556_v48 = vrot.slane %v7153_v42, 1  ;;  %v1383_v50 = vld [vmem:[#allocation7 + $0x1b0] sm:$0xff]  ;;  %v1385_v60 = vld [vmem:[#allocation7 + $0x1c0] sm:$0xff] }
  0x9b   : > { %5538 = vmatpush1.bf16.msra.mxu0 %v5537_v5  ;;  %v1373_v5 = vld [vmem:[#allocation7 + $0x160] sm:$0xff]  ;;  %v7149_v35 = vsel %vm525_vm0, %v551_v28, %v552_v29  ;;  %v557_v49 = vrot.slane %v7155_v43, 1  ;;  %v7165_v54 = vld [vmem:[#allocation2 + $0xa0] sm:$0x3]  ;;  %v1390_v28 = vld [vmem:[#allocation7 + $0x1e8] sm:$0xff] }
  0x9c   : > { %5539 = vmatprep.subr.bf16.mxu0 %v9083_v0  ;;  %v5570_v9 = vpack.c.bf16 %v1374_v6, %v1373_v5  ;;  %9244 = vst [vmem:[#allocation19_spill] sm:$0xff] %v7149_v35  ;;  %v559_v59 = vrot.slane %v7165_v54, 1  ;;  %v7176_v5 = vld [vmem:[#allocation2 + $0xb0] sm:$0xff]  ;;  %v7197_v30 = vld [vmem:[#allocation2 + $0xc8] sm:$0xff]  ;;  %v7274_v55 = vld [vmem:[#allocation2 + $0x120] sm:$0xff] }
  0x9f   : > { %5541 = vmatpush1.bf16.msra.mxu0 %v5540_v10  ;;  %v7118_v10 = vsel %vm525_vm0, %v542_v58, %v544_v4  ;;  %v7170_v58 = vsel %vm525_vm0, %v556_v48, %v557_v49  ;;  %v7174_v4 = vld [vmem:[#allocation2 + $0xa8] sm:$0xff]  ;;  %v7207_v48 = vld [vmem:[#allocation2 + $0xd0] sm:$0x3] }
  0xa0   : > { %5542 = vmatprep.subr.bf16.mxu0 %v9083_v0  ;;  %9241 = vst [vmem:[#allocation16_spill] sm:$0xff] %v7118_v10  ;;  %9246 = vst [vmem:[#allocation21_spill] sm:$0xff] %v7170_v58  ;;  %v561_v11 = vrot.slane %v7174_v4, 1 }
  0xa3   : > { %5544 = vmatpush1.bf16.msra.mxu0 %v5543_v13  ;;  %v1375_v13 = vld [vmem:[#allocation7 + $0x170] sm:$0xff] }
  0xa4   : > { %5545 = vmatprep.subr.bf16.mxu0 %v9083_v0 }
  0xa7   : > { %5547 = vmatpush1.bf16.msra.mxu0 %v5546_v16  ;;  %v5573_v16 = vpack.c.bf16 %v1376_v14, %v1375_v13  ;;  %v1387_v13 = vld [vmem:[#allocation7 + $0x1d0] sm:$0xff]  ;;  %v1388_v14 = vld [vmem:[#allocation7 + $0x1d8] sm:$0xff] }
  0xa8   : > { %5548 = vmatprep.subr.bf16.mxu0 %v9083_v0 }
  0xab   : > { %5550 = vmatpush1.bf16.msra.mxu0 %v5549_v20  ;;  %v1377_v20 = vld [vmem:[#allocation7 + $0x180] sm:$0xff] }
  0xac   : > { %5551 = vmatprep.subr.bf16.mxu0 %v9083_v0 }
  0xae   : > { %1545 = vmatmul.mubr.f32.vlgmr.msra.gmra.mrb[0].mxu0 %v9085_v1 }
  0xaf   : > { %5553 = vmatpush1.bf16.msra.mxu0 %v5552_v26  ;;  %1549 = vmatprep.mubr.f32.mxu0 %v530_v27  ;;  %v5576_v26 = vpack.c.bf16 %v1378_v21, %v1377_v20  ;;  %v7139_v27 = vsel %vm525_vm0, %v547_v12, %v549_v18  ;;  %v562_v12 = vrot.slane %v7176_v5, 1  ;;  %v5591_v18 = vpack.c.bf16 %v1388_v14, %v1387_v13  ;;  %v7236_v14 = vld [vmem:[#allocation2 + $0xf0] sm:$0xff] }
  0xb0   : > { %5554 = vmatprep.subr.bf16.mxu0 %v9083_v0  ;;  %9243 = vst [vmem:[#allocation18_spill] sm:$0xff] %v7139_v27 }
  0xb1   : > { %v7191_v20 = vsel %vm525_vm0, %v561_v11, %v562_v12  ;;  %v7228_v11 = vld [vmem:[#allocation2 + $0xe8] sm:$0x3] }
  0xb2   : > { %1550 = vmatmul.mubr.f32.gmra.mrb[2].mxu0 %v9085_v1  ;;  %9248 = vst [vmem:[#allocation23_spill] sm:$0xff] %v7191_v20  ;;  %v574_v13 = vrot.slane %v7228_v11, 1 }
  0xb3   : > { %1554 = vmatprep.mubr.f32.mxu0 %v7057_v34  ;;  %5556 = vmatpush1.bf16.msra.mxu0 %v5555_v33  ;;  %v7144_v33 = vld [vmem:[#allocation2 + $0x88] sm:$0x3] }
  0xb4   : > { %5557 = vmatprep.subr.bf16.mxu0 %v9083_v0  ;;  %v554_v36 = vrot.slane %v7144_v33, 1 }
  0xb6   : > { %1555 = vmatmul.mubr.f32.gmra.mrb[4].mxu0 %v7044_v24 }
  0xb7   : > { %1559 = vmatprep.mubr.f32.mxu0 %v7068_v40  ;;  %5559 = vmatpush1.bf16.msra.mxu0 %v5558_v39  ;;  %v1381_v39 = vld [vmem:[#allocation7 + $0x1a0] sm:$0xff] }
  0xb8   : > { %5560 = vmatprep.subr.bf16.mxu0 %v9083_v0  ;;  %v5582_v44 = vpack.c.bf16 %v1382_v41, %v1381_v39  ;;  %v567_v39 = vrot.slane %v7197_v30, 1  ;;  %v1391_v41 = vld [vmem:[#allocation7 + $0x1f0] sm:$0xff] }
  0xba   : > { %1560 = vmatmul.mubr.f32.gmra.mrb[6].mxu0 %v7046_v25 }
  0xbb   : > { %1564 = vmatprep.mubr.f32.mxu0 %v7078_v47  ;;  %5562 = vmatpush1.bf16.msra.mxu0 %v5561_v46  ;;  %v7160_v46 = vsel %vm525_vm0, %v552_v29, %v554_v36  ;;  %v7195_v29 = vld [vmem:[#allocation2 + $0xc0] sm:$0xff] }
  0xbc   : > { %5563 = vmatprep.subr.bf16.mxu0 %v9083_v0  ;;  %9245 = vst [vmem:[#allocation20_spill] sm:$0xff] %v7160_v46  ;;  %v566_v36 = vrot.slane %v7195_v29, 1 }
  0xbe   : > { %1565 = vmatmul.mubr.f32.gmra.mrb[8].mxu0 %v7061_v37 }
  0xbf   : > { %1569 = vmatprep.mubr.f32.mxu0 %v7091_v56  ;;  %5565 = vmatpush1.bf16.msra.mxu0 %v5564_v53  ;;  %v1384_v53 = vld [vmem:[#allocation7 + $0x1b8] sm:$0xff]  ;;  %v1398_v56 = vld [vmem:[#allocation7 + $0x228] sm:$0xff] }
  0xc0   : > { %5566 = vmatprep.subr.bf16.mxu0 %v9083_v0  ;;  %v5585_v57 = vpack.c.bf16 %v1384_v53, %v1383_v50  ;;  %v7212_v50 = vsel %vm525_vm0, %v566_v36, %v567_v39  ;;  %v569_v53 = vrot.slane %v7207_v48, 1 }
  0xc1   : > { %9250 = vst [vmem:[#allocation25_spill] sm:$0xff] %v7212_v50 }
  0xc2   : > { %1570 = vmatmul.mubr.f32.gmra.mrb[10].mxu0 %v7063_v38 }
  0xc3   : > { %1574 = vmatprep.mubr.f32.mxu0 %v7107_v3  ;;  %5568 = vmatpush1.bf16.msra.mxu0 %v5567_v63  ;;  %v1386_v63 = vld [vmem:[#allocation7 + $0x1c8] sm:$0xff]  ;;  %v1397_v3 = vld [vmem:[#allocation7 + $0x220] sm:$0xff] }
  0xc4   : > { %5569 = vmatprep.subr.bf16.mxu0 %v9083_v0  ;;  %v5588_v6 = vpack.c.bf16 %v1386_v63, %v1385_v60  ;;  %v7223_v60 = vsel %vm525_vm0, %v567_v39, %v569_v53 }
  0xc5   : > { %9251 = vst [vmem:[#allocation26_spill] sm:$0xff] %v7223_v60 }
  0xc6   : > { %1575 = vmatmul.mubr.f32.gmra.mrb[12].mxu0 %v7082_v51 }
  0xc7   : > { %1579 = vmatprep.mubr.f32.mxu0 %v7118_v10  ;;  %5571 = vmatpush1.bf16.msra.mxu0 %v5570_v9  ;;  %v7181_v9 = vsel %vm525_vm0, %v557_v49, %v559_v59  ;;  %v7218_v59 = vld [vmem:[#allocation2 + $0xe0] sm:$0xff]  ;;  %v9267_v10 = vmov 0.0|0.0  }
  0xc8   : > { %5572 = vmatprep.subr.bf16.mxu0 %v9083_v0  ;;  %9247 = vst [vmem:[#allocation22_spill] sm:$0xff] %v7181_v9 }
  0xca   : > { %1580 = vmatmul.mubr.f32.gmra.mrb[14].mxu0 %v7084_v52 }
  0xcb   : > { %1584 = vmatprep.mubr.f32.mxu0 %v7128_v17  ;;  %5574 = vmatpush1.bf16.msra.mxu0 %v5573_v16  ;;  %v7186_v16 = vld [vmem:[#allocation2 + $0xb8] sm:$0x3]  ;;  %v1395_v17 = vld [vmem:[#allocation7 + $0x210] sm:$0xff] }
  0xcc   : > { %5575 = vmatprep.subr.bf16.mxu0 %v9083_v0  ;;  %v564_v21 = vrot.slane %v7186_v16, 1 }
  0xce   : > { %1585 = vmatmul.mubr.f32.gmra.mrb[16].mxu0 %v7111_v7 }
  0xcf   : > { %1589 = vmatprep.mubr.f32.mxu0 %v7139_v27  ;;  %5577 = vmatpush1.bf16.msra.mxu0 %v5576_v26  ;;  %v1389_v26 = vld [vmem:[#allocation7 + $0x1e0] sm:$0xff]  ;;  %v674_v27 = vrot.slane %v7040_v19, 2 }
  0xd0   : > { %5578 = vmatprep.subr.bf16.mxu0 %v9083_v0  ;;  %v5594_v31 = vpack.c.bf16 %v1390_v28, %v1389_v26  ;;  %v576_v26 = vrot.slane %v7236_v14, 1 }
  0xd2   : > { %1590 = vmatmul.mubr.f32.gmra.mrb[18].mxu0 %v7113_v8 }
  0xd3   : > { %1594 = vmatprep.mubr.f32.mxu0 %v7149_v35  ;;  %5580 = vmatpush1.bf16.msra.mxu0 %v5579_v2  ;;  %v7202_v2 = vsel %vm525_vm0, %v562_v12, %v564_v21  ;;  %v357_v35 = vld [vmem:[%s6930_s12 + $0xf8] sm:$0xff] }
  0xd4   : > { %5581 = vmatprep.subr.bf16.mxu0 %v9083_v0  ;;  %9249 = vst [vmem:[#allocation24_spill] sm:$0xff] %v7202_v2  ;;  %390 = vst [vmem:[#allocation2 + $0x189] sm:$0xff] %v357_v35 }
  0xd6   : > { %1595 = vmatmul.mubr.f32.gmra.mrb[20].mxu0 %v7132_v22 }
  0xd7   : > { %1599 = vmatprep.mubr.f32.mxu0 %v7160_v46  ;;  %5583 = vmatpush1.bf16.msra.mxu0 %v5582_v44  ;;  %v1392_v44 = vld [vmem:[#allocation7 + $0x1f8] sm:$0xff] }
  0xd8   : > { %5584 = vmatprep.subr.bf16.mxu0 %v9083_v0  ;;  %v5597_v49 = vpack.c.bf16 %v1392_v44, %v1391_v41  ;;  %v7255_v41 = vld [vmem:[#allocation2 + $0x108] sm:$0xff]  ;;  %v7257_v44 = vld [vmem:[#allocation2 + $0x110] sm:$0xff] }
  0xd9   : > { %v581_v53 = vrot.slane %v7255_v41, 1 }
  0xda   : > { %1600 = vmatmul.mubr.f32.gmra.mrb[22].mxu0 %v7134_v23 }
  0xdb   : > { %1604 = vmatprep.mubr.f32.mxu0 %v7170_v58  ;;  %5586 = vmatpush1.bf16.msra.mxu0 %v5585_v57  ;;  %v7216_v57 = vld [vmem:[#allocation2 + $0xd8] sm:$0xff] }
  0xdc   : > { %5587 = vmatprep.subr.bf16.mxu0 %v9083_v0  ;;  %v571_v63 = vrot.slane %v7216_v57, 1  ;;  %v7343_v58 = vld [vmem:[#allocation2 + $0x178] sm:$0x3] }
  0xde   : > { %1605 = vmatmul.mubr.f32.gmra.mrb[24].mxu0 %v7153_v42 }
  0xdf   : > { %1609 = vmatprep.mubr.f32.mxu0 %v7181_v9  ;;  %5589 = vmatpush1.bf16.msra.mxu0 %v5588_v6  ;;  %v572_v6 = vrot.slane %v7218_v59, 1 }
  0xe0   : > { %5590 = vmatprep.subr.bf16.mxu0 %v9083_v0 }
  0xe1   : > { %v7233_v12 = vsel %vm525_vm0, %v571_v63, %v572_v6  ;;  %v7243_v21 = vsel %vm525_vm0, %v572_v6, %v574_v13  ;;  %v582_v63 = vrot.slane %v7257_v44, 1  ;;  %v7266_v6 = vld [vmem:[#allocation2 + $0x118] sm:$0x3] }
  0xe2   : > { %1610 = vmatmul.mubr.f32.gmra.mrb[26].mxu0 %v7155_v43  ;;  %9252 = vst [vmem:[#allocation27_spill] sm:$0xff] %v7233_v12  ;;  %9253 = vst [vmem:[#allocation28_spill] sm:$0xff] %v7243_v21 }
  0xe3   : > { %1614 = vmatprep.mubr.f32.mxu0 %v7191_v20  ;;  %5592 = vmatpush1.bf16.msra.mxu0 %v5591_v18  ;;  %v7238_v18 = vld [vmem:[#allocation2 + $0xf8] sm:$0xff]  ;;  %v7271_v13 = vsel %vm525_vm0, %v581_v53, %v582_v63  ;;  %v7331_v20 = vld [vmem:[#allocation2 + $0x168] sm:$0xff] }
  0xe4   : > { %5593 = vmatprep.subr.bf16.mxu0 %v9083_v0  ;;  %v577_v28 = vrot.slane %v7238_v18, 1  ;;  %9256 = vst [vmem:[#allocation31_spill] sm:$0xff] %v7271_v13  ;;  %v601_v9 = vrot.slane %v7331_v20, 1 }
  0xe6   : > { %1615 = vmatmul.mubr.f32.gmra.mrb[28].mxu0 %v7174_v4  ;;  %v7252_v36 = vsel %vm525_vm0, %v576_v26, %v577_v28  ;;  %v584_v26 = vrot.slane %v7266_v6, 1 }
  0xe7   : > { %1619 = vmatprep.mubr.f32.mxu0 %v7202_v2  ;;  %5595 = vmatpush1.bf16.msra.mxu0 %v5594_v31  ;;  %v7247_v31 = vld [vmem:[#allocation2 + $0x100] sm:$0x3]  ;;  %9254 = vst [vmem:[#allocation29_spill] sm:$0xff] %v7252_v36 }
  0xe8   : > { %5596 = vmatprep.subr.bf16.mxu0 %v9083_v0  ;;  %v579_v39 = vrot.slane %v7247_v31, 1 }
  0xea   : > { %1620 = vmatmul.mubr.f32.gmra.mrb[30].mxu0 %v7176_v5 }
  0xeb   : > { %1624 = vmatprep.mubr.f32.mxu0 %v7212_v50  ;;  %5598 = vmatpush1.bf16.msra.mxu0 %v5597_v49  ;;  %v7262_v49 = vsel %vm525_vm0, %v577_v28, %v579_v39  ;;  %v7281_v28 = vsel %vm525_vm0, %v582_v63, %v584_v26  ;;  %v586_v39 = vrot.slane %v7274_v55, 1  ;;  %v7312_v50 = vld [vmem:[#allocation2 + $0x150] sm:$0xff] }
  0xec   : > { %5599 = vmatprep.subr.bf16.mxu0 %v9083_v0  ;;  %9255 = vst [vmem:[#allocation30_spill] sm:$0xff] %v7262_v49  ;;  %v7276_v0 = vld [vmem:[#allocation2 + $0x128] sm:$0xff]  ;;  %9257 = vst [vmem:[#allocation32_spill] sm:$0xff] %v7281_v28 }
  0xed   : > { %v587_v1 = vrot.slane %v7276_v0, 1 }
  0xee   : > { %1625 = vmatmul.mubr.f32.gmra.mrb[32].mxu0 %v7195_v29 }
  0xef   : > { %1629 = vmatprep.mubr.f32.mxu0 %v7223_v60  ;;  %v7290_v53 = vsel %vm525_vm0, %v586_v39, %v587_v1 }
  0xf0   : > { %9258 = vst [vmem:[#allocation33_spill] sm:$0xff] %v7290_v53 }
  0xf2   : > { %1630 = vmatmul.mubr.f32.gmra.mrb[34].mxu0 %v7197_v30 }
  0xf3   : > { %1634 = vmatprep.mubr.f32.mxu0 %v7233_v12  ;;  %v7304_v12 = vld [vmem:[#allocation2 + $0x148] sm:$0x3] }
  0xf4   : > { %v594_v60 = vrot.slane %v7304_v12, 1 }
  0xf6   : > { %1635 = vmatmul.mubr.f32.gmra.mrb[36].mxu0 %v7216_v57 }
  0xf7   : > { %1639 = vmatprep.mubr.f32.mxu0 %v7243_v21  ;;  %v7293_v21 = vld [vmem:[#allocation2 + $0x138] sm:$0xff] }
  0xf8   : > { %v591_v26 = vrot.slane %v7293_v21, 1 }
  0xfa   : > { %1640 = vmatmul.mubr.f32.gmra.mrb[38].mxu0 %v7218_v59 }
  0xfb   : > { %1644 = vmatprep.mubr.f32.mxu0 %v7252_v36 }
  0xfe   : > { %1645 = vmatmul.mubr.f32.gmra.mrb[40].mxu0 %v7236_v14 }
  0xff   : > { %1649 = vmatprep.mubr.f32.mxu0 %v7262_v49  ;;  %v7285_v49 = vld [vmem:[#allocation2 + $0x130] sm:$0x3] }
 0x100   : > { %v589_v36 = vrot.slane %v7285_v49, 1 }
 0x102   : > { %1650 = vmatmul.mubr.f32.gmra.mrb[42].mxu0 %v7238_v18  ;;  %v7300_v63 = vsel %vm525_vm0, %v587_v1, %v589_v36  ;;  %v596_v36 = vrot.slane %v7312_v50, 1 }
 0x103   : > { %1654 = vmatprep.mubr.f32.mxu0 %v7271_v13  ;;  %v7295_v13 = vld [vmem:[#allocation2 + $0x140] sm:$0xff]  ;;  %9259 = vst [vmem:[#allocation34_spill] sm:$0xff] %v7300_v63 }
 0x106   : > { %1655 = vmatmul.mubr.f32.gmra.mrb[44].mxu0 %v7255_v41 }
 0x107   : > { %1659 = vmatprep.mubr.f32.mxu0 %v7281_v28  ;;  %v592_v28 = vrot.slane %v7295_v13, 1 }
 0x109   : > { %v7309_v39 = vsel %vm525_vm0, %v591_v26, %v592_v28  ;;  %v7319_v1 = vsel %vm525_vm0, %v592_v28, %v594_v60  ;;  %v7323_v26 = vld [vmem:[#allocation2 + $0x160] sm:$0x3]  ;;  %v7333_v60 = vld [vmem:[#allocation2 + $0x170] sm:$0xff] }
 0x10a   : > { %1660 = vmatmul.mubr.f32.gmra.mrb[46].mxu0 %v7257_v44  ;;  %9260 = vst [vmem:[#allocation35_spill] sm:$0xff] %v7309_v39  ;;  %9261 = vst [vmem:[#allocation36_spill] sm:$0xff] %v7319_v1 }
 0x10b   : > { %1664 = vmatprep.mubr.f32.mxu0 %v7290_v53  ;;  %v7314_v53 = vld [vmem:[#allocation2 + $0x158] sm:$0xff] }
 0x10e   : > { %1665 = vmatmul.mubr.f32.gmra.mrb[48].mxu0 %v7274_v55 }
 0x10f   : > { %1669 = vmatprep.mubr.f32.mxu0 %v7300_v63  ;;  %v597_v63 = vrot.slane %v7314_v53, 1 }
 0x111   : > { %v7328_v2 = vsel %vm525_vm0, %v596_v36, %v597_v63  ;;  %v356_v36 = vld [vmem:[%s6930_s12 + $0xf0] sm:$0xff] }
 0x112   : > { %1670 = vmatmul.mubr.f32.gmra.mrb[50].mxu0 %v7276_v0  ;;  %9262 = vst [vmem:[#allocation37_spill] sm:$0xff] %v7328_v2  ;;  %389 = vst [vmem:[#allocation2 + $0x181] sm:$0xff] %v356_v36 }
 0x113   : > { %1674 = vmatprep.mubr.f32.mxu0 %v7309_v39  ;;  %v599_v39 = vrot.slane %v7323_v26, 1 }
 0x115   : > { %v7338_v28 = vsel %vm525_vm0, %v597_v63, %v599_v39  ;;  %v9266_v39 = vmov 0.0  }
 0x116   : > { %1675 = vmatmul.mubr.f32.gmra.mrb[52].mxu0 %v7293_v21  ;;  %9263 = vst [vmem:[#allocation38_spill] sm:$0xff] %v7338_v28  ;;  %v671_v36 = vrot.slane %v9266_v39, 2  ;;  %v677_v39 = vrot.slane %v7046_v25, 2 }
 0x117   : > { %1679 = vmatprep.mubr.f32.mxu0 %v7319_v1  ;;  %v602_v1 = vrot.slane %v7333_v60, 1 }
 0x119   : > { %v7348_v46 = vsel %vm525_vm0, %v601_v9, %v602_v1  ;;  %v1394_v9 = vld [vmem:[#allocation7 + $0x208] sm:$0xff] }
 0x11a   : > { %1680 = vmatmul.mubr.f32.gmra.mrb[54].mxu0 %v7295_v13  ;;  %9264 = vst [vmem:[#allocation39_spill] sm:$0xff] %v7348_v46 }
 0x11b   : > { %1684 = vmatprep.mubr.f32.mxu0 %v7328_v2  ;;  %v604_v2 = vrot.slane %v7343_v58, 1 }
 0x11d   : > { %v7355_v63 = vsel %vm525_vm0, %v602_v1, %v604_v2  ;;  %v675_v2 = vsel %vm670_vm1, %v671_v36, %v674_v27  ;;  %v676_v1 = vrot.slane %v7044_v24, 2  ;;  %v1400_v27 = vld [vmem:[#allocation7 + $0x238] sm:$0xff] }
 0x11e   : > { %1685 = vmatmul.mubr.f32.gmra.mrb[56].mxu0 %v7312_v50  ;;  %9265 = vst [vmem:[#allocation40_spill] sm:$0xff] %v7355_v63 }
 0x11f   : > { %1689 = vmatprep.mubr.f32.mxu0 %v7338_v28  ;;  %v1393_v28 = vld [vmem:[#allocation7 + $0x200] sm:$0xff]  ;;  %v7370_v19 = vsel %vm670_vm1, %v676_v1, %v677_v39  ;;  %v687_v1 = vrot.slane %v7084_v52, 2 }
 0x120   : > { %v5600_v35 = vpack.c.bf16 %v1394_v9, %v1393_v28  ;;  %v679_v28 = vrot.slane %v7053_v32, 2  ;;  %v5606_v9 = vpack.c.bf16 %v1398_v56, %v1397_v3  ;;  %v684_v32 = vrot.slane %v7073_v45, 2  ;;  %v1403_v3 = vld [vmem:[#allocation7 + $0x250] sm:$0xff] }
 0x122   : > { %1690 = vmatmul.mubr.f32.gmra.mrb[58].mxu0 %v7314_v53 }
 0x123   : > { %1694 = vmatprep.mubr.f32.mxu0 %v7348_v46  ;;  %v1396_v46 = vld [vmem:[#allocation7 + $0x218] sm:$0xff] }
 0x126   : > { %1695 = vmatmul.mubr.f32.gmra.mrb[60].mxu0 %v7331_v20 }
 0x127   : > { %1699 = vmatprep.mubr.f32.mxu0 %v7355_v63  ;;  %v5603_v63 = vpack.c.bf16 %v1396_v46, %v1395_v17  ;;  %v1401_v17 = vld [vmem:[#allocation7 + $0x240] sm:$0xff]  ;;  %v1402_v46 = vld [vmem:[#allocation7 + $0x248] sm:$0xff] }
 0x128   : > { %v5612_v56 = vpack.c.bf16 %v1402_v46, %v1401_v17  ;;  %v692_v17 = vrot.slane %v7113_v8, 2 }
 0x12a   : > { %1700 = vmatmul.mubr.f32.gmra.mrb[62].mxu0 %v7333_v60 }
 0x12b   : > { %1769 = vmatprep.mubr.f32.mxu0 %v7044_v24  ;;  %v1399_v24 = vld [vmem:[#allocation7 + $0x230] sm:$0xff] }
 0x12e   : > { %1770 = vmatmul.mubr.f32.vlgmr.msra.gmra.mrb[0].mxu0 %v671_v36  ;;  %v9268_v36 = vrot.slane %v7063_v38, 2 }
 0x12f   : > { %5601 = vmatpush1.bf16.msra.mxu0 %v5600_v35  ;;  %1774 = vmatprep.mubr.f32.mxu0 %v7046_v25  ;;  %v7377_v25 = vsel %vm670_vm1, %v677_v39, %v679_v28  ;;  %v1405_v39 = vld [vmem:[#allocation7 + $0x260] sm:$0xff]  ;;  %v1406_v28 = vld [vmem:[#allocation7 + $0x268] sm:$0xff] }
 0x130   : > { %5602 = vmatprep.subr.bf16.mxu0 %v9267_v10  ;;  %v7389_v35 = vsel %vm670_vm1, %v9268_v36, %v684_v32  ;;  %v1410_v32 = vld [vmem:[#allocation7 + $0x288] sm:$0xff] }
 0x132   : > { %1775 = vmatmul.mubr.f32.gmra.mrb[2].mxu0 %v675_v2  ;;  %v686_v2 = vrot.slane %v7082_v51, 2 }
 0x133   : > { %1779 = vmatprep.mubr.f32.mxu0 %v7061_v37  ;;  %5604 = vmatpush1.bf16.msra.mxu0 %v5603_v63  ;;  %v5609_v37 = vpack.c.bf16 %v1400_v27, %v1399_v24  ;;  %v1404_v63 = vld [vmem:[#allocation7 + $0x258] sm:$0xff]  ;;  %v5618_v24 = vpack.c.bf16 %v1406_v28, %v1405_v39  ;;  %v1414_v39 = vld [vmem:[#allocation7 + $0x2a8] sm:$0xff] }
 0x134   : > { %5605 = vmatprep.subr.bf16.mxu0 %v9267_v10  ;;  %v5615_v45 = vpack.c.bf16 %v1404_v63, %v1403_v3  ;;  %v694_v3 = vrot.slane %v7123_v15, 2  ;;  %v1413_v15 = vld [vmem:[#allocation7 + $0x2a0] sm:$0xff] }
 0x136   : > { %1780 = vmatmul.mubr.f32.gmra.mrb[4].mxu0 %v7370_v19  ;;  %v7419_v36 = vsel %vm670_vm1, %v692_v17, %v694_v3 }
 0x137   : > { %1784 = vmatprep.mubr.f32.mxu0 %v7063_v38  ;;  %5607 = vmatpush1.bf16.msra.mxu0 %v5606_v9  ;;  %v7397_v9 = vsel %vm670_vm1, %v686_v2, %v687_v1  ;;  %v689_v38 = vrot.slane %v7096_v61, 2  ;;  %v1409_v61 = vld [vmem:[#allocation7 + $0x280] sm:$0xff]  ;;  %v696_v2 = vrot.slane %v7132_v22, 2 }
 0x138   : > { %5608 = vmatprep.subr.bf16.mxu0 %v9267_v10  ;;  %v5624_v63 = vpack.c.bf16 %v1410_v32, %v1409_v61  ;;  %v704_v32 = vrot.slane %v7165_v54, 2  ;;  %v1421_v54 = vld [vmem:[#allocation7 + $0x2e0] sm:$0xff] }
 0x139   : > { %v7404_v27 = vsel %vm670_vm1, %v687_v1, %v689_v38  ;;  %v697_v1 = vrot.slane %v7134_v23, 2  ;;  %v699_v38 = vrot.slane %v7144_v33, 2  ;;  %v1417_v33 = vld [vmem:[#allocation7 + $0x2c0] sm:$0xff] }
 0x13a   : > { %1785 = vmatmul.mubr.f32.gmra.mrb[6].mxu0 %v7377_v25 }
 0x13b   : > { %1789 = vmatprep.mubr.f32.mxu0 %v7082_v51  ;;  %5610 = vmatpush1.bf16.msra.mxu0 %v5609_v37  ;;  %v1407_v51 = vld [vmem:[#allocation7 + $0x270] sm:$0xff]  ;;  %v691_v37 = vrot.slane %v7111_v7, 2  ;;  %v7427_v28 = vsel %vm670_vm1, %v696_v2, %v697_v1 }
 0x13c   : > { %5611 = vmatprep.subr.bf16.mxu0 %v9267_v10 }
 0x13e   : > { %1790 = vmatmul.mubr.f32.gmra.mrb[8].mxu0 %v7101_v62 }
 0x13f   : > { %1794 = vmatprep.mubr.f32.mxu0 %v7084_v52  ;;  %5613 = vmatpush1.bf16.msra.mxu0 %v5612_v56  ;;  %v1408_v52 = vld [vmem:[#allocation7 + $0x278] sm:$0xff]  ;;  %v7412_v56 = vsel %vm670_vm1, %v691_v37, %v692_v17  ;;  %v702_v37 = vrot.slane %v7155_v43, 2 }
 0x140   : > { %5614 = vmatprep.subr.bf16.mxu0 %v9267_v10  ;;  %v5621_v46 = vpack.c.bf16 %v1408_v52, %v1407_v51  ;;  %v7434_v51 = vsel %vm670_vm1, %v697_v1, %v699_v38  ;;  %v701_v52 = vrot.slane %v7153_v42, 2  ;;  %v1422_v1 = vld [vmem:[#allocation7 + $0x2e8] sm:$0xff] }
 0x142   : > { %1795 = vmatmul.mubr.f32.gmra.mrb[10].mxu0 %v7389_v35  ;;  %v7442_v61 = vsel %vm670_vm1, %v701_v52, %v702_v37  ;;  %v714_v52 = vrot.slane %v7207_v48, 2 }
 0x143   : > { %1799 = vmatprep.mubr.f32.mxu0 %v7111_v7  ;;  %5616 = vmatpush1.bf16.msra.mxu0 %v5615_v45  ;;  %v1411_v7 = vld [vmem:[#allocation7 + $0x290] sm:$0xff] }
 0x144   : > { %5617 = vmatprep.subr.bf16.mxu0 %v9267_v10 }
 0x146   : > { %1800 = vmatmul.mubr.f32.gmra.mrb[12].mxu0 %v7397_v9 }
 0x147   : > { %1804 = vmatprep.mubr.f32.mxu0 %v7113_v8  ;;  %5619 = vmatpush1.bf16.msra.mxu0 %v5618_v24  ;;  %v1412_v8 = vld [vmem:[#allocation7 + $0x298] sm:$0xff]  ;;  %v5630_v24 = vpack.c.bf16 %v1414_v39, %v1413_v15  ;;  %v709_v15 = vrot.slane %v7186_v16, 2  ;;  %v5642_v39 = vpack.c.bf16 %v1422_v1, %v1421_v54  ;;  %v737_v54 = vrot.slane %v7295_v13, 2  ;;  %v1459_v1 = vld [vmem:[#allocation7 + $0x410] sm:$0xff] }
 0x148   : > { %5620 = vmatprep.subr.bf16.mxu0 %v9267_v10  ;;  %v5627_v45 = vpack.c.bf16 %v1412_v8, %v1411_v7  ;;  %v706_v7 = vrot.slane %v7174_v4, 2  ;;  %v707_v8 = vrot.slane %v7176_v5, 2 }
 0x14a   : > { %1805 = vmatmul.mubr.f32.gmra.mrb[14].mxu0 %v7404_v27  ;;  %v7464_v38 = vsel %vm670_vm1, %v707_v8, %v709_v15  ;;  %v1460_v15 = vld [vmem:[#allocation7 + $0x418] sm:$0xff] }
 0x14b   : > { %1809 = vmatprep.mubr.f32.mxu0 %v7132_v22  ;;  %5622 = vmatpush1.bf16.msra.mxu0 %v5621_v46  ;;  %v1415_v22 = vld [vmem:[#allocation7 + $0x2b0] sm:$0xff]  ;;  %v1418_v46 = vld [vmem:[#allocation7 + $0x2c8] sm:$0xff] }
 0x14c   : > { %5623 = vmatprep.subr.bf16.mxu0 %v9267_v10  ;;  %v5636_v3 = vpack.c.bf16 %v1418_v46, %v1417_v33 }
 0x14e   : > { %1810 = vmatmul.mubr.f32.gmra.mrb[16].mxu0 %v7412_v56 }
 0x14f   : > { %1814 = vmatprep.mubr.f32.mxu0 %v7134_v23  ;;  %5625 = vmatpush1.bf16.msra.mxu0 %v5624_v63  ;;  %v1416_v23 = vld [vmem:[#allocation7 + $0x2b8] sm:$0xff]  ;;  %v7449_v63 = vsel %vm670_vm1, %v702_v37, %v704_v32  ;;  %v717_v37 = vrot.slane %v7218_v59, 2 }
 0x150   : > { %5626 = vmatprep.subr.bf16.mxu0 %v9267_v10  ;;  %v5633_v17 = vpack.c.bf16 %v1416_v23, %v1415_v22  ;;  %v712_v22 = vrot.slane %v7197_v30, 2 }
 0x152   : > { %1815 = vmatmul.mubr.f32.gmra.mrb[18].mxu0 %v7419_v36 }
 0x153   : > { %1819 = vmatprep.mubr.f32.mxu0 %v7153_v42  ;;  %5628 = vmatpush1.bf16.msra.mxu0 %v5627_v45  ;;  %v1419_v42 = vld [vmem:[#allocation7 + $0x2d0] sm:$0xff]  ;;  %v7457_v45 = vsel %vm670_vm1, %v706_v7, %v707_v8  ;;  %v1457_v7 = vld [vmem:[#allocation7 + $0x400] sm:$0xff]  ;;  %v1458_v8 = vld [vmem:[#allocation7 + $0x408] sm:$0xff] }
 0x154   : > { %5629 = vmatprep.subr.bf16.mxu0 %v9267_v10 }
 0x156   : > { %1820 = vmatmul.mubr.f32.gmra.mrb[20].mxu0 %v7427_v28 }
 0x157   : > { %1824 = vmatprep.mubr.f32.mxu0 %v7155_v43  ;;  %5631 = vmatpush1.bf16.msra.mxu0 %v5630_v24  ;;  %v1420_v43 = vld [vmem:[#allocation7 + $0x2d8] sm:$0xff]  ;;  %v711_v24 = vrot.slane %v7195_v29, 2 }
 0x158   : > { %5632 = vmatprep.subr.bf16.mxu0 %v9267_v10  ;;  %v5639_v2 = vpack.c.bf16 %v1420_v43, %v1419_v42 }
 0x159   : > { %v7472_v16 = vsel %vm670_vm1, %v711_v24, %v712_v22 }
 0x15a   : > { %1825 = vmatmul.mubr.f32.gmra.mrb[22].mxu0 %v7434_v51 }
 0x15b   : > { %1829 = vmatprep.mubr.f32.mxu0 %v7174_v4  ;;  %5634 = vmatpush1.bf16.msra.mxu0 %v5633_v17  ;;  %v1423_v4 = vld [vmem:[#allocation7 + $0x2f0] sm:$0xff]  ;;  %v719_v17 = vrot.slane %v7228_v11, 2  ;;  %v724_v11 = vrot.slane %v7247_v31, 2  ;;  %v729_v31 = vrot.slane %v7266_v6, 2  ;;  %v734_v6 = vrot.slane %v7285_v49, 2 }
 0x15c   : > { %5635 = vmatprep.subr.bf16.mxu0 %v9267_v10 }
 0x15d   : > { %v7492_v33 = vsel %vm670_vm1, %v717_v37, %v719_v17  ;;  %v744_v17 = vrot.slane %v7323_v26, 2  ;;  %v1467_v26 = vld [vmem:[#allocation7 + $0x450] sm:$0xff] }
 0x15e   : > { %1830 = vmatmul.mubr.f32.gmra.mrb[24].mxu0 %v7442_v61 }
 0x15f   : > { %1834 = vmatprep.mubr.f32.mxu0 %v7176_v5  ;;  %5637 = vmatpush1.bf16.msra.mxu0 %v5636_v3  ;;  %v1424_v5 = vld [vmem:[#allocation7 + $0x2f8] sm:$0xff] }
 0x160   : > { %5638 = vmatprep.subr.bf16.mxu0 %v9267_v10  ;;  %v5645_v23 = vpack.c.bf16 %v1424_v5, %v1423_v4  ;;  %v739_v4 = vrot.slane %v7304_v12, 2  ;;  %v1461_v5 = vld [vmem:[#allocation7 + $0x420] sm:$0xff]  ;;  %v1464_v12 = vld [vmem:[#allocation7 + $0x438] sm:$0xff] }
 0x162   : > { %1835 = vmatmul.mubr.f32.gmra.mrb[26].mxu0 %v7449_v63 }
 0x163   : > { %1839 = vmatprep.mubr.f32.mxu0 %v7195_v29  ;;  %5640 = vmatpush1.bf16.msra.mxu0 %v5639_v2  ;;  %v7479_v29 = vsel %vm670_vm1, %v712_v22, %v714_v52  ;;  %v5695_v2 = vpack.c.bf16 %v1458_v8, %v1457_v7  ;;  %v741_v22 = vrot.slane %v7312_v50, 2  ;;  %v1463_v52 = vld [vmem:[#allocation7 + $0x430] sm:$0xff]  ;;  %v1470_v7 = vld [vmem:[#allocation7 + $0x468] sm:$0xff] }
 0x164   : > { %5641 = vmatprep.subr.bf16.mxu0 %v9267_v10 }
 0x165   : > { %5696 = vmatprep.subr.bf16.mxu1 %v5695_v2 }
 0x166   : > { %1840 = vmatmul.mubr.f32.gmra.mrb[28].mxu0 %v7457_v45  ;;  %5698 = vmatpush3.bf16.msra.mxu1 %v5695_v2 }
 0x167   : > { %1844 = vmatprep.mubr.f32.mxu0 %v7197_v30  ;;  %5643 = vmatpush1.bf16.msra.mxu0 %v5642_v39  ;;  %v716_v30 = vrot.slane %v7216_v57, 2  ;;  %v5699_v39 = vpack.c.bf16 %v1460_v15, %v1459_v1  ;;  %v1471_v1 = vld [vmem:[#allocation7 + $0x470] sm:$0xff] }
 0x168   : > { %5644 = vmatprep.subr.bf16.mxu0 %v9267_v10 }
 0x169   : > { %v7486_v48 = vsel %vm670_vm1, %v716_v30, %v717_v37  ;;  %5700 = vmatprep.subr.bf16.mxu1 %v5699_v39  ;;  %v5707_v30 = vpack.c.bf16 %v1464_v12, %v1463_v52  ;;  %v9269_v52 = vld [vmem:[#allocation14_spill] sm:$0xff] }
 0x16a   : > { %1845 = vmatmul.mubr.f32.gmra.mrb[30].mxu0 %v7464_v38  ;;  %5702 = vmatpush3.bf16.msra.mxu1 %v5699_v39 }
 0x16b   : > { %1849 = vmatprep.mubr.f32.mxu0 %v7216_v57  ;;  %5646 = vmatpush1.bf16.msra.mxu0 %v5645_v23  ;;  %v721_v57 = vrot.slane %v7236_v14, 2  ;;  %v742_v23 = vrot.slane %v7314_v53, 2 }
 0x16c   : > { %5647 = vmatprep.subr.bf16.mxu0 %v9267_v10 }
 0x16d   : > { %v7551_v37 = vsel %vm670_vm1, %v741_v22, %v742_v23  ;;  %v1430_v22 = vld [vmem:[#allocation7 + $0x328] sm:$0xff] }
 0x16e   : > { %1850 = vmatmul.mubr.f32.gmra.mrb[32].mxu0 %v7472_v16 }
 0x16f   : > { %1854 = vmatprep.mubr.f32.mxu0 %v7218_v59  ;;  %v722_v59 = vrot.slane %v7238_v18, 2 }
 0x171   : > { %v7499_v46 = vsel %vm670_vm1, %v721_v57, %v722_v59  ;;  %v7505_v32 = vsel %vm670_vm1, %v722_v59, %v724_v11  ;;  %v1465_v57 = vld [vmem:[#allocation7 + $0x440] sm:$0xff]  ;;  %v746_v11 = vrot.slane %v7331_v20, 2 }
 0x172   : > { %1855 = vmatmul.mubr.f32.gmra.mrb[34].mxu0 %v7479_v29 }
 0x173   : > { %1859 = vmatprep.mubr.f32.mxu0 %v7236_v14  ;;  %v726_v14 = vrot.slane %v7255_v41, 2 }
 0x176   : > { %1860 = vmatmul.mubr.f32.gmra.mrb[36].mxu0 %v7486_v48 }
 0x177   : > { %1864 = vmatprep.mubr.f32.mxu0 %v7238_v18  ;;  %v727_v18 = vrot.slane %v7257_v44, 2 }
 0x179   : > { %v7512_v3 = vsel %vm670_vm1, %v726_v14, %v727_v18  ;;  %v7518_v42 = vsel %vm670_vm1, %v727_v18, %v729_v31  ;;  %v747_v14 = vrot.slane %v7333_v60, 2  ;;  %v7561_v18 = vld [vmem:[#allocation2 + $0x180] sm:$0xff]  ;;  %v1468_v31 = vld [vmem:[#allocation7 + $0x458] sm:$0xff] }
 0x17a   : > { %1865 = vmatmul.mubr.f32.gmra.mrb[38].mxu0 %v7492_v33 }
 0x17b   : > { %1869 = vmatprep.mubr.f32.mxu0 %v7255_v41  ;;  %v731_v41 = vrot.slane %v7274_v55, 2 }
 0x17e   : > { %1870 = vmatmul.mubr.f32.gmra.mrb[40].mxu0 %v7499_v46 }
 0x17f   : > { %1874 = vmatprep.mubr.f32.mxu0 %v7257_v44  ;;  %v732_v44 = vrot.slane %v7276_v0, 2 }
 0x181   : > { %v7525_v43 = vsel %vm670_vm1, %v731_v41, %v732_v44  ;;  %v5715_v41 = vpack.c.bf16 %v1468_v31, %v1467_v26  ;;  %v9272_v26 = vld [vmem:[#allocation17_spill] sm:$0xff] }
 0x182   : > { %1875 = vmatmul.mubr.f32.gmra.mrb[42].mxu0 %v7505_v32 }
 0x183   : > { %1879 = vmatprep.mubr.f32.mxu0 %v7274_v55  ;;  %v7531_v55 = vsel %vm670_vm1, %v732_v44, %v734_v6  ;;  %v7566_v44 = vsel %vm670_vm1, %v746_v11, %v747_v14  ;;  %v749_v6 = vrot.slane %v7343_v58, 2  ;;  %v1472_v58 = vld [vmem:[#allocation7 + $0x478] sm:$0xff] }
 0x184   : > { %v5723_v15 = vpack.c.bf16 %v1472_v58, %v1471_v1  ;;  %v9275_v1 = vld [vmem:[#allocation20_spill] sm:$0xff] }
 0x185   : > { %v7574_v2 = vsel %vm670_vm1, %v747_v14, %v749_v6  ;;  %v1439_v14 = vld [vmem:[#allocation7 + $0x370] sm:$0xff]  ;;  %v9273_v6 = vld [vmem:[#allocation18_spill] sm:$0xff] }
 0x186   : > { %1880 = vmatmul.mubr.f32.gmra.mrb[44].mxu0 %v7512_v3 }
 0x187   : > { %1884 = vmatprep.mubr.f32.mxu0 %v7276_v0  ;;  %v736_v0 = vrot.slane %v7293_v21, 2 }
 0x189   : > { %v7538_v49 = vsel %vm670_vm1, %v736_v0, %v737_v54  ;;  %v1425_v0 = vld [vmem:[#allocation7 + $0x300] sm:$0xff] }
 0x18a   : > { %1885 = vmatmul.mubr.f32.gmra.mrb[46].mxu0 %v7518_v42 }
 0x18b   : > { %1889 = vmatprep.mubr.f32.mxu0 %v7293_v21  ;;  %v1462_v21 = vld [vmem:[#allocation7 + $0x428] sm:$0xff] }
 0x18c   : > { %v5703_v24 = vpack.c.bf16 %v1462_v21, %v1461_v5  ;;  %v1428_v5 = vld [vmem:[#allocation7 + $0x318] sm:$0xff] }
 0x18e   : > { %1890 = vmatmul.mubr.f32.gmra.mrb[48].mxu0 %v7525_v43  ;;  %5704 = vmatprep.subr.bf16.mxu1 %v5703_v24 }
 0x18f   : > { %1894 = vmatprep.mubr.f32.mxu0 %v7295_v13  ;;  %v7544_v13 = vsel %vm670_vm1, %v737_v54, %v739_v4  ;;  %5706 = vmatpush3.bf16.msra.mxu1 %v5703_v24  ;;  %v1426_v54 = vld [vmem:[#allocation7 + $0x308] sm:$0xff]  ;;  %v1427_v4 = vld [vmem:[#allocation7 + $0x310] sm:$0xff]  ;;  %v1429_v24 = vld [vmem:[#allocation7 + $0x320] sm:$0xff] }
 0x190   : > { %5708 = vmatprep.subr.bf16.mxu1 %v5707_v30  ;;  %v5648_v39 = vpack.c.bf16 %v1426_v54, %v1425_v0  ;;  %v5651_v21 = vpack.c.bf16 %v1428_v5, %v1427_v4  ;;  %v1445_v54 = vld [vmem:[#allocation7 + $0x3a0] sm:$0xff] }
 0x191   : > { %v1449_v5 = vld [vmem:[#allocation7 + $0x3c0] sm:$0xff] }
 0x192   : > { %1895 = vmatmul.mubr.f32.gmra.mrb[50].mxu0 %v7531_v55 }
 0x193   : > { %1899 = vmatprep.mubr.f32.mxu0 %v7312_v50  ;;  %5710 = vmatpush3.bf16.msra.mxu1 %v5707_v30  ;;  %v1466_v50 = vld [vmem:[#allocation7 + $0x448] sm:$0xff]  ;;  %v1435_v30 = vld [vmem:[#allocation7 + $0x350] sm:$0xff] }
 0x194   : > { %v5711_v59 = vpack.c.bf16 %v1466_v50, %v1465_v57  ;;  %v1437_v50 = vld [vmem:[#allocation7 + $0x360] sm:$0xff] }
 0x196   : > { %1900 = vmatmul.mubr.f32.gmra.mrb[52].mxu0 %v7538_v49  ;;  %5712 = vmatprep.subr.bf16.mxu1 %v5711_v59 }
 0x197   : > { %1904 = vmatprep.mubr.f32.mxu0 %v7314_v53  ;;  %v7557_v53 = vsel %vm670_vm1, %v742_v23, %v744_v17  ;;  %5714 = vmatpush3.bf16.msra.mxu1 %v5711_v59  ;;  %v1432_v23 = vld [vmem:[#allocation7 + $0x338] sm:$0xff]  ;;  %v9270_v17 = vld [vmem:[#allocation15_spill] sm:$0xff]  ;;  %v9271_v59 = vld [vmem:[#allocation16_spill] sm:$0xff] }
 0x198   : > { %5716 = vmatprep.subr.bf16.mxu1 %v5715_v41 }
 0x19a   : > { %1905 = vmatmul.mubr.f32.gmra.mrb[54].mxu0 %v7544_v13 }
 0x19b   : > { %1909 = vmatprep.mubr.f32.mxu0 %v7331_v20  ;;  %v7569_v20 = vld [vmem:[#allocation2 + $0x188] sm:$0xff]  ;;  %5718 = vmatpush3.bf16.msra.mxu1 %v5715_v41  ;;  %v1441_v41 = vld [vmem:[#allocation7 + $0x380] sm:$0xff] }
 0x19e   : > { %1910 = vmatmul.mubr.f32.gmra.mrb[56].mxu0 %v7551_v37 }
 0x19f   : > { %1914 = vmatprep.mubr.f32.mxu0 %v7333_v60  ;;  %v1469_v60 = vld [vmem:[#allocation7 + $0x460] sm:$0xff] }
 0x1a0   : > { %v5719_v8 = vpack.c.bf16 %v1470_v7, %v1469_v60  ;;  %v1443_v7 = vld [vmem:[#allocation7 + $0x390] sm:$0xff] }
 0x1a2   : > { %1915 = vmatmul.mubr.f32.gmra.mrb[58].mxu0 %v7557_v53  ;;  %5720 = vmatprep.subr.bf16.mxu1 %v5719_v8 }
 0x1a3   : > { %1919 = vmatprep.mubr.f32.mxu0 %v7561_v18  ;;  %5722 = vmatpush3.bf16.msra.mxu1 %v5719_v8  ;;  %v9274_v8 = vld [vmem:[#allocation19_spill] sm:$0xff] }
 0x1a4   : > { %5724 = vmatprep.subr.bf16.mxu1 %v5723_v15 }
 0x1a6   : > { %1920 = vmatmul.mubr.f32.gmra.mrb[60].mxu0 %v7566_v44 }
 0x1a7   : > { %1924 = vmatprep.mubr.f32.mxu0 %v7569_v20  ;;  %5726 = vmatpush3.bf16.msra.mxu1 %v5723_v15  ;;  %v1447_v15 = vld [vmem:[#allocation7 + $0x3b0] sm:$0xff] }
 0x1a8   : > { %5727 = vmatprep.subr.bf16.mxu1 %v9267_v10 }
 0x1aa   : > { %1925 = vmatmul.mubr.f32.gmra.mrb[62].mxu0 %v7574_v2  ;;  %5376 = vmatmul.mubr.f32.vlgmr.msra.gmra.mrb[0].mxu1 %v7389_v35 }
 0x1ab   : > { %1994 = vmatprep.mubr.f32.mxu0 %v7370_v19  ;;  %5378 = vmatprep.mubr.f32.mxu1 %v7397_v9  ;;  %v5654_v19 = vpack.c.bf16 %v1430_v22, %v1429_v24  ;;  %v1451_v22 = vld [vmem:[#allocation7 + $0x3d0] sm:$0xff] }
 0x1ae   : > { %1995 = vmatmul.mubr.f32.vlgmr.msra.gmra.mrb[0].mxu0 %v7057_v34  ;;  %v1431_v34 = vld [vmem:[#allocation7 + $0x330] sm:$0xff]  ;;  %5379 = vmatmul.mubr.f32.gmra.mrb[2].mxu1 %v7404_v27 }
 0x1af   : > { %5649 = vmatpush1.bf16.msra.mxu0 %v5648_v39  ;;  %1999 = vmatprep.mubr.f32.mxu0 %v7377_v25  ;;  %v5657_v25 = vpack.c.bf16 %v1432_v23, %v1431_v34  ;;  %v9276_v39 = vld [vmem:[#allocation21_spill] sm:$0xff]  ;;  %v1453_v23 = vld [vmem:[#allocation7 + $0x3e0] sm:$0xff] }
 0x1b0   : > { %5650 = vmatprep.subr.bf16.mxu0 %v9267_v10  ;;  %5381 = vmatprep.mubr.f32.mxu1 %v7412_v56 }
 0x1b2   : > { %2000 = vmatmul.mubr.f32.gmra.mrb[2].mxu0 %v7068_v40  ;;  %v1433_v40 = vld [vmem:[#allocation7 + $0x340] sm:$0xff]  ;;  %5382 = vmatmul.mubr.f32.gmra.mrb[4].mxu1 %v7419_v36 }
 0x1b3   : > { %2004 = vmatprep.mubr.f32.mxu0 %v7101_v62  ;;  %5652 = vmatpush1.bf16.msra.mxu0 %v5651_v21  ;;  %v1434_v62 = vld [vmem:[#allocation7 + $0x348] sm:$0xff]  ;;  %v9277_v21 = vld [vmem:[#allocation22_spill] sm:$0xff] }
 0x1b4   : > { %5653 = vmatprep.subr.bf16.mxu0 %v9267_v10  ;;  %5384 = vmatprep.mubr.f32.mxu1 %v7427_v28  ;;  %v5660_v12 = vpack.c.bf16 %v1434_v62, %v1433_v40  ;;  %v890_v40 = vrot.slane %v7569_v20, 2  ;;  %v7644_v62 = vld [vmem:[#allocation2 + $0x190] sm:$0x3] }
 0x1b6   : > { %2005 = vmatmul.mubr.f32.gmra.mrb[4].mxu0 %v7078_v47  ;;  %5385 = vmatmul.mubr.f32.gmra.mrb[6].mxu1 %v7434_v51 }
 0x1b7   : > { %2009 = vmatprep.mubr.f32.mxu0 %v7389_v35  ;;  %5655 = vmatpush1.bf16.msra.mxu0 %v5654_v19  ;;  %v1436_v35 = vld [vmem:[#allocation7 + $0x358] sm:$0xff]  ;;  %v9278_v19 = vld [vmem:[#allocation23_spill] sm:$0xff] }
 0x1b8   : > { %5656 = vmatprep.subr.bf16.mxu0 %v9267_v10  ;;  %5387 = vmatprep.mubr.f32.mxu1 %v7442_v61  ;;  %v5663_v57 = vpack.c.bf16 %v1436_v35, %v1435_v30  ;;  %v892_v30 = vrot.slane %v7644_v62, 2 }
 0x1ba   : > { %2010 = vmatmul.mubr.f32.gmra.mrb[6].mxu0 %v9269_v52  ;;  %5388 = vmatmul.mubr.f32.gmra.mrb[8].mxu1 %v7449_v63 }
 0x1bb   : > { %2014 = vmatprep.mubr.f32.mxu0 %v7397_v9  ;;  %5658 = vmatpush1.bf16.msra.mxu0 %v5657_v25  ;;  %v1438_v9 = vld [vmem:[#allocation7 + $0x368] sm:$0xff]  ;;  %v889_v25 = vrot.slane %v7561_v18, 2 }
 0x1bc   : > { %5659 = vmatprep.subr.bf16.mxu0 %v9267_v10  ;;  %5390 = vmatprep.mubr.f32.mxu1 %v7457_v45  ;;  %v5666_v11 = vpack.c.bf16 %v1438_v9, %v1437_v50  ;;  %v1456_v50 = vld [vmem:[#allocation7 + $0x3f8] sm:$0xff] }
 0x1bd   : > { %v891_v35 = vsel %vm670_vm1, %v889_v25, %v890_v40  ;;  %v9280_v9 = vld [vmem:[#allocation25_spill] sm:$0xff]  ;;  %v3733_v25 = vld [vmem:[#allocation9 + $0x400] sm:$0xff] }
 0x1be   : > { %2015 = vmatmul.mubr.f32.gmra.mrb[8].mxu0 %v9270_v17  ;;  %5391 = vmatmul.mubr.f32.gmra.mrb[10].mxu1 %v7464_v38 }
 0x1bf   : > { %2019 = vmatprep.mubr.f32.mxu0 %v7404_v27  ;;  %5661 = vmatpush1.bf16.msra.mxu0 %v5660_v12  ;;  %v1440_v27 = vld [vmem:[#allocation7 + $0x378] sm:$0xff]  ;;  %v9279_v12 = vld [vmem:[#allocation24_spill] sm:$0xff] }
 0x1c0   : > { %5662 = vmatprep.subr.bf16.mxu0 %v9267_v10  ;;  %5393 = vmatprep.mubr.f32.mxu1 %v7472_v16  ;;  %v5669_v31 = vpack.c.bf16 %v1440_v27, %v1439_v14  ;;  %v9281_v14 = vld [vmem:[#allocation26_spill] sm:$0xff]  ;;  %v9282_v27 = vld [vmem:[#allocation27_spill] sm:$0xff] }
 0x1c2   : > { %2020 = vmatmul.mubr.f32.gmra.mrb[10].mxu0 %v9271_v59  ;;  %5394 = vmatmul.mubr.f32.gmra.mrb[12].mxu1 %v7479_v29 }
 0x1c3   : > { %2024 = vmatprep.mubr.f32.mxu0 %v7412_v56  ;;  %5664 = vmatpush1.bf16.msra.mxu0 %v5663_v57  ;;  %v1442_v56 = vld [vmem:[#allocation7 + $0x388] sm:$0xff]  ;;  %v1455_v57 = vld [vmem:[#allocation7 + $0x3f0] sm:$0xff] }
 0x1c4   : > { %5665 = vmatprep.subr.bf16.mxu0 %v9267_v10  ;;  %5396 = vmatprep.mubr.f32.mxu1 %v7486_v48  ;;  %v5672_v60 = vpack.c.bf16 %v1442_v56, %v1441_v41  ;;  %v9285_v41 = vld [vmem:[#allocation30_spill] sm:$0xff]  ;;  %v9286_v56 = vld [vmem:[#allocation31_spill] sm:$0xff] }
 0x1c6   : > { %2025 = vmatmul.mubr.f32.gmra.mrb[12].mxu0 %v9272_v26  ;;  %5397 = vmatmul.mubr.f32.gmra.mrb[14].mxu1 %v7492_v33 }
 0x1c7   : > { %2029 = vmatprep.mubr.f32.mxu0 %v7419_v36  ;;  %5667 = vmatpush1.bf16.msra.mxu0 %v5666_v11  ;;  %v1444_v36 = vld [vmem:[#allocation7 + $0x398] sm:$0xff]  ;;  %v5693_v11 = vpack.c.bf16 %v1456_v50, %v1455_v57  ;;  %v6498_v50 = vld [vmem:[#allocation2 + $0x50] sm:$0xff] }
 0x1c8   : > { %5668 = vmatprep.subr.bf16.mxu0 %v9267_v10  ;;  %5399 = vmatprep.mubr.f32.mxu1 %v7499_v46  ;;  %v5675_v0 = vpack.c.bf16 %v1444_v36, %v1443_v7  ;;  %v7693_v7 = vld [vmem:[#allocation2] sm:$0xff] }
 0x1c9   : > { %v1002_v36 = vrot.slane %v7693_v7, 2 }
 0x1ca   : > { %2030 = vmatmul.mubr.f32.gmra.mrb[14].mxu0 %v9273_v6  ;;  %5400 = vmatmul.mubr.f32.gmra.mrb[16].mxu1 %v7505_v32 }
 0x1cb   : > { %2034 = vmatprep.mubr.f32.mxu0 %v7427_v28  ;;  %5670 = vmatpush1.bf16.msra.mxu0 %v5669_v31  ;;  %v1446_v28 = vld [vmem:[#allocation7 + $0x3a8] sm:$0xff]  ;;  %v9283_v31 = vld [vmem:[#allocation28_spill] sm:$0xff] }
 0x1cc   : > { %5671 = vmatprep.subr.bf16.mxu0 %v9267_v10  ;;  %5402 = vmatprep.mubr.f32.mxu1 %v7512_v3  ;;  %v5678_v58 = vpack.c.bf16 %v1446_v28, %v1445_v54 }
 0x1ce   : > { %2035 = vmatmul.mubr.f32.gmra.mrb[16].mxu0 %v9274_v8  ;;  %5403 = vmatmul.mubr.f32.gmra.mrb[18].mxu1 %v7518_v42 }
 0x1cf   : > { %2039 = vmatprep.mubr.f32.mxu0 %v7434_v51  ;;  %5673 = vmatpush1.bf16.msra.mxu0 %v5672_v60  ;;  %v1448_v51 = vld [vmem:[#allocation7 + $0x3b8] sm:$0xff]  ;;  %v9295_v60 = vld [vmem:[#allocation40_spill] sm:$0xff] }
 0x1d0   : > { %5674 = vmatprep.subr.bf16.mxu0 %v9267_v10  ;;  %5405 = vmatprep.mubr.f32.mxu1 %v7525_v43  ;;  %v5681_v4 = vpack.c.bf16 %v1448_v51, %v1447_v15  ;;  %v3606_v15 = vld [vmem:[#allocation9 + $0x8] sm:$0xff]  ;;  %v3607_v51 = vld [vmem:[#allocation9 + $0x10] sm:$0xff] }
 0x1d2   : > { %2040 = vmatmul.mubr.f32.gmra.mrb[18].mxu0 %v9275_v1  ;;  %5406 = vmatmul.mubr.f32.gmra.mrb[20].mxu1 %v7531_v55 }
 0x1d3   : > { %2044 = vmatprep.mubr.f32.mxu0 %v7442_v61  ;;  %5676 = vmatpush1.bf16.msra.mxu0 %v5675_v0  ;;  %v1450_v61 = vld [vmem:[#allocation7 + $0x3c8] sm:$0xff] }
 0x1d4   : > { %5677 = vmatprep.subr.bf16.mxu0 %v9267_v10  ;;  %5408 = vmatprep.mubr.f32.mxu1 %v7538_v49  ;;  %v5684_v24 = vpack.c.bf16 %v1450_v61, %v1449_v5  ;;  %v3608_v5 = vld [vmem:[#allocation9 + $0x18] sm:$0xff] }
 0x1d5   : > { %v5731_v61 = vpack.c.bf16 %v3608_v5, %v3607_v51  ;;  %v3622_v51 = vld [vmem:[#allocation9 + $0x88] sm:$0xff]  ;;  %v3623_v5 = vld [vmem:[#allocation9 + $0x90] sm:$0xff] }
 0x1d6   : > { %2045 = vmatmul.mubr.f32.gmra.mrb[20].mxu0 %v9276_v39  ;;  %5409 = vmatmul.mubr.f32.gmra.mrb[22].mxu1 %v7544_v13 }
 0x1d7   : > { %2049 = vmatprep.mubr.f32.mxu0 %v7449_v63  ;;  %5679 = vmatpush1.bf16.msra.mxu0 %v5678_v58  ;;  %v1452_v63 = vld [vmem:[#allocation7 + $0x3d8] sm:$0xff]  ;;  %v3605_v58 = vld [vmem:[#allocation9] sm:$0xff] }
 0x1d8   : > { %5680 = vmatprep.subr.bf16.mxu0 %v9267_v10  ;;  %5411 = vmatprep.mubr.f32.mxu1 %v7551_v37  ;;  %v5687_v34 = vpack.c.bf16 %v1452_v63, %v1451_v22  ;;  %v3609_v22 = vld [vmem:[#allocation9 + $0x20] sm:$0xff]  ;;  %v3610_v63 = vld [vmem:[#allocation9 + $0x28] sm:$0xff] }
 0x1da   : > { %2050 = vmatmul.mubr.f32.gmra.mrb[22].mxu0 %v9277_v21  ;;  %5412 = vmatmul.mubr.f32.gmra.mrb[24].mxu1 %v7557_v53 }
 0x1db   : > { %2054 = vmatprep.mubr.f32.mxu0 %v7457_v45  ;;  %5682 = vmatpush1.bf16.msra.mxu0 %v5681_v4  ;;  %v1454_v45 = vld [vmem:[#allocation7 + $0x3e8] sm:$0xff]  ;;  %v5728_v4 = vpack.c.bf16 %v3606_v15, %v3605_v58  ;;  %v3621_v15 = vld [vmem:[#allocation9 + $0x80] sm:$0xff] }
 0x1dc   : > { %5683 = vmatprep.subr.bf16.mxu0 %v9267_v10  ;;  %5414 = vmatprep.mubr.f32.mxu1 %v7566_v44  ;;  %v6501_v58 = vld [vmem:[#allocation2 + $0x78] sm:$0xff] }
 0x1dd   : > { %5729 = vmatpush1.bf16.msra.mxu1 %v5728_v4  ;;  %v6502_v4 = vld [vmem:[#allocation2 + $0x80] sm:$0xff] }
 0x1de   : > { %2055 = vmatmul.mubr.f32.gmra.mrb[24].mxu0 %v9278_v19  ;;  %5415 = vmatmul.mubr.f32.gmra.mrb[26].mxu1 %v7574_v2 }
 0x1df   : > { %2059 = vmatprep.mubr.f32.mxu0 %v7464_v38  ;;  %5685 = vmatpush1.bf16.msra.mxu0 %v5684_v24  ;;  %v5690_v38 = vpack.c.bf16 %v1454_v45, %v1453_v23  ;;  %v6495_v24 = vld [vmem:[#allocation2 + $0x30] sm:$0xff]  ;;  %v3611_v23 = vld [vmem:[#allocation9 + $0x30] sm:$0xff]  ;;  %v6496_v45 = vld [vmem:[#allocation2 + $0x38] sm:$0xff] }
 0x1e0   : > { %5686 = vmatprep.subr.bf16.mxu0 %v9267_v10  ;;  %5417 = vmatprep.mubr.f32.mxu1 %v891_v35 }
 0x1e1   : > { %5730 = vmatprep.subr.bf16.mxu1 %v9267_v10 }
 0x1e2   : > { %2060 = vmatmul.mubr.f32.gmra.mrb[26].mxu0 %v9279_v12  ;;  %5732 = vmatpush1.bf16.msra.mxu1 %v5731_v61  ;;  %v3624_v61 = vld [vmem:[#allocation9 + $0x98] sm:$0xff] }
 0x1e3   : > { %2064 = vmatprep.mubr.f32.mxu0 %v7472_v16  ;;  %5688 = vmatpush1.bf16.msra.mxu0 %v5687_v34  ;;  %v893_v16 = vsel %vm670_vm1, %v890_v40, %v892_v30  ;;  %v5734_v34 = vpack.c.bf16 %v3610_v63, %v3609_v22  ;;  %v3734_v40 = vld [vmem:[#allocation9 + $0x408] sm:$0xff]  ;;  %v6497_v30 = vld [vmem:[#allocation2 + $0x48] sm:$0xff]  ;;  %v3625_v22 = vld [vmem:[#allocation9 + $0xa0] sm:$0xff] }
 0x1e4   : > { %5689 = vmatprep.subr.bf16.mxu0 %v9267_v10  ;;  %5418 = vmatmul.mubr.f32.gmra.mrb[28].mxu1 %v893_v16  ;;  %v3626_v63 = vld [vmem:[#allocation9 + $0xa8] sm:$0xff] }
 0x1e5   : > { %5420 = vmatprep.mubr.f32.mxu1 %v1002_v36  ;;  %5733 = vmatprep.subr.bf16.mxu1 %v9267_v10 }
 0x1e6   : > { %2065 = vmatmul.mubr.f32.gmra.mrb[28].mxu0 %v9280_v9  ;;  %5735 = vmatpush1.bf16.msra.mxu1 %v5734_v34  ;;  %v6504_v34 = vld [vmem:[#allocation2 + $0x98] sm:$0xff] }
 0x1e7   : > { %2069 = vmatprep.mubr.f32.mxu0 %v7479_v29  ;;  %5691 = vmatpush1.bf16.msra.mxu0 %v5690_v38  ;;  %v9284_v29 = vld [vmem:[#allocation29_spill] sm:$0xff] }
 0x1e8   : > { %5692 = vmatprep.subr.bf16.mxu0 %v9267_v10  ;;  %5736 = vmatprep.subr.bf16.mxu1 %v9267_v10 }
 0x1ea   : > { %2070 = vmatmul.mubr.f32.gmra.mrb[30].mxu0 %v9281_v14 }
 0x1eb   : > { %2074 = vmatprep.mubr.f32.mxu0 %v7486_v48  ;;  %5694 = vmatpush1.bf16.msra.mxu0 %v5693_v11  ;;  %v9287_v48 = vld [vmem:[#allocation32_spill] sm:$0xff]  ;;  %v3616_v11 = vld [vmem:[#allocation9 + $0x58] sm:$0xff] }
 0x1ee   : > { %2075 = vmatmul.mubr.f32.gmra.mrb[32].mxu0 %v9282_v27 }
 0x1ef   : > { %2079 = vmatprep.mubr.f32.mxu0 %v7492_v33  ;;  %v9288_v33 = vld [vmem:[#allocation33_spill] sm:$0xff] }
 0x1f2   : > { %2080 = vmatmul.mubr.f32.gmra.mrb[34].mxu0 %v9283_v31 }
 0x1f3   : > { %2084 = vmatprep.mubr.f32.mxu0 %v7499_v46  ;;  %v9289_v46 = vld [vmem:[#allocation34_spill] sm:$0xff] }
 0x1f6   : > { %2085 = vmatmul.mubr.f32.gmra.mrb[36].mxu0 %v9284_v29 }
 0x1f7   : > { %2089 = vmatprep.mubr.f32.mxu0 %v7505_v32  ;;  %v9290_v32 = vld [vmem:[#allocation35_spill] sm:$0xff] }
 0x1fa   : > { %2090 = vmatmul.mubr.f32.gmra.mrb[38].mxu0 %v9285_v41 }
 0x1fb   : > { %2094 = vmatprep.mubr.f32.mxu0 %v7512_v3  ;;  %v9291_v3 = vld [vmem:[#allocation36_spill] sm:$0xff] }
 0x1fe   : > { %2095 = vmatmul.mubr.f32.gmra.mrb[40].mxu0 %v9286_v56 }
 0x1ff   : > { %2099 = vmatprep.mubr.f32.mxu0 %v7518_v42  ;;  %v9292_v42 = vld [vmem:[#allocation37_spill] sm:$0xff] }
 0x202   : > { %2100 = vmatmul.mubr.f32.gmra.mrb[42].mxu0 %v9287_v48 }
 0x203   : > { %2104 = vmatprep.mubr.f32.mxu0 %v7525_v43  ;;  %v9293_v43 = vld [vmem:[#allocation38_spill] sm:$0xff] }
 0x206   : > { %2105 = vmatmul.mubr.f32.gmra.mrb[44].mxu0 %v9288_v33 }
 0x207   : > { %2109 = vmatprep.mubr.f32.mxu0 %v7531_v55  ;;  %v9294_v55 = vld [vmem:[#allocation39_spill] sm:$0xff] }
 0x20a   : > { %2110 = vmatmul.mubr.f32.gmra.mrb[46].mxu0 %v9289_v46 }
 0x20b   : > { %2114 = vmatprep.mubr.f32.mxu0 %v7538_v49  ;;  %v850_v49 = vrot.slane %v7561_v18, 1 }
 0x20e   : > { %2115 = vmatmul.mubr.f32.gmra.mrb[48].mxu0 %v9290_v32 }
 0x20f   : > { %2119 = vmatprep.mubr.f32.mxu0 %v7544_v13  ;;  %v851_v13 = vrot.slane %v7569_v20, 1 }
 0x212   : > { %2120 = vmatmul.mubr.f32.gmra.mrb[50].mxu0 %v9291_v3 }
 0x213   : > { %2124 = vmatprep.mubr.f32.mxu0 %v7551_v37  ;;  %v7690_v37 = vsel %vm525_vm0, %v850_v49, %v851_v13  ;;  %v6499_v49 = vld [vmem:[#allocation2 + $0x60] sm:$0xff] }
 0x216   : > { %2125 = vmatmul.mubr.f32.gmra.mrb[52].mxu0 %v9292_v42 }
 0x217   : > { %2129 = vmatprep.mubr.f32.mxu0 %v7557_v53  ;;  %v853_v53 = vrot.slane %v7644_v62, 1  ;;  %v7714_v62 = vpack.c.bf16 %v3734_v40, %v3733_v25  ;;  %v6507_v25 = vld [vmem:[#allocation2 + $0xc0] sm:$0xff]  ;;  %v6509_v40 = vld [vmem:[#allocation2 + $0xd8] sm:$0xff] }
 0x219   : > { %v7705_v28 = vsel %vm525_vm0, %v851_v13, %v853_v53  ;;  %9296 = vst [vmem:[#allocation14_spill] sm:$0xff] %v7714_v62  ;;  %5920 = vmatprep.subr.bf16.mxu0 %v7714_v62  ;;  %v3617_v13 = vld [vmem:[#allocation9 + $0x60] sm:$0xff] }
 0x21a   : > { %2130 = vmatmul.mubr.f32.gmra.mrb[54].mxu0 %v9293_v43 }
 0x21b   : > { %2134 = vmatprep.mubr.f32.mxu0 %v7566_v44  ;;  %v7696_v44 = vrot.slane %v7693_v7, 1 }
 0x21e   : > { %2135 = vmatmul.mubr.f32.gmra.mrb[56].mxu0 %v9294_v55 }
 0x21f   : > { %2139 = vmatprep.mubr.f32.mxu0 %v7574_v2  ;;  %v7699_v2 = vld [vmem:[#allocation2 + $0x1a8] sm:$0x3] }
 0x220   : > { %v1005_v0 = vrot.slane %v7699_v2, 2 }
 0x222   : > { %2140 = vmatmul.mubr.f32.gmra.mrb[58].mxu0 %v9295_v60  ;;  %v1006_v54 = vsel %vm670_vm1, %v1002_v36, %v1005_v0  ;;  %v6500_v36 = vld [vmem:[#allocation2 + $0x68] sm:$0xff]  ;;  %v3619_v0 = vld [vmem:[#allocation9 + $0x70] sm:$0xff] }
 0x223   : > { %2144 = vmatprep.mubr.f32.mxu0 %v891_v35  ;;  %5421 = vmatmul.mubr.f32.gmra.mrb[30].mxu1 %v1006_v54  ;;  %v3614_v35 = vld [vmem:[#allocation9 + $0x48] sm:$0xff]  ;;  %v3620_v54 = vld [vmem:[#allocation9 + $0x78] sm:$0xff] }
 0x224   : > { %3820 = vmatprep.mubr.f32.mxu1 %v7696_v44 }
 0x226   : > { %2145 = vmatmul.mubr.f32.gmra.mrb[60].mxu0 %v7690_v37 }
 0x227   : > { %2149 = vmatprep.mubr.f32.mxu0 %v893_v16 }
 0x22a   : > { %2150 = vmatmul.mubr.f32.gmra.mrb[62].mxu0 %v7705_v28 }
 0x22b   : > { %2219 = vmatprep.mubr.f32.mxu0 %v7078_v47  ;;  %v3612_v47 = vld [vmem:[#allocation9 + $0x38] sm:$0xff] }
 0x22c   : > { %v5737_v38 = vpack.c.bf16 %v3612_v47, %v3611_v23  ;;  %v3627_v23 = vld [vmem:[#allocation9 + $0xb0] sm:$0xff]  ;;  %v6505_v47 = vld [vmem:[#allocation2 + $0xa8] sm:$0xff] }
 0x22e   : > { %2220 = vmatmul.mubr.f32.vlgmr.msra.gmra.mrb[0].mxu0 %v6495_v24  ;;  %5738 = vmatpush1.bf16.msra.mxu1 %v5737_v38  ;;  %v6503_v24 = vld [vmem:[#allocation2 + $0x90] sm:$0xff] }
 0x22f   : > { %2224 = vmatprep.mubr.f32.mxu0 %v9269_v52  ;;  %v3613_v52 = vld [vmem:[#allocation9 + $0x40] sm:$0xff]  ;;  %5922 = vmatpush3.bf16.msra.mxu0 %v7714_v62 }
 0x230   : > { %v5740_v57 = vpack.c.bf16 %v3614_v35, %v3613_v52  ;;  %5739 = vmatprep.subr.bf16.mxu1 %v9267_v10  ;;  %v6511_v38 = vld [vmem:[#allocation2 + $0xf0] sm:$0xff]  ;;  %v3736_v35 = vld [vmem:[#allocation9 + $0x418] sm:$0xff] }
 0x232   : > { %2225 = vmatmul.mubr.f32.gmra.mrb[2].mxu0 %v6496_v45  ;;  %5741 = vmatpush1.bf16.msra.mxu1 %v5740_v57  ;;  %v3628_v45 = vld [vmem:[#allocation9 + $0xb8] sm:$0xff] }
 0x233   : > { %2229 = vmatprep.mubr.f32.mxu0 %v9270_v17  ;;  %v3615_v17 = vld [vmem:[#allocation9 + $0x50] sm:$0xff]  ;;  %5742 = vmatprep.subr.bf16.mxu1 %v9267_v10  ;;  %v6516_v57 = vld [vmem:[#allocation2 + $0x128] sm:$0xff] }
 0x234   : > { %v5743_v16 = vpack.c.bf16 %v3616_v11, %v3615_v17 }
 0x236   : > { %2230 = vmatmul.mubr.f32.gmra.mrb[4].mxu0 %v6497_v30  ;;  %5744 = vmatpush1.bf16.msra.mxu1 %v5743_v16  ;;  %v3629_v30 = vld [vmem:[#allocation9 + $0xc0] sm:$0xff]  ;;  %v3738_v16 = vld [vmem:[#allocation9 + $0x428] sm:$0xff] }
 0x237   : > { %2234 = vmatprep.mubr.f32.mxu0 %v9271_v59  ;;  %v3618_v59 = vld [vmem:[#allocation9 + $0x68] sm:$0xff]  ;;  %5745 = vmatprep.subr.bf16.mxu1 %v9267_v10 }
 0x238   : > { %v5746_v53 = vpack.c.bf16 %v3618_v59, %v3617_v13  ;;  %v3633_v59 = vld [vmem:[#allocation9 + $0xe0] sm:$0xff] }
 0x23a   : > { %2235 = vmatmul.mubr.f32.gmra.mrb[6].mxu0 %v6498_v50  ;;  %5747 = vmatpush1.bf16.msra.mxu1 %v5746_v53  ;;  %v3632_v50 = vld [vmem:[#allocation9 + $0xd8] sm:$0xff] }
 0x23b   : > { %2239 = vmatprep.mubr.f32.mxu0 %v9272_v26  ;;  %v5749_v26 = vpack.c.bf16 %v3620_v54, %v3619_v0  ;;  %5748 = vmatprep.subr.bf16.mxu1 %v9267_v10  ;;  %v3740_v0 = vld [vmem:[#allocation9 + $0x438] sm:$0xff]  ;;  %v6518_v54 = vld [vmem:[#allocation2 + $0x140] sm:$0xff] }
 0x23e   : > { %2240 = vmatmul.mubr.f32.gmra.mrb[8].mxu0 %v6499_v49  ;;  %5750 = vmatpush1.bf16.msra.mxu1 %v5749_v26  ;;  %v6517_v49 = vld [vmem:[#allocation2 + $0x138] sm:$0xff] }
 0x23f   : > { %2244 = vmatprep.mubr.f32.mxu0 %v9273_v6  ;;  %v5752_v6 = vpack.c.bf16 %v3622_v51, %v3621_v15  ;;  %5751 = vmatprep.subr.bf16.mxu1 %v9267_v10  ;;  %v3635_v15 = vld [vmem:[#allocation9 + $0xf0] sm:$0xff]  ;;  %v3636_v51 = vld [vmem:[#allocation9 + $0xf8] sm:$0xff] }
 0x242   : > { %2245 = vmatmul.mubr.f32.gmra.mrb[10].mxu0 %v6500_v36  ;;  %5753 = vmatpush1.bf16.msra.mxu1 %v5752_v6  ;;  %v3739_v36 = vld [vmem:[#allocation9 + $0x430] sm:$0xff]  ;;  %v5773_v6 = vpack.c.bf16 %v3636_v51, %v3635_v15  ;;  %v3649_v15 = vld [vmem:[#allocation9 + $0x160] sm:$0xff]  ;;  %v3650_v51 = vld [vmem:[#allocation9 + $0x168] sm:$0xff] }
 0x243   : > { %2249 = vmatprep.mubr.f32.mxu0 %v9274_v8  ;;  %v5755_v8 = vpack.c.bf16 %v3624_v61, %v3623_v5  ;;  %5754 = vmatprep.subr.bf16.mxu1 %v9267_v10  ;;  %v3742_v5 = vld [vmem:[#allocation9 + $0x448] sm:$0xff]  ;;  %v6519_v61 = vld [vmem:[#allocation2 + $0x150] sm:$0xff] }
 0x246   : > { %2250 = vmatmul.mubr.f32.gmra.mrb[12].mxu0 %v6501_v58  ;;  %5756 = vmatpush1.bf16.msra.mxu1 %v5755_v8  ;;  %v7766_v58 = vpack.c.bf16 %v3740_v0, %v3739_v36 }
 0x247   : > { %2254 = vmatprep.mubr.f32.mxu0 %v9275_v1  ;;  %v5758_v1 = vpack.c.bf16 %v3626_v63, %v3625_v22  ;;  %5757 = vmatprep.subr.bf16.mxu1 %v9267_v10  ;;  %v3743_v22 = vld [vmem:[#allocation9 + $0x450] sm:$0xff]  ;;  %v3744_v63 = vld [vmem:[#allocation9 + $0x458] sm:$0xff] }
 0x248   : > { %9299 = vst [vmem:[#allocation17_spill] sm:$0xff] %v7766_v58 }
 0x24a   : > { %2255 = vmatmul.mubr.f32.gmra.mrb[14].mxu0 %v6502_v4  ;;  %5759 = vmatpush1.bf16.msra.mxu1 %v5758_v1  ;;  %v3741_v4 = vld [vmem:[#allocation9 + $0x440] sm:$0xff]  ;;  %v6520_v1 = vld [vmem:[#allocation2 + $0x158] sm:$0xff] }
 0x24b   : > { %2259 = vmatprep.mubr.f32.mxu0 %v9276_v39  ;;  %v5761_v39 = vpack.c.bf16 %v3628_v45, %v3627_v23  ;;  %5760 = vmatprep.subr.bf16.mxu1 %v9267_v10  ;;  %v7774_v8 = vpack.c.bf16 %v3742_v5, %v3741_v4  ;;  %v7784_v45 = vpack.c.bf16 %v3744_v63, %v3743_v22 }
 0x24c   : > { %v5794_v4 = vpack.c.bf16 %v3650_v51, %v3649_v15  ;;  %v7879_v51 = vld [vmem:[%s9075_s2] ss:$0 sm:$0xff] }
 0x24d   : > { %9300 = vst [vmem:[#allocation18_spill] sm:$0xff] %v7774_v8  ;;  %9301 = vst [vmem:[#allocation19_spill] sm:$0xff] %v7784_v45 }
 0x24e   : > { %2260 = vmatmul.mubr.f32.gmra.mrb[16].mxu0 %v6503_v24  ;;  %5762 = vmatpush1.bf16.msra.mxu1 %v5761_v39  ;;  %v2671_v24 = vld [vmem:[#allocation2 + $0x10] sm:$0x3] }
 0x24f   : > { %2264 = vmatprep.mubr.f32.mxu0 %v9277_v21  ;;  %v6506_v21 = vld [vmem:[#allocation2 + $0xb0] sm:$0xff]  ;;  %5763 = vmatprep.subr.bf16.mxu1 %v9267_v10 }
 0x250   : > { %v3637_v39 = vld [vmem:[#allocation9 + $0x100] sm:$0xff] }
 0x252   : > { %2265 = vmatmul.mubr.f32.gmra.mrb[18].mxu0 %v6504_v34 }
 0x253   : > { %2269 = vmatprep.mubr.f32.mxu0 %v9278_v19  ;;  %v6508_v19 = vld [vmem:[#allocation2 + $0xc8] sm:$0xff] }
 0x256   : > { %2270 = vmatmul.mubr.f32.gmra.mrb[20].mxu0 %v6505_v47  ;;  %v3638_v47 = vld [vmem:[#allocation9 + $0x108] sm:$0xff] }
 0x257   : > { %2274 = vmatprep.mubr.f32.mxu0 %v9279_v12  ;;  %v6510_v12 = vld [vmem:[#allocation2 + $0xe0] sm:$0xff] }
 0x25a   : > { %2275 = vmatmul.mubr.f32.gmra.mrb[22].mxu0 %v6506_v21  ;;  %v5776_v21 = vpack.c.bf16 %v3638_v47, %v3637_v39 }
 0x25b   : > { %2279 = vmatprep.mubr.f32.mxu0 %v9280_v9  ;;  %v6512_v9 = vld [vmem:[#allocation2 + $0xf8] sm:$0xff] }
 0x25e   : > { %2280 = vmatmul.mubr.f32.gmra.mrb[24].mxu0 %v6507_v25  ;;  %v3745_v25 = vld [vmem:[#allocation9 + $0x460] sm:$0xff] }
 0x25f   : > { %2284 = vmatprep.mubr.f32.mxu0 %v9281_v14  ;;  %v6513_v14 = vld [vmem:[#allocation2 + $0x108] sm:$0xff] }
 0x262   : > { %2285 = vmatmul.mubr.f32.gmra.mrb[26].mxu0 %v6508_v19  ;;  %v3746_v19 = vld [vmem:[#allocation9 + $0x468] sm:$0xff] }
 0x263   : > { %2289 = vmatprep.mubr.f32.mxu0 %v9282_v27  ;;  %v6514_v27 = vld [vmem:[#allocation2 + $0x110] sm:$0xff] }
 0x266   : > { %2290 = vmatmul.mubr.f32.gmra.mrb[28].mxu0 %v6509_v40  ;;  %v6521_v40 = vld [vmem:[#allocation2 + $0x168] sm:$0xff] }
 0x267   : > { %2294 = vmatprep.mubr.f32.mxu0 %v9283_v31  ;;  %v6515_v31 = vld [vmem:[#allocation2 + $0x120] sm:$0xff] }
 0x26a   : > { %2295 = vmatmul.mubr.f32.gmra.mrb[30].mxu0 %v6510_v12  ;;  %v7792_v12 = vpack.c.bf16 %v3746_v19, %v3745_v25  ;;  %v3655_v25 = vld [vmem:[#allocation9 + $0x190] sm:$0xff]  ;;  %v3656_v19 = vld [vmem:[#allocation9 + $0x198] sm:$0xff] }
 0x26b   : > { %2299 = vmatprep.mubr.f32.mxu0 %v9284_v29  ;;  %v3630_v29 = vld [vmem:[#allocation9 + $0xc8] sm:$0xff] }
 0x26c   : > { %v5764_v52 = vpack.c.bf16 %v3630_v29, %v3629_v30  ;;  %9302 = vst [vmem:[#allocation20_spill] sm:$0xff] %v7792_v12  ;;  %v3640_v30 = vld [vmem:[#allocation9 + $0x118] sm:$0xff] }
 0x26e   : > { %2300 = vmatmul.mubr.f32.gmra.mrb[32].mxu0 %v6511_v38  ;;  %5765 = vmatpush1.bf16.msra.mxu1 %v5764_v52  ;;  %v3748_v38 = vld [vmem:[#allocation9 + $0x478] sm:$0xff]  ;;  %v966_v52 = vrot.slane %v7699_v2, 1  ;;  %v3643_v2 = vld [vmem:[#allocation9 + $0x130] sm:$0xff] }
 0x26f   : > { %2304 = vmatprep.mubr.f32.mxu0 %v9285_v41  ;;  %v3735_v41 = vld [vmem:[#allocation9 + $0x410] sm:$0xff]  ;;  %5766 = vmatprep.subr.bf16.mxu1 %v9267_v10 }
 0x272   : > { %2305 = vmatmul.mubr.f32.gmra.mrb[34].mxu0 %v6512_v9  ;;  %v6522_v9 = vld [vmem:[#allocation2 + $0x170] sm:$0xff] }
 0x273   : > { %2309 = vmatprep.mubr.f32.mxu0 %v9286_v56  ;;  %v7748_v56 = vpack.c.bf16 %v3736_v35, %v3735_v41  ;;  %v967_v41 = vsel %vm525_vm0, %v7696_v44, %v966_v52  ;;  %v3641_v35 = vld [vmem:[#allocation9 + $0x120] sm:$0xff] }
 0x275   : > { %9297 = vst [vmem:[#allocation15_spill] sm:$0xff] %v7748_v56  ;;  %5924 = vmatprep.subr.bf16.mxu0 %v7748_v56 }
 0x276   : > { %2310 = vmatmul.mubr.f32.gmra.mrb[36].mxu0 %v6513_v14 }
 0x277   : > { %2314 = vmatprep.mubr.f32.mxu0 %v9287_v48  ;;  %v3631_v48 = vld [vmem:[#allocation9 + $0xd0] sm:$0xff]  ;;  %5926 = vmatpush3.bf16.msra.mxu0 %v7748_v56 }
 0x278   : > { %v5767_v17 = vpack.c.bf16 %v3632_v50, %v3631_v48 }
 0x27a   : > { %2315 = vmatmul.mubr.f32.gmra.mrb[38].mxu0 %v6514_v27  ;;  %5768 = vmatpush1.bf16.msra.mxu1 %v5767_v17 }
 0x27b   : > { %2319 = vmatprep.mubr.f32.mxu0 %v9288_v33  ;;  %5769 = vmatprep.subr.bf16.mxu1 %v9267_v10 }
 0x27d   : > { %v7751_v33 = vpop.f32.mrb[0].mxu1 }
 0x27e   : > { %2320 = vmatmul.mubr.f32.gmra.mrb[40].mxu0 %v6515_v31  ;;  %v7753_v11 = vpop.f32.mrb[1].mxu1 }
 0x27f   : > { %2324 = vmatprep.mubr.f32.mxu0 %v9289_v46  ;;  %v3737_v46 = vld [vmem:[#allocation9 + $0x420] sm:$0xff] }
 0x280   : > { %v7758_v13 = vpack.c.bf16 %v3738_v16, %v3737_v46  ;;  %v3645_v46 = vld [vmem:[#allocation9 + $0x140] sm:$0xff]  ;;  %v3646_v16 = vld [vmem:[#allocation9 + $0x148] sm:$0xff] }
 0x281   : > { %v7763_v26 = vpop.f32.mrb[2].mxu1 }
 0x282   : > { %2325 = vmatmul.mubr.f32.gmra.mrb[42].mxu0 %v6516_v57  ;;  %9298 = vst [vmem:[#allocation16_spill] sm:$0xff] %v7758_v13  ;;  %5928 = vmatprep.subr.bf16.mxu0 %v7758_v13  ;;  %v3642_v57 = vld [vmem:[#allocation9 + $0x128] sm:$0xff] }
 0x283   : > { %2329 = vmatprep.mubr.f32.mxu0 %v9290_v32  ;;  %v3634_v32 = vld [vmem:[#allocation9 + $0xe8] sm:$0xff]  ;;  %5930 = vmatpush3.bf16.msra.mxu0 %v7758_v13 }
 0x284   : > { %v5770_v53 = vpack.c.bf16 %v3634_v32, %v3633_v59  ;;  %5932 = vmatprep.subr.bf16.mxu0 %v7766_v58  ;;  %v5788_v59 = vpack.c.bf16 %v3646_v16, %v3645_v46  ;;  %v3647_v32 = vld [vmem:[#allocation9 + $0x150] sm:$0xff] }
 0x286   : > { %2330 = vmatmul.mubr.f32.gmra.mrb[44].mxu0 %v6517_v49  ;;  %5771 = vmatpush1.bf16.msra.mxu1 %v5770_v53  ;;  %v3648_v53 = vld [vmem:[#allocation9 + $0x158] sm:$0xff] }
 0x287   : > { %2334 = vmatprep.mubr.f32.mxu0 %v9291_v3  ;;  %5772 = vmatprep.subr.bf16.mxu1 %v9267_v10  ;;  %v7769_v3 = vpop.f32.mrb[3].mxu1  ;;  %v5791_v0 = vpack.c.bf16 %v3648_v53, %v3647_v32  ;;  %v3663_v32 = vld [vmem:[#allocation9 + $0x1d0] sm:$0xff]  ;;  %v3664_v53 = vld [vmem:[#allocation9 + $0x1d8] sm:$0xff] }
 0x288   : > { %5934 = vmatpush3.bf16.msra.mxu0 %v7766_v58  ;;  %v7780_v34 = vpop.f32.mrb[4].mxu1  ;;  %v5815_v15 = vpack.c.bf16 %v3664_v53, %v3663_v32 }
 0x289   : > { %5936 = vmatprep.subr.bf16.mxu0 %v7774_v8 }
 0x28a   : > { %2335 = vmatmul.mubr.f32.gmra.mrb[46].mxu0 %v6518_v54  ;;  %5774 = vmatpush1.bf16.msra.mxu1 %v5773_v6 }
 0x28b   : > { %2339 = vmatprep.mubr.f32.mxu0 %v9292_v42  ;;  %5775 = vmatprep.subr.bf16.mxu1 %v9267_v10  ;;  %v2806_v42 = vrot.slane %v2671_v24, 1  ;;  %v3652_v24 = vld [vmem:[#allocation9 + $0x178] sm:$0xff] }
 0x28c   : > { %5938 = vmatpush3.bf16.msra.mxu0 %v7774_v8 }
 0x28d   : > { %3821 = vmatmul.mubr.f32.vlgmr.msra.gmra.mrb[32].mxu1 %v7693_v7  ;;  %v2807_v23 = vsel %vm525_vm0, %v7696_v44, %v2806_v42  ;;  %5940 = vmatprep.subr.bf16.mxu0 %v7784_v45 }
 0x28e   : > { %2340 = vmatmul.mubr.f32.gmra.mrb[48].mxu0 %v6519_v61  ;;  %3825 = vmatprep.mubr.f32.mxu1 %v2807_v23  ;;  %v3651_v61 = vld [vmem:[#allocation9 + $0x170] sm:$0xff]  ;;  %v3654_v23 = vld [vmem:[#allocation9 + $0x188] sm:$0xff] }
 0x28f   : > { %2344 = vmatprep.mubr.f32.mxu0 %v9293_v43  ;;  %v7787_v43 = vpop.f32.mrb[5].mxu1  ;;  %5777 = vmatpush1.bf16.msra.mxu1 %v5776_v21  ;;  %v5797_v22 = vpack.c.bf16 %v3652_v24, %v3651_v61 }
 0x290   : > { %5942 = vmatpush3.bf16.msra.mxu0 %v7784_v45  ;;  %5778 = vmatprep.subr.bf16.mxu1 %v9267_v10  ;;  %v7798_v14 = vpop.f32.mrb[6].mxu1 }
 0x291   : > { %3826 = vmatmul.mubr.f32.gmra.mrb[34].mxu1 %v7693_v7  ;;  %5944 = vmatprep.subr.bf16.mxu0 %v7792_v12  ;;  %v7803_v31 = vpop.f32.mrb[7].mxu1 }
 0x292   : > { %2345 = vmatmul.mubr.f32.gmra.mrb[50].mxu0 %v6520_v1  ;;  %v3653_v1 = vld [vmem:[#allocation9 + $0x180] sm:$0xff] }
 0x293   : > { %2349 = vmatprep.mubr.f32.mxu0 %v9294_v55  ;;  %v3747_v55 = vld [vmem:[#allocation9 + $0x470] sm:$0xff]  ;;  %v5800_v47 = vpack.c.bf16 %v3654_v23, %v3653_v1  ;;  %v3665_v1 = vld [vmem:[#allocation9 + $0x1e0] sm:$0xff]  ;;  %v3666_v23 = vld [vmem:[#allocation9 + $0x1e8] sm:$0xff] }
 0x294   : > { %5946 = vmatpush3.bf16.msra.mxu0 %v7792_v12  ;;  %v7800_v27 = vpack.c.bf16 %v3748_v38, %v3747_v55  ;;  %v5803_v55 = vpack.c.bf16 %v3656_v19, %v3655_v25  ;;  %v5818_v25 = vpack.c.bf16 %v3666_v23, %v3665_v1 }
 0x296   : > { %2350 = vmatmul.mubr.f32.gmra.mrb[52].mxu0 %v6521_v40  ;;  %9303 = vst [vmem:[#allocation21_spill] sm:$0xff] %v7800_v27  ;;  %5948 = vmatprep.subr.bf16.mxu0 %v7800_v27 }
 0x297   : > { %2354 = vmatprep.mubr.f32.mxu0 %v9295_v60  ;;  %v3639_v60 = vld [vmem:[#allocation9 + $0x110] sm:$0xff] }
 0x298   : > { %v5779_v29 = vpack.c.bf16 %v3640_v30, %v3639_v60  ;;  %5950 = vmatpush3.bf16.msra.mxu0 %v7800_v27  ;;  %v3658_v60 = vld [vmem:[#allocation9 + $0x1a8] sm:$0xff] }
 0x29a   : > { %2355 = vmatmul.mubr.f32.gmra.mrb[54].mxu0 %v6522_v9  ;;  %5780 = vmatpush1.bf16.msra.mxu1 %v5779_v29  ;;  %v3657_v9 = vld [vmem:[#allocation9 + $0x1a0] sm:$0xff] }
 0x29b   : > { %2359 = vmatprep.mubr.f32.mxu0 %v7690_v37  ;;  %5781 = vmatprep.subr.bf16.mxu1 %v9267_v10  ;;  %v7813_v37 = vpop.f32.mrb[8].mxu1  ;;  %v5806_v29 = vpack.c.bf16 %v3658_v60, %v3657_v9 }
 0x29c   : > { %v7817_v48 = vpop.f32.mrb[9].mxu1 }
 0x29e   : > { %2360 = vmatmul.mubr.f32.gmra.mrb[56].mxu0 %v7561_v18  ;;  %v5782_v18 = vpack.c.bf16 %v3642_v57, %v3641_v35  ;;  %v3660_v35 = vld [vmem:[#allocation9 + $0x1b8] sm:$0xff] }
 0x29f   : > { %2364 = vmatprep.mubr.f32.mxu0 %v7705_v28  ;;  %v3644_v28 = vld [vmem:[#allocation9 + $0x138] sm:$0xff] }
 0x2a0   : > { %5783 = vmatpush1.bf16.msra.mxu1 %v5782_v18 }
 0x2a1   : > { %5784 = vmatprep.subr.bf16.mxu1 %v9267_v10 }
 0x2a2   : > { %2365 = vmatmul.mubr.f32.gmra.mrb[58].mxu0 %v7569_v20  ;;  %v7822_v20 = vpop.f32.mrb[10].mxu1 }
 0x2a3   : > { %2369 = vmatprep.mubr.f32.mxu0 %v7696_v44  ;;  %v7824_v50 = vpop.f32.mrb[11].mxu1  ;;  %v5785_v44 = vpack.c.bf16 %v3644_v28, %v3643_v2  ;;  %v3661_v28 = vld [vmem:[#allocation9 + $0x1c0] sm:$0xff] }
 0x2a4   : > { %v7827_v17 = vpop.f32.mrb[12].mxu1 }
 0x2a5   : > { %5786 = vmatpush1.bf16.msra.mxu1 %v5785_v44  ;;  %v7829_v49 = vpop.f32.mrb[13].mxu1  ;;  %v3662_v44 = vld [vmem:[#allocation9 + $0x1c8] sm:$0xff] }
 0x2a6   : > { %2370 = vmatmul.mubr.f32.gmra.mrb[60].mxu0 %v7693_v7  ;;  %5787 = vmatprep.subr.bf16.mxu1 %v9267_v10  ;;  %v5812_v16 = vpack.c.bf16 %v3662_v44, %v3661_v28 }
 0x2a7   : > { %2374 = vmatprep.mubr.f32.mxu0 %v967_v41  ;;  %v3659_v41 = vld [vmem:[#allocation9 + $0x1b0] sm:$0xff] }
 0x2a8   : > { %v5809_v18 = vpack.c.bf16 %v3660_v35, %v3659_v41  ;;  %v3667_v41 = vld [vmem:[#allocation9 + $0x1f0] sm:$0xff]  ;;  %v3668_v35 = vld [vmem:[#allocation9 + $0x1f8] sm:$0xff] }
 0x2a9   : > { %5789 = vmatpush1.bf16.msra.mxu1 %v5788_v59  ;;  %v5821_v44 = vpack.c.bf16 %v3668_v35, %v3667_v41 }
 0x2aa   : > { %2375 = vmatmul.mubr.f32.gmra.mrb[62].mxu0 %v7693_v7  ;;  %5790 = vmatprep.subr.bf16.mxu1 %v9267_v10  ;;  %v7832_v7 = vpop.f32.mrb[14].mxu1 }
 0x2ab   : > { %v7834_v36 = vpop.f32.mrb[15].mxu1 }
 0x2ac   : > { %v7837_v54 = vpop.f32.mrb[16].mxu1 }
 0x2ad   : > { %5792 = vmatpush1.bf16.msra.mxu1 %v5791_v0  ;;  %v7839_v6 = vpop.f32.mrb[17].mxu1 }
 0x2ae   : > { %5793 = vmatprep.subr.bf16.mxu1 %v9267_v10  ;;  %v7842_v5 = vpop.f32.mrb[18].mxu1 }
 0x2af   : > { %v7844_v42 = vpop.f32.mrb[19].mxu1 }
 0x2b0   : > { %v7847_v63 = vpop.f32.mrb[20].mxu1 }
 0x2b1   : > { %5795 = vmatpush1.bf16.msra.mxu1 %v5794_v4  ;;  %v7849_v39 = vpop.f32.mrb[21].mxu1 }
 0x2b2   : > { %5796 = vmatprep.subr.bf16.mxu1 %v9267_v10  ;;  %v7852_v21 = vpop.f32.mrb[22].mxu1 }
 0x2b3   : > { %v7854_v40 = vpop.f32.mrb[23].mxu1 }
 0x2b4   : > { %v7857_v38 = vpop.f32.mrb[24].mxu1 }
 0x2b5   : > { %5798 = vmatpush1.bf16.msra.mxu1 %v5797_v22  ;;  %v7859_v30 = vpop.f32.mrb[25].mxu1 }
 0x2b6   : > { %5799 = vmatprep.subr.bf16.mxu1 %v9267_v10  ;;  %v7862_v52 = vpop.f32.mrb[26].mxu1 }
 0x2b7   : > { %v7864_v57 = vpop.f32.mrb[27].mxu1 }
 0x2b8   : > { %v7867_v2 = vpop.f32.mrb[28].mxu1 }
 0x2b9   : > { %5801 = vmatpush1.bf16.msra.mxu1 %v5800_v47  ;;  %v7869_v46 = vpop.f32.mrb[29].mxu1 }
 0x2ba   : > { %5802 = vmatprep.subr.bf16.mxu1 %v9267_v10 }
 0x2bd   : > { %5804 = vmatpush1.bf16.msra.mxu1 %v5803_v55 }
 0x2be   : > { %5805 = vmatprep.subr.bf16.mxu1 %v9267_v10 }
 0x2c1   : > { %5807 = vmatpush1.bf16.msra.mxu1 %v5806_v29 }
 0x2c2   : > { %5808 = vmatprep.subr.bf16.mxu1 %v9267_v10 }
 0x2c5   : > { %5810 = vmatpush1.bf16.msra.mxu1 %v5809_v18 }
 0x2c6   : > { %5811 = vmatprep.subr.bf16.mxu1 %v9267_v10 }
 0x2c9   : > { %5813 = vmatpush1.bf16.msra.mxu1 %v5812_v16 }
 0x2ca   : > { %5814 = vmatprep.subr.bf16.mxu1 %v9267_v10 }
 0x2cd   : > { %5816 = vmatpush1.bf16.msra.mxu1 %v5815_v15 }
 0x2ce   : > { %5817 = vmatprep.subr.bf16.mxu1 %v9267_v10 }
 0x2d1   : > { %5819 = vmatpush1.bf16.msra.mxu1 %v5818_v25 }
 0x2d2   : > { %5820 = vmatprep.subr.bf16.mxu1 %v9267_v10 }
 0x2d5   : > { %5822 = vmatpush1.bf16.msra.mxu1 %v5821_v44 }
 0x2d6   : > { %5823 = vmatprep.subr.bf16.mxu1 %v9267_v10 }
 0x2f6   : > { %v7872_v59 = vpop.f32.mrb[30].mxu1 }
 0x2f7   : > { %v7874_v0 = vpop.f32.mrb[31].mxu1 }
 0x301   : > { %v2221_v4 = vpop.f32.mrb[0].mxu0 }
 0x302   : > { %v5967_v61 = vadd.f32 %v7879_v51, %v2221_v4  ;;  %v2223_v24 = vpop.f32.mrb[1].mxu0 }
 0x304   : > { %v2447_v22 = vadd.f32 %v5967_v61, %v7753_v11 }
 0x305   : > { %v2226_v47 = vpop.f32.mrb[2].mxu0 }
 0x306   : > { %v2605_v19 = vmax.f32 %v2447_v22, 0.0  ;;  %v5968_v55 = vadd.f32 %v7879_v51, %v2226_v47  ;;  %v2228_v9 = vpop.f32.mrb[3].mxu0 }
 0x308   : > { %2637 = vst [vmem:[#allocation2 + $0x19] sm:$0xff] %v2605_v19  ;;  %v2452_v60 = vadd.f32 %v5968_v55, %v7751_v33 }
 0x309   : > { %v2231_v29 = vpop.f32.mrb[4].mxu0 }
 0x30a   : > { %v2606_v18 = vmax.f32 %v2452_v60, 0.0  ;;  %v5969_v11 = vadd.f32 %v7879_v51, %v2231_v29  ;;  %v2233_v28 = vpop.f32.mrb[5].mxu0 }
 0x30c   : > { %2638 = vst [vmem:[#allocation2 + $0x21] sm:$0xff] %v2606_v18  ;;  %v2457_v16 = vadd.f32 %v5969_v11, %v7769_v3 }
 0x30d   : > { %v2236_v32 = vpop.f32.mrb[6].mxu0 }
 0x30e   : > { %v2607_v53 = vmax.f32 %v2457_v16, 0.0  ;;  %v5970_v33 = vadd.f32 %v7879_v51, %v2236_v32  ;;  %v2238_v15 = vpop.f32.mrb[7].mxu0 }
 0x30f   : > { %v7892_v24 = vld [vmem:[#allocation2 + $0x18] sm:$0xff] }
 0x310   : > { %2639 = vst [vmem:[#allocation2 + $0x31] sm:$0xff] %v2607_v53  ;;  %v2462_v4 = vadd.f32 %v5970_v33, %v7763_v26  ;;  %v2808_v19 = vrot.slane %v7892_v24, 1 }
 0x311   : > { %v2241_v61 = vpop.f32.mrb[8].mxu0 }
 0x312   : > { %v2608_v22 = vmax.f32 %v2462_v4, 0.0  ;;  %v5971_v1 = vadd.f32 %v7879_v51, %v2241_v61  ;;  %v2243_v23 = vpop.f32.mrb[9].mxu0 }
 0x313   : > { %v7895_v47 = vld [vmem:[#allocation2 + $0x20] sm:$0xff]  ;;  %v7897_v3 = vld [vmem:[#allocation2 + $0x28] sm:$0x3] }
 0x314   : > { %2640 = vst [vmem:[#allocation2 + $0x39] sm:$0xff] %v2608_v22  ;;  %v2467_v25 = vadd.f32 %v5971_v1, %v7787_v43  ;;  %v2809_v55 = vrot.slane %v7895_v47, 1  ;;  %v2811_v26 = vrot.slane %v7897_v3, 1 }
 0x315   : > { %v2246_v9 = vpop.f32.mrb[10].mxu0 }
 0x316   : > { %v2609_v60 = vmax.f32 %v2467_v25, 0.0  ;;  %v5972_v29 = vadd.f32 %v7879_v51, %v2246_v9  ;;  %v2248_v41 = vpop.f32.mrb[11].mxu0  ;;  %v7905_v35 = vsel %vm525_vm0, %v2808_v19, %v2809_v55  ;;  %v7911_v43 = vsel %vm525_vm0, %v2809_v55, %v2811_v26 }
 0x317   : > { %9304 = vst [vmem:[#allocation22_spill] sm:$0xff] %v7905_v35  ;;  %3830 = vmatprep.mubr.f32.mxu1 %v7905_v35  ;;  %9305 = vst [vmem:[#allocation23_spill] sm:$0xff] %v7911_v43  ;;  %v7913_v11 = vld [vmem:[#allocation2 + $0x30] sm:$0xff] }
 0x318   : > { %2641 = vst [vmem:[#allocation2 + $0x49] sm:$0xff] %v2609_v60  ;;  %v2472_v18 = vadd.f32 %v5972_v29, %v7780_v34  ;;  %3831 = vmatmul.mubr.f32.gmra.mrb[36].mxu1 %v7892_v24  ;;  %v2813_v33 = vrot.slane %v7913_v11, 1  ;;  %v2957_v34 = vrot.slane %v7913_v11, 2 }
 0x319   : > { %v2251_v28 = vpop.f32.mrb[12].mxu0  ;;  %3835 = vmatprep.mubr.f32.mxu1 %v7911_v43 }
 0x31a   : > { %v2610_v44 = vmax.f32 %v2472_v18, 0.0  ;;  %v5973_v16 = vadd.f32 %v7879_v51, %v2251_v28  ;;  %v2253_v32 = vpop.f32.mrb[13].mxu0 }
 0x31b   : > { %v7917_v53 = vld [vmem:[#allocation2 + $0x38] sm:$0xff]  ;;  %v2677_v15 = vld [vmem:[#allocation2 + $0x40] sm:$0x3] }
 0x31c   : > { %2642 = vst [vmem:[#allocation2 + $0x51] sm:$0xff] %v2610_v44  ;;  %v2477_v4 = vadd.f32 %v5973_v16, %v7803_v31  ;;  %3836 = vmatmul.mubr.f32.gmra.mrb[38].mxu1 %v7895_v47  ;;  %v2814_v61 = vrot.slane %v7917_v53, 1  ;;  %v2958_v22 = vrot.slane %v7917_v53, 2  ;;  %v2960_v1 = vrot.slane %v2677_v15, 2 }
 0x31d   : > { %v2256_v23 = vpop.f32.mrb[14].mxu0  ;;  %v2816_v25 = vrot.slane %v2677_v15, 1 }
 0x31e   : > { %v2611_v19 = vmax.f32 %v2477_v4, 0.0  ;;  %v5974_v55 = vadd.f32 %v7879_v51, %v2256_v23  ;;  %v2258_v26 = vpop.f32.mrb[15].mxu0  ;;  %v7927_v9 = vsel %vm525_vm0, %v2813_v33, %v2814_v61  ;;  %v7930_v60 = vsel %vm670_vm1, %v2957_v34, %v2958_v22 }
 0x31f   : > { %9306 = vst [vmem:[#allocation24_spill] sm:$0xff] %v7927_v9  ;;  %3840 = vmatprep.mubr.f32.mxu1 %v7927_v9  ;;  %5455 = vmatprep.mubr.f32.mxu0 %v7930_v60  ;;  %v7935_v31 = vsel %vm670_vm1, %v2958_v22, %v2960_v1  ;;  %v7941_v41 = vsel %vm525_vm0, %v2814_v61, %v2816_v25  ;;  %v7943_v18 = vld [vmem:[#allocation2 + $0x48] sm:$0xff] }
 0x320   : > { %2643 = vst [vmem:[#allocation2 + $0x61] sm:$0xff] %v2611_v19  ;;  %v2482_v29 = vadd.f32 %v5974_v55, %v7798_v14  ;;  %3841 = vmatmul.mubr.f32.gmra.mrb[40].mxu1 %v7913_v11  ;;  %5456 = vmatmul.mubr.f32.vlgmr.msra.gmra.mrb[64].mxu0 %v7935_v31  ;;  %9307 = vst [vmem:[#allocation25_spill] sm:$0xff] %v7941_v41  ;;  %v2818_v14 = vrot.slane %v7943_v18, 1  ;;  %v2962_v34 = vrot.slane %v7943_v18, 2 }
 0x321   : > { %v2261_v28 = vpop.f32.mrb[16].mxu0  ;;  %3845 = vmatprep.mubr.f32.mxu1 %v7941_v41 }
 0x322   : > { %v2612_v44 = vmax.f32 %v2482_v29, 0.0  ;;  %v5975_v16 = vadd.f32 %v7879_v51, %v2261_v28  ;;  %v2263_v32 = vpop.f32.mrb[17].mxu0 }
 0x323   : > { %v7947_v33 = vld [vmem:[#allocation2 + $0x50] sm:$0xff]  ;;  %v2680_v15 = vld [vmem:[#allocation2 + $0x58] sm:$0x3] }
 0x324   : > { %2644 = vst [vmem:[#allocation2 + $0x69] sm:$0xff] %v2612_v44  ;;  %v2487_v4 = vadd.f32 %v5975_v16, %v7817_v48  ;;  %3846 = vmatmul.mubr.f32.gmra.mrb[42].mxu1 %v7917_v53  ;;  %v2819_v61 = vrot.slane %v7947_v33, 1  ;;  %v2963_v22 = vrot.slane %v7947_v33, 2  ;;  %v2965_v1 = vrot.slane %v2680_v15, 2 }
 0x325   : > { %v2266_v23 = vpop.f32.mrb[18].mxu0  ;;  %v2821_v25 = vrot.slane %v2680_v15, 1 }
 0x326   : > { %v2613_v19 = vmax.f32 %v2487_v4, 0.0  ;;  %v5976_v55 = vadd.f32 %v7879_v51, %v2266_v23  ;;  %v2268_v26 = vpop.f32.mrb[19].mxu0  ;;  %v7957_v29 = vsel %vm525_vm0, %v2818_v14, %v2819_v61  ;;  %v7960_v28 = vsel %vm670_vm1, %v2962_v34, %v2963_v22 }
 0x327   : > { %9308 = vst [vmem:[#allocation26_spill] sm:$0xff] %v7957_v29  ;;  %3850 = vmatprep.mubr.f32.mxu1 %v7957_v29  ;;  %5458 = vmatprep.mubr.f32.mxu0 %v7960_v28  ;;  %v7965_v48 = vsel %vm670_vm1, %v2963_v22, %v2965_v1  ;;  %v7971_v16 = vsel %vm525_vm0, %v2819_v61, %v2821_v25  ;;  %v7973_v32 = vld [vmem:[#allocation2 + $0x60] sm:$0xff] }
 0x328   : > { %2645 = vst [vmem:[#allocation2 + $0x79] sm:$0xff] %v2613_v19  ;;  %v2492_v44 = vadd.f32 %v5976_v55, %v7813_v37  ;;  %3851 = vmatmul.mubr.f32.gmra.mrb[44].mxu1 %v7943_v18  ;;  %5459 = vmatmul.mubr.f32.gmra.mrb[66].mxu0 %v7965_v48  ;;  %9309 = vst [vmem:[#allocation27_spill] sm:$0xff] %v7971_v16  ;;  %v2823_v37 = vrot.slane %v7973_v32, 1  ;;  %v2967_v1 = vrot.slane %v7973_v32, 2 }
 0x329   : > { %v2271_v14 = vpop.f32.mrb[20].mxu0  ;;  %3855 = vmatprep.mubr.f32.mxu1 %v7971_v16 }
 0x32a   : > { %v2614_v34 = vmax.f32 %v2492_v44, 0.0  ;;  %v5977_v15 = vadd.f32 %v7879_v51, %v2271_v14  ;;  %v2273_v4 = vpop.f32.mrb[21].mxu0 }
 0x32b   : > { %v7977_v22 = vld [vmem:[#allocation2 + $0x68] sm:$0xff]  ;;  %v2683_v23 = vld [vmem:[#allocation2 + $0x70] sm:$0x3] }
 0x32c   : > { %2646 = vst [vmem:[#allocation2 + $0x81] sm:$0xff] %v2614_v34  ;;  %v2497_v61 = vadd.f32 %v5977_v15, %v7824_v50  ;;  %3856 = vmatmul.mubr.f32.gmra.mrb[46].mxu1 %v7947_v33  ;;  %v2824_v25 = vrot.slane %v7977_v22, 1  ;;  %v2968_v19 = vrot.slane %v7977_v22, 2  ;;  %v2970_v55 = vrot.slane %v2683_v23, 2 }
 0x32d   : > { %v2276_v26 = vpop.f32.mrb[22].mxu0  ;;  %v2826_v44 = vrot.slane %v2683_v23, 1 }
 0x32e   : > { %v2615_v14 = vmax.f32 %v2497_v61, 0.0  ;;  %v5978_v4 = vadd.f32 %v7879_v51, %v2276_v26  ;;  %v2278_v27 = vpop.f32.mrb[23].mxu0  ;;  %v7987_v12 = vsel %vm525_vm0, %v2823_v37, %v2824_v25  ;;  %v7990_v34 = vsel %vm670_vm1, %v2967_v1, %v2968_v19 }
 0x32f   : > { %9310 = vst [vmem:[#allocation28_spill] sm:$0xff] %v7987_v12  ;;  %3860 = vmatprep.mubr.f32.mxu1 %v7987_v12  ;;  %5461 = vmatprep.mubr.f32.mxu0 %v7990_v34  ;;  %v7995_v50 = vsel %vm670_vm1, %v2968_v19, %v2970_v55  ;;  %v8001_v27 = vsel %vm525_vm0, %v2824_v25, %v2826_v44  ;;  %v8003_v37 = vld [vmem:[#allocation2 + $0x78] sm:$0xff] }
 0x330   : > { %2647 = vst [vmem:[#allocation2 + $0x91] sm:$0xff] %v2615_v14  ;;  %v2502_v15 = vadd.f32 %v5978_v4, %v7822_v20  ;;  %3861 = vmatmul.mubr.f32.gmra.mrb[48].mxu1 %v7973_v32  ;;  %5462 = vmatmul.mubr.f32.gmra.mrb[68].mxu0 %v7995_v50  ;;  %9311 = vst [vmem:[#allocation29_spill] sm:$0xff] %v8001_v27  ;;  %v2828_v20 = vrot.slane %v8003_v37, 1  ;;  %v2972_v26 = vrot.slane %v8003_v37, 2 }
 0x331   : > { %v2281_v1 = vpop.f32.mrb[24].mxu0  ;;  %3865 = vmatprep.mubr.f32.mxu1 %v8001_v27 }
 0x332   : > { %v2616_v23 = vmax.f32 %v2502_v15, 0.0  ;;  %v5979_v61 = vadd.f32 %v7879_v51, %v2281_v1  ;;  %v2283_v19 = vpop.f32.mrb[25].mxu0 }
 0x333   : > { %v8007_v55 = vld [vmem:[#allocation2 + $0x80] sm:$0xff]  ;;  %v2686_v14 = vld [vmem:[#allocation2 + $0x88] sm:$0x3] }
 0x334   : > { %2648 = vst [vmem:[#allocation2 + $0x99] sm:$0xff] %v2616_v23  ;;  %v2507_v25 = vadd.f32 %v5979_v61, %v7829_v49  ;;  %3866 = vmatmul.mubr.f32.gmra.mrb[50].mxu1 %v7977_v22  ;;  %v2829_v44 = vrot.slane %v8007_v55, 1  ;;  %v2973_v4 = vrot.slane %v8007_v55, 2  ;;  %v2975_v15 = vrot.slane %v2686_v14, 2 }
 0x335   : > { %v2286_v45 = vpop.f32.mrb[26].mxu0  ;;  %v2831_v1 = vrot.slane %v2686_v14, 1 }
 0x336   : > { %v2617_v19 = vmax.f32 %v2507_v25, 0.0  ;;  %v5980_v8 = vadd.f32 %v7879_v51, %v2286_v45  ;;  %v2288_v58 = vpop.f32.mrb[27].mxu0  ;;  %v8017_v13 = vsel %vm525_vm0, %v2828_v20, %v2829_v44  ;;  %v8020_v23 = vsel %vm670_vm1, %v2972_v26, %v2973_v4 }
 0x337   : > { %9312 = vst [vmem:[#allocation30_spill] sm:$0xff] %v8017_v13  ;;  %3870 = vmatprep.mubr.f32.mxu1 %v8017_v13  ;;  %5464 = vmatprep.mubr.f32.mxu0 %v8020_v23  ;;  %v8025_v49 = vsel %vm670_vm1, %v2973_v4, %v2975_v15  ;;  %v8031_v58 = vsel %vm525_vm0, %v2829_v44, %v2831_v1  ;;  %v8033_v45 = vld [vmem:[#allocation2 + $0x90] sm:$0xff] }
 0x338   : > { %2649 = vst [vmem:[#allocation2 + $0xa9] sm:$0xff] %v2617_v19  ;;  %v2512_v61 = vadd.f32 %v5980_v8, %v7827_v17  ;;  %3871 = vmatmul.mubr.f32.gmra.mrb[52].mxu1 %v8003_v37  ;;  %5465 = vmatmul.mubr.f32.gmra.mrb[70].mxu0 %v8025_v49  ;;  %9313 = vst [vmem:[#allocation31_spill] sm:$0xff] %v8031_v58  ;;  %v2833_v8 = vrot.slane %v8033_v45, 1  ;;  %v2977_v17 = vrot.slane %v8033_v45, 2 }
 0x339   : > { %v2291_v20 = vpop.f32.mrb[28].mxu0  ;;  %3875 = vmatprep.mubr.f32.mxu1 %v8031_v58 }
 0x33a   : > { %v2618_v26 = vmax.f32 %v2512_v61, 0.0  ;;  %v5981_v14 = vadd.f32 %v7879_v51, %v2291_v20  ;;  %v2293_v25 = vpop.f32.mrb[29].mxu0 }
 0x33b   : > { %v8037_v4 = vld [vmem:[#allocation2 + $0x98] sm:$0xff]  ;;  %v2689_v15 = vld [vmem:[#allocation2 + $0xa0] sm:$0x3] }
 0x33c   : > { %2650 = vst [vmem:[#allocation2 + $0xb1] sm:$0xff] %v2618_v26  ;;  %v2517_v44 = vadd.f32 %v5981_v14, %v7834_v36  ;;  %3876 = vmatmul.mubr.f32.gmra.mrb[54].mxu1 %v8007_v55  ;;  %v2834_v1 = vrot.slane %v8037_v4, 1  ;;  %v2978_v19 = vrot.slane %v8037_v4, 2  ;;  %v2980_v61 = vrot.slane %v2689_v15, 2 }
 0x33d   : > { %v2296_v56 = vpop.f32.mrb[30].mxu0  ;;  %v2836_v20 = vrot.slane %v2689_v15, 1 }
 0x33e   : > { %v2619_v25 = vmax.f32 %v2517_v44, 0.0  ;;  %v5982_v62 = vadd.f32 %v7879_v51, %v2296_v56  ;;  %v2298_v58 = vpop.f32.mrb[31].mxu0  ;;  %v8047_v13 = vsel %vm525_vm0, %v2833_v8, %v2834_v1  ;;  %v8050_v26 = vsel %vm670_vm1, %v2977_v17, %v2978_v19 }
 0x33f   : > { %9314 = vst [vmem:[#allocation32_spill] sm:$0xff] %v8047_v13  ;;  %3880 = vmatprep.mubr.f32.mxu1 %v8047_v13  ;;  %5467 = vmatprep.mubr.f32.mxu0 %v8050_v26  ;;  %v8055_v36 = vsel %vm670_vm1, %v2978_v19, %v2980_v61  ;;  %v8061_v56 = vsel %vm525_vm0, %v2834_v1, %v2836_v20  ;;  %v8063_v58 = vld [vmem:[#allocation2 + $0xa8] sm:$0xff] }
 0x340   : > { %2651 = vst [vmem:[#allocation2 + $0xc1] sm:$0xff] %v2619_v25  ;;  %v2522_v14 = vadd.f32 %v5982_v62, %v7832_v7  ;;  %3881 = vmatmul.mubr.f32.gmra.mrb[56].mxu1 %v8033_v45  ;;  %5468 = vmatmul.mubr.f32.gmra.mrb[72].mxu0 %v8055_v36  ;;  %9315 = vst [vmem:[#allocation33_spill] sm:$0xff] %v8061_v56  ;;  %v2838_v62 = vrot.slane %v8063_v58, 1  ;;  %v2982_v7 = vrot.slane %v8063_v58, 2 }
 0x341   : > { %v2301_v8 = vpop.f32.mrb[32].mxu0  ;;  %3885 = vmatprep.mubr.f32.mxu1 %v8061_v56 }
 0x342   : > { %v2620_v17 = vmax.f32 %v2522_v14, 0.0  ;;  %v5983_v15 = vadd.f32 %v7879_v51, %v2301_v8  ;;  %v2303_v44 = vpop.f32.mrb[33].mxu0 }
 0x343   : > { %v8067_v19 = vld [vmem:[#allocation2 + $0xb0] sm:$0xff]  ;;  %v2692_v61 = vld [vmem:[#allocation2 + $0xb8] sm:$0x3] }
 0x344   : > { %2652 = vst [vmem:[#allocation2 + $0xc9] sm:$0xff] %v2620_v17  ;;  %v2527_v1 = vadd.f32 %v5983_v15, %v7839_v6  ;;  %3886 = vmatmul.mubr.f32.gmra.mrb[58].mxu1 %v8037_v4  ;;  %v2839_v20 = vrot.slane %v8067_v19, 1  ;;  %v2983_v25 = vrot.slane %v8067_v19, 2  ;;  %v2985_v14 = vrot.slane %v2692_v61, 2 }
 0x345   : > { %v2306_v56 = vpop.f32.mrb[34].mxu0  ;;  %v2841_v8 = vrot.slane %v2692_v61, 1 }
 0x346   : > { %v2621_v44 = vmax.f32 %v2527_v1, 0.0  ;;  %v5984_v13 = vadd.f32 %v7879_v51, %v2306_v56  ;;  %v2308_v27 = vpop.f32.mrb[35].mxu0  ;;  %v8077_v12 = vsel %vm525_vm0, %v2838_v62, %v2839_v20  ;;  %v8080_v17 = vsel %vm670_vm1, %v2982_v7, %v2983_v25 }
 0x347   : > { %9316 = vst [vmem:[#allocation34_spill] sm:$0xff] %v8077_v12  ;;  %3890 = vmatprep.mubr.f32.mxu1 %v8077_v12  ;;  %5470 = vmatprep.mubr.f32.mxu0 %v8080_v17  ;;  %v8085_v6 = vsel %vm670_vm1, %v2983_v25, %v2985_v14  ;;  %v8091_v27 = vsel %vm525_vm0, %v2839_v20, %v2841_v8  ;;  %v8093_v56 = vld [vmem:[#allocation2 + $0xc0] sm:$0xff] }
 0x348   : > { %2653 = vst [vmem:[#allocation2 + $0xd9] sm:$0xff] %v2621_v44  ;;  %v2532_v15 = vadd.f32 %v5984_v13, %v7837_v54  ;;  %3891 = vmatmul.mubr.f32.gmra.mrb[60].mxu1 %v8063_v58  ;;  %5471 = vmatmul.mubr.f32.gmra.mrb[74].mxu0 %v8085_v6  ;;  %9317 = vst [vmem:[#allocation35_spill] sm:$0xff] %v8091_v27  ;;  %v2843_v13 = vrot.slane %v8093_v56, 1  ;;  %v2987_v54 = vrot.slane %v8093_v56, 2 }
 0x349   : > { %v2311_v62 = vpop.f32.mrb[36].mxu0  ;;  %3895 = vmatprep.mubr.f32.mxu1 %v8091_v27 }
 0x34a   : > { %v2622_v7 = vmax.f32 %v2532_v15, 0.0  ;;  %v5985_v61 = vadd.f32 %v7879_v51, %v2311_v62  ;;  %v2313_v1 = vpop.f32.mrb[37].mxu0 }
 0x34b   : > { %v8097_v25 = vld [vmem:[#allocation2 + $0xc8] sm:$0xff]  ;;  %v2695_v14 = vld [vmem:[#allocation2 + $0xd0] sm:$0x3] }
 0x34c   : > { %2654 = vst [vmem:[#allocation2 + $0xe1] sm:$0xff] %v2622_v7  ;;  %v2537_v20 = vadd.f32 %v5985_v61, %v7844_v42  ;;  %3896 = vmatmul.mubr.f32.gmra.mrb[62].mxu1 %v8067_v19  ;;  %v2844_v8 = vrot.slane %v8097_v25, 1  ;;  %v2988_v44 = vrot.slane %v8097_v25, 2  ;;  %v2990_v15 = vrot.slane %v2695_v14, 2 }
 0x34d   : > { %v2316_v27 = vpop.f32.mrb[38].mxu0  ;;  %v2846_v62 = vrot.slane %v2695_v14, 1 }
 0x34e   : > { %v2623_v1 = vmax.f32 %v2537_v20, 0.0  ;;  %v5986_v12 = vadd.f32 %v7879_v51, %v2316_v27  ;;  %v2318_v16 = vpop.f32.mrb[39].mxu0  ;;  %v8107_v29 = vsel %vm525_vm0, %v2843_v13, %v2844_v8  ;;  %v8110_v7 = vsel %vm670_vm1, %v2987_v54, %v2988_v44 }
 0x34f   : > { %9318 = vst [vmem:[#allocation36_spill] sm:$0xff] %v8107_v29  ;;  %3900 = vmatprep.mubr.f32.mxu1 %v8107_v29  ;;  %5473 = vmatprep.mubr.f32.mxu0 %v8110_v7  ;;  %v8115_v42 = vsel %vm670_vm1, %v2988_v44, %v2990_v15  ;;  %v8121_v16 = vsel %vm525_vm0, %v2844_v8, %v2846_v62  ;;  %v8123_v27 = vld [vmem:[#allocation2 + $0xd8] sm:$0xff] }
 0x350   : > { %2655 = vst [vmem:[#allocation2 + $0xf1] sm:$0xff] %v2623_v1  ;;  %v2542_v61 = vadd.f32 %v5986_v12, %v7842_v5  ;;  %3901 = vmatmul.mubr.f32.gmra.mrb[64].mxu1 %v8093_v56  ;;  %5474 = vmatmul.mubr.f32.gmra.mrb[76].mxu0 %v8115_v42  ;;  %9319 = vst [vmem:[#allocation37_spill] sm:$0xff] %v8121_v16  ;;  %v2848_v12 = vrot.slane %v8123_v27, 1  ;;  %v2992_v5 = vrot.slane %v8123_v27, 2 }
 0x351   : > { %v2321_v13 = vpop.f32.mrb[40].mxu0  ;;  %3905 = vmatprep.mubr.f32.mxu1 %v8121_v16 }
 0x352   : > { %v2624_v54 = vmax.f32 %v2542_v61, 0.0  ;;  %v5987_v14 = vadd.f32 %v7879_v51, %v2321_v13  ;;  %v2323_v20 = vpop.f32.mrb[41].mxu0 }
 0x353   : > { %v8127_v44 = vld [vmem:[#allocation2 + $0xe0] sm:$0xff]  ;;  %v2698_v15 = vld [vmem:[#allocation2 + $0xe8] sm:$0x3] }
 0x354   : > { %2656 = vst [vmem:[#allocation2 + $0xf9] sm:$0xff] %v2624_v54  ;;  %v2547_v8 = vadd.f32 %v5987_v14, %v7849_v39  ;;  %3906 = vmatmul.mubr.f32.gmra.mrb[66].mxu1 %v8097_v25  ;;  %v2849_v62 = vrot.slane %v8127_v44, 1  ;;  %v2993_v1 = vrot.slane %v8127_v44, 2  ;;  %v2995_v61 = vrot.slane %v2698_v15, 2 }
 0x355   : > { %v2326_v16 = vpop.f32.mrb[42].mxu0  ;;  %v2851_v13 = vrot.slane %v2698_v15, 1 }
 0x356   : > { %v2625_v20 = vmax.f32 %v2547_v8, 0.0  ;;  %v5988_v29 = vadd.f32 %v7879_v51, %v2326_v16  ;;  %v2328_v41 = vpop.f32.mrb[43].mxu0  ;;  %v8137_v9 = vsel %vm525_vm0, %v2848_v12, %v2849_v62  ;;  %v8140_v54 = vsel %vm670_vm1, %v2992_v5, %v2993_v1 }
 0x357   : > { %9320 = vst [vmem:[#allocation38_spill] sm:$0xff] %v8137_v9  ;;  %3910 = vmatprep.mubr.f32.mxu1 %v8137_v9  ;;  %5476 = vmatprep.mubr.f32.mxu0 %v8140_v54  ;;  %v8145_v39 = vsel %vm670_vm1, %v2993_v1, %v2995_v61  ;;  %v8151_v41 = vsel %vm525_vm0, %v2849_v62, %v2851_v13  ;;  %v8153_v16 = vld [vmem:[#allocation2 + $0xf0] sm:$0xff] }
 0x358   : > { %2657 = vst [vmem:[#allocation2 + $0x109] sm:$0xff] %v2625_v20  ;;  %v2552_v14 = vadd.f32 %v5988_v29, %v7847_v63  ;;  %3911 = vmatmul.mubr.f32.gmra.mrb[68].mxu1 %v8123_v27  ;;  %5477 = vmatmul.mubr.f32.gmra.mrb[78].mxu0 %v8145_v39  ;;  %9321 = vst [vmem:[#allocation39_spill] sm:$0xff] %v8151_v41  ;;  %v2853_v63 = vrot.slane %v8153_v16, 1  ;;  %v2997_v29 = vrot.slane %v8153_v16, 2 }
 0x359   : > { %v2331_v12 = vpop.f32.mrb[44].mxu0  ;;  %3915 = vmatprep.mubr.f32.mxu1 %v8151_v41 }
 0x35a   : > { %v2626_v5 = vmax.f32 %v2552_v14, 0.0  ;;  %v5989_v15 = vadd.f32 %v7879_v51, %v2331_v12  ;;  %v2333_v8 = vpop.f32.mrb[45].mxu0 }
 0x35b   : > { %v8157_v1 = vld [vmem:[#allocation2 + $0xf8] sm:$0xff]  ;;  %v2701_v61 = vld [vmem:[#allocation2 + $0x100] sm:$0x3] }
 0x35c   : > { %2658 = vst [vmem:[#allocation2 + $0x111] sm:$0xff] %v2626_v5  ;;  %v2557_v62 = vadd.f32 %v5989_v15, %v7854_v40  ;;  %3916 = vmatmul.mubr.f32.gmra.mrb[70].mxu1 %v8127_v44  ;;  %v2854_v13 = vrot.slane %v8157_v1, 1  ;;  %v2998_v20 = vrot.slane %v8157_v1, 2  ;;  %v3000_v14 = vrot.slane %v2701_v61, 2 }
 0x35d   : > { %v2336_v41 = vpop.f32.mrb[46].mxu0  ;;  %v2856_v12 = vrot.slane %v2701_v61, 1 }
 0x35e   : > { %v2627_v8 = vmax.f32 %v2557_v62, 0.0  ;;  %v5990_v9 = vadd.f32 %v7879_v51, %v2336_v41  ;;  %v2338_v43 = vpop.f32.mrb[47].mxu0  ;;  %v8167_v35 = vsel %vm525_vm0, %v2853_v63, %v2854_v13  ;;  %v8170_v5 = vsel %vm670_vm1, %v2997_v29, %v2998_v20 }
 0x35f   : > { %9322 = vst [vmem:[#allocation40_spill] sm:$0xff] %v8167_v35  ;;  %9323 = vst [vmem:[#allocation41_spill] sm:$0xff] %v8170_v5  ;;  %3920 = vmatprep.mubr.f32.mxu1 %v8167_v35  ;;  %5479 = vmatprep.mubr.f32.mxu0 %v8170_v5  ;;  %v8175_v40 = vsel %vm670_vm1, %v2998_v20, %v3000_v14  ;;  %v8181_v43 = vsel %vm525_vm0, %v2854_v13, %v2856_v12  ;;  %v8183_v41 = vld [vmem:[#allocation2 + $0x108] sm:$0xff] }
 0x360   : > { %9324 = vst [vmem:[#allocation42_spill] sm:$0xff] %v8175_v40  ;;  %2659 = vst [vmem:[#allocation2 + $0x121] sm:$0xff] %v2627_v8  ;;  %v2562_v15 = vadd.f32 %v5990_v9, %v7852_v21  ;;  %3921 = vmatmul.mubr.f32.gmra.mrb[72].mxu1 %v8153_v16  ;;  %5480 = vmatmul.mubr.f32.gmra.mrb[80].mxu0 %v8175_v40  ;;  %v2858_v21 = vrot.slane %v8183_v41, 1  ;;  %v3002_v9 = vrot.slane %v8183_v41, 2 }
 0x361   : > { %9325 = vst [vmem:[#allocation43_spill] sm:$0xff] %v8181_v43  ;;  %v2341_v63 = vpop.f32.mrb[48].mxu0  ;;  %3925 = vmatprep.mubr.f32.mxu1 %v8181_v43 }
 0x362   : > { %v2628_v29 = vmax.f32 %v2562_v15, 0.0  ;;  %v5991_v61 = vadd.f32 %v7879_v51, %v2341_v63  ;;  %v2343_v62 = vpop.f32.mrb[49].mxu0 }
 0x363   : > { %v8187_v20 = vld [vmem:[#allocation2 + $0x110] sm:$0xff]  ;;  %v2704_v14 = vld [vmem:[#allocation2 + $0x118] sm:$0x3] }
 0x364   : > { %2660 = vst [vmem:[#allocation2 + $0x129] sm:$0xff] %v2628_v29  ;;  %v2567_v13 = vadd.f32 %v5991_v61, %v7859_v30  ;;  %3926 = vmatmul.mubr.f32.gmra.mrb[74].mxu1 %v8157_v1  ;;  %v2859_v12 = vrot.slane %v8187_v20, 1  ;;  %v3003_v8 = vrot.slane %v8187_v20, 2  ;;  %v3005_v15 = vrot.slane %v2704_v14, 2 }
 0x365   : > { %v2346_v43 = vpop.f32.mrb[50].mxu0  ;;  %v2861_v63 = vrot.slane %v2704_v14, 1 }
 0x366   : > { %v2629_v62 = vmax.f32 %v2567_v13, 0.0  ;;  %v5992_v35 = vadd.f32 %v7879_v51, %v2346_v43  ;;  %v2348_v40 = vpop.f32.mrb[51].mxu0  ;;  %v8197_v5 = vsel %vm525_vm0, %v2858_v21, %v2859_v12  ;;  %v8200_v29 = vsel %vm670_vm1, %v3002_v9, %v3003_v8 }
 0x367   : > { %9326 = vst [vmem:[#allocation44_spill] sm:$0xff] %v8197_v5  ;;  %9327 = vst [vmem:[#allocation45_spill] sm:$0xff] %v8200_v29  ;;  %3930 = vmatprep.mubr.f32.mxu1 %v8197_v5  ;;  %5482 = vmatprep.mubr.f32.mxu0 %v8200_v29  ;;  %v8205_v30 = vsel %vm670_vm1, %v3003_v8, %v3005_v15  ;;  %v8211_v40 = vsel %vm525_vm0, %v2859_v12, %v2861_v63  ;;  %v8213_v43 = vld [vmem:[#allocation2 + $0x120] sm:$0xff] }
 0x368   : > { %9328 = vst [vmem:[#allocation46_spill] sm:$0xff] %v8205_v30  ;;  %2661 = vst [vmem:[#allocation2 + $0x139] sm:$0xff] %v2629_v62  ;;  %v2572_v61 = vadd.f32 %v5992_v35, %v7857_v38  ;;  %3931 = vmatmul.mubr.f32.gmra.mrb[76].mxu1 %v8183_v41  ;;  %5483 = vmatmul.mubr.f32.gmra.mrb[82].mxu0 %v8205_v30  ;;  %v2863_v38 = vrot.slane %v8213_v43, 1  ;;  %v3007_v35 = vrot.slane %v8213_v43, 2 }
 0x369   : > { %9329 = vst [vmem:[#allocation47_spill] sm:$0xff] %v8211_v40  ;;  %v2351_v21 = vpop.f32.mrb[52].mxu0  ;;  %3935 = vmatprep.mubr.f32.mxu1 %v8211_v40 }
 0x36a   : > { %v2630_v9 = vmax.f32 %v2572_v61, 0.0  ;;  %v5993_v14 = vadd.f32 %v7879_v51, %v2351_v21  ;;  %v2353_v13 = vpop.f32.mrb[53].mxu0 }
 0x36b   : > { %v8217_v8 = vld [vmem:[#allocation2 + $0x128] sm:$0xff]  ;;  %v2707_v15 = vld [vmem:[#allocation2 + $0x130] sm:$0x3] }
 0x36c   : > { %2662 = vst [vmem:[#allocation2 + $0x141] sm:$0xff] %v2630_v9  ;;  %v2577_v12 = vadd.f32 %v5993_v14, %v7864_v57  ;;  %3936 = vmatmul.mubr.f32.gmra.mrb[78].mxu1 %v8187_v20  ;;  %v2864_v63 = vrot.slane %v8217_v8, 1  ;;  %v3008_v62 = vrot.slane %v8217_v8, 2  ;;  %v3010_v61 = vrot.slane %v2707_v15, 2 }
 0x36d   : > { %v2356_v40 = vpop.f32.mrb[54].mxu0  ;;  %v2866_v21 = vrot.slane %v2707_v15, 1 }
 0x36e   : > { %v2631_v13 = vmax.f32 %v2577_v12, 0.0  ;;  %v5994_v5 = vadd.f32 %v7879_v51, %v2356_v40  ;;  %v2358_v30 = vpop.f32.mrb[55].mxu0  ;;  %v8227_v29 = vsel %vm525_vm0, %v2863_v38, %v2864_v63  ;;  %v8230_v9 = vsel %vm670_vm1, %v3007_v35, %v3008_v62 }
 0x36f   : > { %9330 = vst [vmem:[#allocation48_spill] sm:$0xff] %v8227_v29  ;;  %9331 = vst [vmem:[#allocation49_spill] sm:$0xff] %v8230_v9  ;;  %3940 = vmatprep.mubr.f32.mxu1 %v8227_v29  ;;  %5485 = vmatprep.mubr.f32.mxu0 %v8230_v9  ;;  %v8235_v57 = vsel %vm670_vm1, %v3008_v62, %v3010_v61  ;;  %v8241_v30 = vsel %vm525_vm0, %v2864_v63, %v2866_v21  ;;  %v8243_v40 = vld [vmem:[#allocation2 + $0x138] sm:$0xff] }
 0x370   : > { %9332 = vst [vmem:[#allocation50_spill] sm:$0xff] %v8235_v57  ;;  %2663 = vst [vmem:[#allocation2 + $0x151] sm:$0xff] %v2631_v13  ;;  %v2582_v14 = vadd.f32 %v5994_v5, %v7862_v52  ;;  %3941 = vmatmul.mubr.f32.gmra.mrb[80].mxu1 %v8213_v43  ;;  %5486 = vmatmul.mubr.f32.gmra.mrb[84].mxu0 %v8235_v57  ;;  %v2868_v52 = vrot.slane %v8243_v40, 1  ;;  %v3012_v5 = vrot.slane %v8243_v40, 2 }
 0x371   : > { %9333 = vst [vmem:[#allocation51_spill] sm:$0xff] %v8241_v30  ;;  %v2361_v38 = vpop.f32.mrb[56].mxu0  ;;  %3945 = vmatprep.mubr.f32.mxu1 %v8241_v30 }
 0x372   : > { %v2632_v35 = vmax.f32 %v2582_v14, 0.0  ;;  %v5995_v15 = vadd.f32 %v7879_v51, %v2361_v38  ;;  %v2363_v12 = vpop.f32.mrb[57].mxu0 }
 0x373   : > { %v8247_v62 = vld [vmem:[#allocation2 + $0x140] sm:$0xff]  ;;  %v2710_v61 = vld [vmem:[#allocation2 + $0x148] sm:$0x3] }
 0x374   : > { %2664 = vst [vmem:[#allocation2 + $0x159] sm:$0xff] %v2632_v35  ;;  %v2587_v63 = vadd.f32 %v5995_v15, %v7869_v46  ;;  %3946 = vmatmul.mubr.f32.gmra.mrb[82].mxu1 %v8217_v8  ;;  %v2869_v21 = vrot.slane %v8247_v62, 1  ;;  %v3013_v13 = vrot.slane %v8247_v62, 2  ;;  %v3015_v14 = vrot.slane %v2710_v61, 2 }
 0x375   : > { %v2366_v30 = vpop.f32.mrb[58].mxu0  ;;  %v2871_v38 = vrot.slane %v2710_v61, 1 }
 0x376   : > { %v2633_v12 = vmax.f32 %v2587_v63, 0.0  ;;  %v5996_v29 = vadd.f32 %v7879_v51, %v2366_v30  ;;  %v2368_v57 = vpop.f32.mrb[59].mxu0  ;;  %v8257_v9 = vsel %vm525_vm0, %v2868_v52, %v2869_v21  ;;  %v8260_v35 = vsel %vm670_vm1, %v3012_v5, %v3013_v13 }
 0x377   : > { %9334 = vst [vmem:[#allocation52_spill] sm:$0xff] %v8257_v9  ;;  %3950 = vmatprep.mubr.f32.mxu1 %v8257_v9  ;;  %5488 = vmatprep.mubr.f32.mxu0 %v8260_v35  ;;  %v8265_v46 = vsel %vm670_vm1, %v3013_v13, %v3015_v14  ;;  %v8271_v57 = vsel %vm525_vm0, %v2869_v21, %v2871_v38  ;;  %v8274_v52 = vld [vmem:[#allocation2 + $0x150] sm:$0xff]  ;;  %v3672_v9 = vld [vmem:[#allocation9 + $0x218] sm:$0xff] }
 0x378   : > { %2665 = vst [vmem:[#allocation2 + $0x169] sm:$0xff] %v2633_v12  ;;  %v2592_v15 = vadd.f32 %v5996_v29, %v7867_v2  ;;  %3951 = vmatmul.mubr.f32.gmra.mrb[84].mxu1 %v8243_v40  ;;  %5489 = vmatmul.mubr.f32.gmra.mrb[86].mxu0 %v8265_v46  ;;  %9335 = vst [vmem:[#allocation53_spill] sm:$0xff] %v8271_v57  ;;  %v2873_v29 = vrot.slane %v8274_v52, 1 }
 0x379   : > { %v2371_v30 = vpop.f32.mrb[60].mxu0  ;;  %3955 = vmatprep.mubr.f32.mxu1 %v8271_v57 }
 0x37a   : > { %v2634_v5 = vmax.f32 %v2592_v15, 0.0  ;;  %v5997_v61 = vadd.f32 %v7879_v51, %v2371_v30  ;;  %v2373_v63 = vpop.f32.mrb[61].mxu0 }
 0x37b   : > { %v8277_v13 = vld [vmem:[#allocation2 + $0x158] sm:$0xff]  ;;  %v8279_v14 = vld [vmem:[#allocation2 + $0x160] sm:$0x3] }
 0x37c   : > { %2666 = vst [vmem:[#allocation2 + $0x171] sm:$0xff] %v2634_v5  ;;  %v2597_v2 = vadd.f32 %v5997_v61, %v7874_v0  ;;  %3956 = vmatmul.mubr.f32.gmra.mrb[86].mxu1 %v8247_v62  ;;  %v2874_v21 = vrot.slane %v8277_v13, 1  ;;  %v2876_v38 = vrot.slane %v8279_v14, 1 }
 0x37d   : > { %v2376_v12 = vpop.f32.mrb[62].mxu0 }
 0x37e   : > { %v2635_v15 = vmax.f32 %v2597_v2, 0.0  ;;  %v5998_v30 = vadd.f32 %v7879_v51, %v2376_v12  ;;  %v2378_v63 = vpop.f32.mrb[63].mxu0  ;;  %v8288_v57 = vsel %vm525_vm0, %v2873_v29, %v2874_v21  ;;  %v8294_v5 = vsel %vm525_vm0, %v2874_v21, %v2876_v38 }
 0x37f   : > { %9336 = vst [vmem:[#allocation54_spill] sm:$0xff] %v8288_v57  ;;  %3960 = vmatprep.mubr.f32.mxu1 %v8288_v57  ;;  %9337 = vst [vmem:[#allocation55_spill] sm:$0xff] %v8294_v5  ;;  %v8297_v61 = vld [vmem:[#allocation2 + $0x168] sm:$0xff]  ;;  %v3671_v57 = vld [vmem:[#allocation9 + $0x210] sm:$0xff] }
 0x380   : > { %2667 = vst [vmem:[#allocation2 + $0x181] sm:$0xff] %v2635_v15  ;;  %v2602_v0 = vadd.f32 %v5998_v30, %v7872_v59  ;;  %3961 = vmatmul.mubr.f32.gmra.mrb[88].mxu1 %v8274_v52  ;;  %v2878_v29 = vrot.slane %v8297_v61, 1  ;;  %v8316_v30 = vld [vmem:[#allocation2] sm:$0xff] }
 0x381   : > { %3965 = vmatprep.mubr.f32.mxu1 %v8294_v5  ;;  %9341 = vst [vmem:[#allocation59_spill] sm:$0xff] %v8316_v30  ;;  %v8319_v63 = vrot.slane %v8316_v30, 2  ;;  %v3673_v30 = vld [vmem:[#allocation9 + $0x220] sm:$0xff] }
 0x382   : > { %v2636_v2 = vmax.f32 %v2602_v0, 0.0  ;;  %v3669_v0 = vld [vmem:[#allocation9 + $0x200] sm:$0xff] }
 0x383   : > { %v8299_v51 = vld [vmem:[#allocation2 + $0x170] sm:$0xff]  ;;  %v8301_v12 = vld [vmem:[#allocation2 + $0x178] sm:$0x3] }
 0x384   : > { %9338 = vst [vmem:[#allocation56_spill] sm:$0xff] %v8301_v12  ;;  %2668 = vst [vmem:[#allocation2 + $0x189] sm:$0xff] %v2636_v2  ;;  %3966 = vmatmul.mubr.f32.gmra.mrb[90].mxu1 %v8277_v13  ;;  %v2879_v59 = vrot.slane %v8299_v51, 1  ;;  %v2881_v15 = vrot.slane %v8301_v12, 1  ;;  %v3670_v2 = vld [vmem:[#allocation9 + $0x208] sm:$0xff]  ;;  %v2953_v12 = vrot.slane %v7895_v47, 2 }
 0x386   : > { %v8308_v21 = vsel %vm525_vm0, %v2878_v29, %v2879_v59  ;;  %v8313_v38 = vsel %vm525_vm0, %v2879_v59, %v2881_v15  ;;  %v5824_v29 = vpack.c.bf16 %v3670_v2, %v3669_v0  ;;  %v5827_v15 = vpack.c.bf16 %v3672_v9, %v3671_v57  ;;  %v3675_v2 = vld [vmem:[#allocation9 + $0x230] sm:$0xff] }
 0x387   : > { %9339 = vst [vmem:[#allocation57_spill] sm:$0xff] %v8308_v21  ;;  %3970 = vmatprep.mubr.f32.mxu1 %v8308_v21  ;;  %9340 = vst [vmem:[#allocation58_spill] sm:$0xff] %v8313_v38  ;;  %v6524_v21 = vld [vmem:[#allocation2 + $0x10] sm:$0x3]  ;;  %v2955_v9 = vrot.slane %v7897_v3, 2  ;;  %v3679_v3 = vld [vmem:[#allocation9 + $0x250] sm:$0xff] }
 0x388   : > { %3971 = vmatmul.mubr.f32.gmra.mrb[92].mxu1 %v8297_v61  ;;  %v2950_v5 = vrot.slane %v6524_v21, 2  ;;  %v2952_v21 = vrot.slane %v7892_v24, 2 }
 0x389   : > { %3975 = vmatprep.mubr.f32.mxu1 %v8313_v38  ;;  %v3674_v38 = vld [vmem:[#allocation9 + $0x228] sm:$0xff]  ;;  %v8340_v57 = vsel %vm670_vm1, %v2953_v12, %v2955_v9  ;;  %v3688_v9 = vld [vmem:[#allocation9 + $0x298] sm:$0xff] }
 0x38a   : > { %v2951_v59 = vsel %vm670_vm1, %v8319_v63, %v2950_v5  ;;  %v5830_v0 = vpack.c.bf16 %v3674_v38, %v3673_v30  ;;  %v8333_v5 = vsel %vm670_vm1, %v2952_v21, %v2953_v12  ;;  %v3680_v30 = vld [vmem:[#allocation9 + $0x258] sm:$0xff]  ;;  %v3681_v12 = vld [vmem:[#allocation9 + $0x260] sm:$0xff] }
 0x38b   : > { %v3684_v21 = vld [vmem:[#allocation9 + $0x278] sm:$0xff] }
 0x38c   : > { %3976 = vmatmul.mubr.f32.gmra.mrb[94].mxu1 %v8299_v51 }
 0x38d   : > { %4045 = vmatprep.mubr.f32.mxu1 %v7892_v24  ;;  %v3677_v24 = vld [vmem:[#allocation9 + $0x240] sm:$0xff] }
 0x390   : > { %4046 = vmatmul.mubr.f32.vlgmr.msra.gmra.mrb[32].mxu1 %v8319_v63 }
 0x391   : > { %4050 = vmatprep.mubr.f32.mxu1 %v7895_v47  ;;  %5825 = vmatpush1.bf16.msra.mxu1 %v5824_v29  ;;  %v3676_v29 = vld [vmem:[#allocation9 + $0x238] sm:$0xff] }
 0x392   : > { %5826 = vmatprep.subr.bf16.mxu1 %v9267_v10  ;;  %v5833_v47 = vpack.c.bf16 %v3676_v29, %v3675_v2  ;;  %v3686_v2 = vld [vmem:[#allocation9 + $0x288] sm:$0xff]  ;;  %v3687_v29 = vld [vmem:[#allocation9 + $0x290] sm:$0xff] }
 0x394   : > { %4051 = vmatmul.mubr.f32.gmra.mrb[34].mxu1 %v2951_v59  ;;  %v3682_v59 = vld [vmem:[#allocation9 + $0x268] sm:$0xff] }
 0x395   : > { %4055 = vmatprep.mubr.f32.mxu1 %v7913_v11  ;;  %5828 = vmatpush1.bf16.msra.mxu1 %v5827_v15  ;;  %v3678_v11 = vld [vmem:[#allocation9 + $0x248] sm:$0xff]  ;;  %v3683_v15 = vld [vmem:[#allocation9 + $0x270] sm:$0xff] }
 0x396   : > { %5829 = vmatprep.subr.bf16.mxu1 %v9267_v10  ;;  %v5836_v38 = vpack.c.bf16 %v3678_v11, %v3677_v24  ;;  %v3690_v24 = vld [vmem:[#allocation9 + $0x2a8] sm:$0xff]  ;;  %v3691_v11 = vld [vmem:[#allocation9 + $0x2b0] sm:$0xff] }
 0x398   : > { %4056 = vmatmul.mubr.f32.gmra.mrb[36].mxu1 %v8333_v5 }
 0x399   : > { %4060 = vmatprep.mubr.f32.mxu1 %v7917_v53  ;;  %5831 = vmatpush1.bf16.msra.mxu1 %v5830_v0  ;;  %v5839_v53 = vpack.c.bf16 %v3680_v30, %v3679_v3  ;;  %v3685_v0 = vld [vmem:[#allocation9 + $0x280] sm:$0xff]  ;;  %v3694_v30 = vld [vmem:[#allocation9 + $0x2c8] sm:$0xff] }
 0x39a   : > { %5832 = vmatprep.subr.bf16.mxu1 %v9267_v10  ;;  %v3693_v3 = vld [vmem:[#allocation9 + $0x2c0] sm:$0xff] }
 0x39c   : > { %4061 = vmatmul.mubr.f32.gmra.mrb[38].mxu1 %v8340_v57 }
 0x39d   : > { %4065 = vmatprep.mubr.f32.mxu1 %v7943_v18  ;;  %5834 = vmatpush1.bf16.msra.mxu1 %v5833_v47  ;;  %v5842_v18 = vpack.c.bf16 %v3682_v59, %v3681_v12  ;;  %v3689_v47 = vld [vmem:[#allocation9 + $0x2a0] sm:$0xff]  ;;  %v3696_v12 = vld [vmem:[#allocation9 + $0x2d8] sm:$0xff] }
 0x39e   : > { %5835 = vmatprep.subr.bf16.mxu1 %v9267_v10  ;;  %v3697_v59 = vld [vmem:[#allocation9 + $0x2e0] sm:$0xff] }
 0x3a0   : > { %4066 = vmatmul.mubr.f32.gmra.mrb[40].mxu1 %v7930_v60 }
 0x3a1   : > { %4070 = vmatprep.mubr.f32.mxu1 %v7947_v33  ;;  %5837 = vmatpush1.bf16.msra.mxu1 %v5836_v38  ;;  %v5845_v33 = vpack.c.bf16 %v3684_v21, %v3683_v15  ;;  %v3692_v38 = vld [vmem:[#allocation9 + $0x2b8] sm:$0xff]  ;;  %v3699_v15 = vld [vmem:[#allocation9 + $0x2f0] sm:$0xff] }
 0x3a2   : > { %5838 = vmatprep.subr.bf16.mxu1 %v9267_v10  ;;  %v3700_v21 = vld [vmem:[#allocation9 + $0x2f8] sm:$0xff] }
 0x3a4   : > { %4071 = vmatmul.mubr.f32.gmra.mrb[42].mxu1 %v7935_v31 }
 0x3a5   : > { %4075 = vmatprep.mubr.f32.mxu1 %v7973_v32  ;;  %5840 = vmatpush1.bf16.msra.mxu1 %v5839_v53  ;;  %v5848_v32 = vpack.c.bf16 %v3686_v2, %v3685_v0  ;;  %v3695_v53 = vld [vmem:[#allocation9 + $0x2d0] sm:$0xff]  ;;  %v3018_v0 = vrot.slane %v8277_v13, 2 }
 0x3a6   : > { %5841 = vmatprep.subr.bf16.mxu1 %v9267_v10 }
 0x3a8   : > { %4076 = vmatmul.mubr.f32.gmra.mrb[44].mxu1 %v7960_v28 }
 0x3a9   : > { %4080 = vmatprep.mubr.f32.mxu1 %v7977_v22  ;;  %5843 = vmatpush1.bf16.msra.mxu1 %v5842_v18  ;;  %v5851_v22 = vpack.c.bf16 %v3688_v9, %v3687_v29  ;;  %v3698_v18 = vld [vmem:[#allocation9 + $0x2e8] sm:$0xff]  ;;  %v3020_v9 = vrot.slane %v8279_v14, 2  ;;  %v3022_v14 = vrot.slane %v8297_v61, 2 }
 0x3aa   : > { %5844 = vmatprep.subr.bf16.mxu1 %v9267_v10 }
 0x3ac   : > { %4081 = vmatmul.mubr.f32.gmra.mrb[46].mxu1 %v7965_v48 }
 0x3ad   : > { %4085 = vmatprep.mubr.f32.mxu1 %v8003_v37  ;;  %5846 = vmatpush1.bf16.msra.mxu1 %v5845_v33  ;;  %v5854_v37 = vpack.c.bf16 %v3690_v24, %v3689_v47  ;;  %v8424_v47 = vsel %vm670_vm1, %v3018_v0, %v3020_v9  ;;  %v3023_v24 = vrot.slane %v8299_v51, 2 }
 0x3ae   : > { %5847 = vmatprep.subr.bf16.mxu1 %v9267_v10 }
 0x3b0   : > { %4086 = vmatmul.mubr.f32.gmra.mrb[48].mxu1 %v7990_v34 }
 0x3b1   : > { %4090 = vmatprep.mubr.f32.mxu1 %v8007_v55  ;;  %5849 = vmatpush1.bf16.msra.mxu1 %v5848_v32  ;;  %v5857_v55 = vpack.c.bf16 %v3692_v38, %v3691_v11  ;;  %v3017_v32 = vrot.slane %v8274_v52, 2  ;;  %v8430_v11 = vld [vmem:[#allocation2 + $0x180] sm:$0xff]  ;;  %v8435_v38 = vsel %vm670_vm1, %v3022_v14, %v3023_v24 }
 0x3b2   : > { %5850 = vmatprep.subr.bf16.mxu1 %v9267_v10 }
 0x3b3   : > { %v8416_v29 = vsel %vm670_vm1, %v3017_v32, %v3018_v0  ;;  %v3705_v0 = vld [vmem:[#allocation9 + $0x320] sm:$0xff]  ;;  %v3706_v32 = vld [vmem:[#allocation9 + $0x328] sm:$0xff] }
 0x3b4   : > { %4091 = vmatmul.mubr.f32.gmra.mrb[50].mxu1 %v7995_v50 }
 0x3b5   : > { %4095 = vmatprep.mubr.f32.mxu1 %v8033_v45  ;;  %5852 = vmatpush1.bf16.msra.mxu1 %v5851_v22  ;;  %v5860_v45 = vpack.c.bf16 %v3694_v30, %v3693_v3  ;;  %v8439_v30 = vld [vmem:[#allocation2 + $0x188] sm:$0xff] }
 0x3b6   : > { %5853 = vmatprep.subr.bf16.mxu1 %v9267_v10 }
 0x3b8   : > { %4096 = vmatmul.mubr.f32.gmra.mrb[52].mxu1 %v8020_v23 }
 0x3b9   : > { %4100 = vmatprep.mubr.f32.mxu1 %v8037_v4  ;;  %5855 = vmatpush1.bf16.msra.mxu1 %v5854_v37  ;;  %v5863_v4 = vpack.c.bf16 %v3696_v12, %v3695_v53  ;;  %v3702_v53 = vld [vmem:[#allocation9 + $0x308] sm:$0xff] }
 0x3ba   : > { %5856 = vmatprep.subr.bf16.mxu1 %v9267_v10 }
 0x3bc   : > { %4101 = vmatmul.mubr.f32.gmra.mrb[54].mxu1 %v8025_v49 }
 0x3bd   : > { %4105 = vmatprep.mubr.f32.mxu1 %v8063_v58  ;;  %5858 = vmatpush1.bf16.msra.mxu1 %v5857_v55  ;;  %v5866_v58 = vpack.c.bf16 %v3698_v18, %v3697_v59  ;;  %v9348_v55 = vld [vmem:[#allocation56_spill] sm:$0xff] }
 0x3be   : > { %5859 = vmatprep.subr.bf16.mxu1 %v9267_v10  ;;  %v3025_v3 = vrot.slane %v9348_v55, 2  ;;  %v3707_v55 = vld [vmem:[#allocation9 + $0x330] sm:$0xff] }
 0x3c0   : > { %4106 = vmatmul.mubr.f32.gmra.mrb[56].mxu1 %v8050_v26 }
 0x3c1   : > { %4110 = vmatprep.mubr.f32.mxu1 %v8067_v19  ;;  %5861 = vmatpush1.bf16.msra.mxu1 %v5860_v45  ;;  %v5869_v19 = vpack.c.bf16 %v3700_v21, %v3699_v15  ;;  %v3701_v45 = vld [vmem:[#allocation9 + $0x300] sm:$0xff]  ;;  %v3704_v15 = vld [vmem:[#allocation9 + $0x318] sm:$0xff] }
 0x3c2   : > { %5862 = vmatprep.subr.bf16.mxu1 %v9267_v10  ;;  %v5872_v18 = vpack.c.bf16 %v3702_v53, %v3701_v45  ;;  %v9349_v21 = vld [vmem:[#allocation22_spill] sm:$0xff] }
 0x3c3   : > { %v3709_v53 = vld [vmem:[#allocation9 + $0x340] sm:$0xff] }
 0x3c4   : > { %4111 = vmatmul.mubr.f32.gmra.mrb[58].mxu1 %v8055_v36 }
 0x3c5   : > { %4115 = vmatprep.mubr.f32.mxu1 %v8093_v56  ;;  %5864 = vmatpush1.bf16.msra.mxu1 %v5863_v4  ;;  %v9342_v56 = vld [vmem:[#allocation41_spill] sm:$0xff]  ;;  %v8445_v4 = vsel %vm670_vm1, %v3023_v24, %v3025_v3  ;;  %v9351_v24 = vld [vmem:[#allocation23_spill] sm:$0xff]  ;;  %v9352_v3 = vld [vmem:[#allocation24_spill] sm:$0xff] }
 0x3c6   : > { %5865 = vmatprep.subr.bf16.mxu1 %v9267_v10 }
 0x3c8   : > { %4116 = vmatmul.mubr.f32.gmra.mrb[60].mxu1 %v8080_v17 }
 0x3c9   : > { %4120 = vmatprep.mubr.f32.mxu1 %v8097_v25  ;;  %5867 = vmatpush1.bf16.msra.mxu1 %v5866_v58  ;;  %v9343_v25 = vld [vmem:[#allocation42_spill] sm:$0xff]  ;;  %v3703_v58 = vld [vmem:[#allocation9 + $0x310] sm:$0xff] }
 0x3ca   : > { %5868 = vmatprep.subr.bf16.mxu1 %v9267_v10 }
 0x3cc   : > { %4121 = vmatmul.mubr.f32.gmra.mrb[62].mxu1 %v8085_v6 }
 0x3cd   : > { %4125 = vmatprep.mubr.f32.mxu1 %v8123_v27  ;;  %5870 = vmatpush1.bf16.msra.mxu1 %v5869_v19  ;;  %v9344_v27 = vld [vmem:[#allocation45_spill] sm:$0xff]  ;;  %v5875_v19 = vpack.c.bf16 %v3704_v15, %v3703_v58 }
 0x3ce   : > { %5871 = vmatprep.subr.bf16.mxu1 %v9267_v10  ;;  %v9354_v15 = vld [vmem:[#allocation25_spill] sm:$0xff] }
 0x3d0   : > { %4126 = vmatmul.mubr.f32.gmra.mrb[64].mxu1 %v8110_v7 }
 0x3d1   : > { %4130 = vmatprep.mubr.f32.mxu1 %v8127_v44  ;;  %v9345_v44 = vld [vmem:[#allocation46_spill] sm:$0xff] }
 0x3d4   : > { %4131 = vmatmul.mubr.f32.gmra.mrb[66].mxu1 %v8115_v42 }
 0x3d5   : > { %4135 = vmatprep.mubr.f32.mxu1 %v8153_v16  ;;  %v9346_v16 = vld [vmem:[#allocation49_spill] sm:$0xff] }
 0x3d8   : > { %4136 = vmatmul.mubr.f32.gmra.mrb[68].mxu1 %v8140_v54 }
 0x3d9   : > { %4140 = vmatprep.mubr.f32.mxu1 %v8157_v1 }
 0x3dc   : > { %4141 = vmatmul.mubr.f32.gmra.mrb[70].mxu1 %v8145_v39 }
 0x3dd   : > { %4145 = vmatprep.mubr.f32.mxu1 %v8183_v41  ;;  %v9347_v41 = vld [vmem:[#allocation50_spill] sm:$0xff] }
 0x3e0   : > { %4146 = vmatmul.mubr.f32.gmra.mrb[72].mxu1 %v9342_v56 }
 0x3e1   : > { %4150 = vmatprep.mubr.f32.mxu1 %v8187_v20 }
 0x3e4   : > { %4151 = vmatmul.mubr.f32.gmra.mrb[74].mxu1 %v9343_v25 }
 0x3e5   : > { %4155 = vmatprep.mubr.f32.mxu1 %v8213_v43 }
 0x3e8   : > { %4156 = vmatmul.mubr.f32.gmra.mrb[76].mxu1 %v9344_v27 }
 0x3e9   : > { %4160 = vmatprep.mubr.f32.mxu1 %v8217_v8 }
 0x3ec   : > { %4161 = vmatmul.mubr.f32.gmra.mrb[78].mxu1 %v9345_v44 }
 0x3ed   : > { %4165 = vmatprep.mubr.f32.mxu1 %v8243_v40 }
 0x3f0   : > { %4166 = vmatmul.mubr.f32.gmra.mrb[80].mxu1 %v9346_v16 }
 0x3f1   : > { %4170 = vmatprep.mubr.f32.mxu1 %v8247_v62 }
 0x3f3   : > { %v8399_v1 = vpop.f32.mrb[64].mxu0 }
 0x3f4   : > { %4171 = vmatmul.mubr.f32.gmra.mrb[82].mxu1 %v9347_v41  ;;  %v8402_v20 = vpop.f32.mrb[65].mxu0 }
 0x3f5   : > { %4175 = vmatprep.mubr.f32.mxu1 %v8274_v52 }
 0x3f8   : > { %4176 = vmatmul.mubr.f32.gmra.mrb[84].mxu1 %v8260_v35 }
 0x3f9   : > { %4180 = vmatprep.mubr.f32.mxu1 %v8277_v13 }
 0x3fb   : > { %v8407_v33 = vpop.f32.mrb[66].mxu0 }
 0x3fc   : > { %4181 = vmatmul.mubr.f32.gmra.mrb[86].mxu1 %v8265_v46  ;;  %v8411_v2 = vpop.f32.mrb[67].mxu0 }
 0x3fd   : > { %4185 = vmatprep.mubr.f32.mxu1 %v8297_v61 }
 0x400   : > { %4186 = vmatmul.mubr.f32.gmra.mrb[88].mxu1 %v8416_v29 }
 0x401   : > { %4190 = vmatprep.mubr.f32.mxu1 %v8299_v51 }
 0x403   : > { %v8421_v22 = vpop.f32.mrb[68].mxu0 }
 0x404   : > { %4191 = vmatmul.mubr.f32.gmra.mrb[90].mxu1 %v8424_v47  ;;  %v8428_v37 = vpop.f32.mrb[69].mxu0 }
 0x405   : > { %4195 = vmatprep.mubr.f32.mxu1 %v8430_v11 }
 0x408   : > { %4196 = vmatmul.mubr.f32.gmra.mrb[92].mxu1 %v8435_v38 }
 0x409   : > { %4200 = vmatprep.mubr.f32.mxu1 %v8439_v30 }
 0x40b   : > { %v8442_v12 = vpop.f32.mrb[70].mxu0 }
 0x40c   : > { %4201 = vmatmul.mubr.f32.gmra.mrb[94].mxu1 %v8445_v4  ;;  %v8448_v59 = vpop.f32.mrb[71].mxu0 }
 0x40d   : > { %4270 = vmatprep.mubr.f32.mxu1 %v8333_v5  ;;  %v5878_v5 = vpack.c.bf16 %v3706_v32, %v3705_v0  ;;  %v9356_v0 = vld [vmem:[#allocation26_spill] sm:$0xff] }
 0x410   : > { %4271 = vmatmul.mubr.f32.vlgmr.msra.gmra.mrb[32].mxu1 %v9349_v21 }
 0x411   : > { %4275 = vmatprep.mubr.f32.mxu1 %v8340_v57  ;;  %5873 = vmatpush1.bf16.msra.mxu1 %v5872_v18  ;;  %v3708_v57 = vld [vmem:[#allocation9 + $0x338] sm:$0xff]  ;;  %v3710_v18 = vld [vmem:[#allocation9 + $0x348] sm:$0xff] }
 0x412   : > { %5874 = vmatprep.subr.bf16.mxu1 %v9267_v10  ;;  %v5881_v45 = vpack.c.bf16 %v3708_v57, %v3707_v55  ;;  %v5884_v21 = vpack.c.bf16 %v3710_v18, %v3709_v53  ;;  %v9358_v57 = vld [vmem:[#allocation27_spill] sm:$0xff]  ;;  %v3715_v53 = vld [vmem:[#allocation9 + $0x370] sm:$0xff] }
 0x413   : > { %v8454_v9 = vpop.f32.mrb[72].mxu0  ;;  %v9360_v18 = vld [vmem:[#allocation28_spill] sm:$0xff] }
 0x414   : > { %9350 = vst [vmem:[#allocation41_spill] sm:$0xff] %v8454_v9  ;;  %4276 = vmatmul.mubr.f32.gmra.mrb[34].mxu1 %v9351_v24  ;;  %v8457_v14 = vpop.f32.mrb[73].mxu0  ;;  %v3713_v24 = vld [vmem:[#allocation9 + $0x360] sm:$0xff] }
 0x415   : > { %4280 = vmatprep.mubr.f32.mxu1 %v7930_v60  ;;  %5876 = vmatpush1.bf16.msra.mxu1 %v5875_v19  ;;  %v3711_v19 = vld [vmem:[#allocation9 + $0x350] sm:$0xff] }
 0x416   : > { %5877 = vmatprep.subr.bf16.mxu1 %v9267_v10 }
 0x418   : > { %4281 = vmatmul.mubr.f32.gmra.mrb[36].mxu1 %v9352_v3 }
 0x419   : > { %4285 = vmatprep.mubr.f32.mxu1 %v7935_v31  ;;  %5879 = vmatpush1.bf16.msra.mxu1 %v5878_v5  ;;  %v3712_v31 = vld [vmem:[#allocation9 + $0x358] sm:$0xff]  ;;  %v3714_v5 = vld [vmem:[#allocation9 + $0x368] sm:$0xff] }
 0x41a   : > { %5880 = vmatprep.subr.bf16.mxu1 %v9267_v10  ;;  %v5887_v32 = vpack.c.bf16 %v3712_v31, %v3711_v19  ;;  %v3717_v19 = vld [vmem:[#allocation9 + $0x380] sm:$0xff]  ;;  %v3718_v31 = vld [vmem:[#allocation9 + $0x388] sm:$0xff] }
 0x41b   : > { %v8464_v58 = vpop.f32.mrb[74].mxu0 }
 0x41c   : > { %9353 = vst [vmem:[#allocation42_spill] sm:$0xff] %v8464_v58  ;;  %4286 = vmatmul.mubr.f32.gmra.mrb[38].mxu1 %v9354_v15  ;;  %v8467_v60 = vpop.f32.mrb[75].mxu0 }
 0x41d   : > { %9355 = vst [vmem:[#allocation45_spill] sm:$0xff] %v8467_v60  ;;  %4290 = vmatprep.mubr.f32.mxu1 %v7960_v28  ;;  %5882 = vmatpush1.bf16.msra.mxu1 %v5881_v45  ;;  %v5890_v45 = vpack.c.bf16 %v3714_v5, %v3713_v24  ;;  %v3719_v24 = vld [vmem:[#allocation9 + $0x390] sm:$0xff]  ;;  %v9364_v5 = vld [vmem:[#allocation30_spill] sm:$0xff] }
 0x41e   : > { %5883 = vmatprep.subr.bf16.mxu1 %v9267_v10 }
 0x420   : > { %4291 = vmatmul.mubr.f32.gmra.mrb[40].mxu1 %v9356_v0 }
 0x421   : > { %4295 = vmatprep.mubr.f32.mxu1 %v7965_v48  ;;  %5885 = vmatpush1.bf16.msra.mxu1 %v5884_v21  ;;  %v3716_v48 = vld [vmem:[#allocation9 + $0x378] sm:$0xff] }
 0x422   : > { %5886 = vmatprep.subr.bf16.mxu1 %v9267_v10  ;;  %v5893_v21 = vpack.c.bf16 %v3716_v48, %v3715_v53  ;;  %v3721_v53 = vld [vmem:[#allocation9 + $0x3a0] sm:$0xff]  ;;  %v3722_v48 = vld [vmem:[#allocation9 + $0x3a8] sm:$0xff] }
 0x423   : > { %v8474_v55 = vpop.f32.mrb[76].mxu0 }
 0x424   : > { %9357 = vst [vmem:[#allocation46_spill] sm:$0xff] %v8474_v55  ;;  %4296 = vmatmul.mubr.f32.gmra.mrb[42].mxu1 %v9358_v57  ;;  %v8477_v28 = vpop.f32.mrb[77].mxu0 }
 0x425   : > { %9359 = vst [vmem:[#allocation49_spill] sm:$0xff] %v8477_v28  ;;  %4300 = vmatprep.mubr.f32.mxu1 %v7990_v34  ;;  %5888 = vmatpush1.bf16.msra.mxu1 %v5887_v32  ;;  %v9362_v28 = vld [vmem:[#allocation29_spill] sm:$0xff]  ;;  %v5896_v32 = vpack.c.bf16 %v3718_v31, %v3717_v19  ;;  %v3723_v19 = vld [vmem:[#allocation9 + $0x3b0] sm:$0xff] }
 0x426   : > { %5889 = vmatprep.subr.bf16.mxu1 %v9267_v10  ;;  %v9368_v31 = vld [vmem:[#allocation32_spill] sm:$0xff] }
 0x428   : > { %4301 = vmatmul.mubr.f32.gmra.mrb[44].mxu1 %v9360_v18 }
 0x429   : > { %4305 = vmatprep.mubr.f32.mxu1 %v7995_v50  ;;  %5891 = vmatpush1.bf16.msra.mxu1 %v5890_v45  ;;  %v3720_v50 = vld [vmem:[#allocation9 + $0x398] sm:$0xff] }
 0x42a   : > { %5892 = vmatprep.subr.bf16.mxu1 %v9267_v10  ;;  %v5899_v45 = vpack.c.bf16 %v3720_v50, %v3719_v24  ;;  %v3725_v24 = vld [vmem:[#allocation9 + $0x3c0] sm:$0xff]  ;;  %v3726_v50 = vld [vmem:[#allocation9 + $0x3c8] sm:$0xff] }
 0x42b   : > { %v8484_v55 = vpop.f32.mrb[78].mxu0 }
 0x42c   : > { %9361 = vst [vmem:[#allocation50_spill] sm:$0xff] %v8484_v55  ;;  %4306 = vmatmul.mubr.f32.gmra.mrb[46].mxu1 %v9362_v28  ;;  %v8487_v34 = vpop.f32.mrb[79].mxu0 }
 0x42d   : > { %9363 = vst [vmem:[#allocation56_spill] sm:$0xff] %v8487_v34  ;;  %4310 = vmatprep.mubr.f32.mxu1 %v8020_v23  ;;  %5894 = vmatpush1.bf16.msra.mxu1 %v5893_v21  ;;  %v9366_v34 = vld [vmem:[#allocation31_spill] sm:$0xff]  ;;  %v5902_v21 = vpack.c.bf16 %v3722_v48, %v3721_v53  ;;  %v3727_v53 = vld [vmem:[#allocation9 + $0x3d0] sm:$0xff]  ;;  %v9372_v48 = vld [vmem:[#allocation34_spill] sm:$0xff] }
 0x42e   : > { %5895 = vmatprep.subr.bf16.mxu1 %v9267_v10 }
 0x430   : > { %4311 = vmatmul.mubr.f32.gmra.mrb[48].mxu1 %v9364_v5 }
 0x431   : > { %4315 = vmatprep.mubr.f32.mxu1 %v8025_v49  ;;  %5897 = vmatpush1.bf16.msra.mxu1 %v5896_v32  ;;  %v3724_v49 = vld [vmem:[#allocation9 + $0x3b8] sm:$0xff] }
 0x432   : > { %5898 = vmatprep.subr.bf16.mxu1 %v9267_v10  ;;  %v5905_v32 = vpack.c.bf16 %v3724_v49, %v3723_v19  ;;  %v3729_v19 = vld [vmem:[#allocation9 + $0x3e0] sm:$0xff]  ;;  %v3730_v49 = vld [vmem:[#allocation9 + $0x3e8] sm:$0xff] }
 0x433   : > { %v8494_v55 = vpop.f32.mrb[80].mxu0 }
 0x434   : > { %9365 = vst [vmem:[#allocation22_spill] sm:$0xff] %v8494_v55  ;;  %4316 = vmatmul.mubr.f32.gmra.mrb[50].mxu1 %v9366_v34  ;;  %v8497_v23 = vpop.f32.mrb[81].mxu0 }
 0x435   : > { %9367 = vst [vmem:[#allocation23_spill] sm:$0xff] %v8497_v23  ;;  %4320 = vmatprep.mubr.f32.mxu1 %v8050_v26  ;;  %5900 = vmatpush1.bf16.msra.mxu1 %v5899_v45  ;;  %v9370_v23 = vld [vmem:[#allocation33_spill] sm:$0xff]  ;;  %v5908_v45 = vpack.c.bf16 %v3726_v50, %v3725_v24  ;;  %v3731_v24 = vld [vmem:[#allocation9 + $0x3f0] sm:$0xff] }
 0x436   : > { %5901 = vmatprep.subr.bf16.mxu1 %v9267_v10  ;;  %v9376_v50 = vld [vmem:[#allocation36_spill] sm:$0xff] }
 0x438   : > { %4321 = vmatmul.mubr.f32.gmra.mrb[52].mxu1 %v9368_v31 }
 0x439   : > { %4325 = vmatprep.mubr.f32.mxu1 %v8055_v36  ;;  %5903 = vmatpush1.bf16.msra.mxu1 %v5902_v21  ;;  %v3728_v36 = vld [vmem:[#allocation9 + $0x3d8] sm:$0xff] }
 0x43a   : > { %5904 = vmatprep.subr.bf16.mxu1 %v9267_v10  ;;  %v5911_v21 = vpack.c.bf16 %v3728_v36, %v3727_v53  ;;  %v9378_v36 = vld [vmem:[#allocation37_spill] sm:$0xff] }
 0x43b   : > { %v8504_v55 = vpop.f32.mrb[82].mxu0 }
 0x43c   : > { %9369 = vst [vmem:[#allocation24_spill] sm:$0xff] %v8504_v55  ;;  %4326 = vmatmul.mubr.f32.gmra.mrb[54].mxu1 %v9370_v23  ;;  %v8507_v26 = vpop.f32.mrb[83].mxu0 }
 0x43d   : > { %9371 = vst [vmem:[#allocation25_spill] sm:$0xff] %v8507_v26  ;;  %4330 = vmatprep.mubr.f32.mxu1 %v8080_v17  ;;  %5906 = vmatpush1.bf16.msra.mxu1 %v5905_v32  ;;  %v9374_v26 = vld [vmem:[#allocation35_spill] sm:$0xff]  ;;  %v5914_v32 = vpack.c.bf16 %v3730_v49, %v3729_v19 }
 0x43e   : > { %5907 = vmatprep.subr.bf16.mxu1 %v9267_v10  ;;  %v9384_v19 = vld [vmem:[#allocation43_spill] sm:$0xff] }
 0x43f   : > { %v9386_v49 = vld [vmem:[#allocation47_spill] sm:$0xff] }
 0x440   : > { %4331 = vmatmul.mubr.f32.gmra.mrb[56].mxu1 %v9372_v48 }
 0x441   : > { %4335 = vmatprep.mubr.f32.mxu1 %v8085_v6  ;;  %5909 = vmatpush1.bf16.msra.mxu1 %v5908_v45  ;;  %v3732_v6 = vld [vmem:[#allocation9 + $0x3f8] sm:$0xff] }
 0x442   : > { %5910 = vmatprep.subr.bf16.mxu1 %v9267_v10  ;;  %v5917_v45 = vpack.c.bf16 %v3732_v6, %v3731_v24  ;;  %v3127_v24 = vrot.slane %v8439_v30, 1  ;;  %v9394_v6 = vld [vmem:[#allocation58_spill] sm:$0xff] }
 0x443   : > { %v8514_v55 = vpop.f32.mrb[84].mxu0 }
 0x444   : > { %9373 = vst [vmem:[#allocation26_spill] sm:$0xff] %v8514_v55  ;;  %4336 = vmatmul.mubr.f32.gmra.mrb[58].mxu1 %v9374_v26  ;;  %v8517_v17 = vpop.f32.mrb[85].mxu0 }
 0x445   : > { %9375 = vst [vmem:[#allocation27_spill] sm:$0xff] %v8517_v17  ;;  %4340 = vmatprep.mubr.f32.mxu1 %v8110_v7  ;;  %5912 = vmatpush1.bf16.msra.mxu1 %v5911_v21  ;;  %v9380_v7 = vld [vmem:[#allocation14_spill] sm:$0xff] }
 0x446   : > { %5913 = vmatprep.subr.bf16.mxu1 %v9267_v10  ;;  %v9381_v21 = vld [vmem:[#allocation38_spill] sm:$0xff] }
 0x448   : > { %4341 = vmatmul.mubr.f32.gmra.mrb[60].mxu1 %v9376_v50 }
 0x449   : > { %4345 = vmatprep.mubr.f32.mxu1 %v8115_v42  ;;  %5915 = vmatpush1.bf16.msra.mxu1 %v5914_v32  ;;  %v9382_v42 = vld [vmem:[#allocation39_spill] sm:$0xff]  ;;  %v2719_v32 = vld [vmem:[#allocation2 + $0x190] sm:$0x3] }
 0x44a   : > { %5916 = vmatprep.subr.bf16.mxu1 %v9267_v10  ;;  %v9383_v10 = vld [vmem:[#allocation40_spill] sm:$0xff]  ;;  %v3129_v58 = vrot.slane %v2719_v32, 1 }
 0x44b   : > { %v8524_v53 = vpop.f32.mrb[86].mxu0 }
 0x44c   : > { %9377 = vst [vmem:[#allocation28_spill] sm:$0xff] %v8524_v53  ;;  %4346 = vmatmul.mubr.f32.gmra.mrb[62].mxu1 %v9378_v36  ;;  %v8527_v55 = vpop.f32.mrb[87].mxu0  ;;  %v3168_v53 = vrot.slane %v2719_v32, 2  ;;  %v8575_v9 = vsel %vm525_vm0, %v3127_v24, %v3129_v58  ;;  %v6526_v32 = vld [vmem:[#allocation2 + $0x38] sm:$0xff]  ;;  %v9396_v58 = vld [vmem:[#allocation16_spill] sm:$0xff] }
 0x44d   : > { %9379 = vst [vmem:[#allocation29_spill] sm:$0xff] %v8527_v55  ;;  %4350 = vmatprep.mubr.f32.mxu1 %v8140_v54  ;;  %5918 = vmatpush1.bf16.msra.mxu1 %v5917_v45  ;;  %v9385_v54 = vld [vmem:[#allocation44_spill] sm:$0xff]  ;;  %v3126_v55 = vrot.slane %v8430_v11, 1 }
 0x44e   : > { %5951 = vmatprep.subr.bf16.mxu1 %v9380_v7 }
 0x44f   : > { %v8567_v17 = vsel %vm525_vm0, %v3126_v55, %v3127_v24  ;;  %v9395_v55 = vld [vmem:[#allocation15_spill] sm:$0xff]  ;;  %v9400_v24 = vld [vmem:[#allocation20_spill] sm:$0xff] }
 0x450   : > { %4351 = vmatmul.mubr.f32.gmra.mrb[64].mxu1 %v9381_v21 }
 0x451   : > { %4355 = vmatprep.mubr.f32.mxu1 %v8145_v39  ;;  %v9387_v39 = vld [vmem:[#allocation48_spill] sm:$0xff] }
 0x454   : > { %4356 = vmatmul.mubr.f32.gmra.mrb[66].mxu1 %v9382_v42 }
 0x455   : > { %4360 = vmatprep.mubr.f32.mxu1 %v9342_v56  ;;  %v9388_v56 = vld [vmem:[#allocation51_spill] sm:$0xff] }
 0x458   : > { %4361 = vmatmul.mubr.f32.gmra.mrb[68].mxu1 %v9383_v10 }
 0x459   : > { %4365 = vmatprep.mubr.f32.mxu1 %v9343_v25  ;;  %v9389_v25 = vld [vmem:[#allocation52_spill] sm:$0xff] }
 0x45c   : > { %4366 = vmatmul.mubr.f32.gmra.mrb[70].mxu1 %v9384_v19 }
 0x45d   : > { %4370 = vmatprep.mubr.f32.mxu1 %v9344_v27  ;;  %v9390_v27 = vld [vmem:[#allocation53_spill] sm:$0xff] }
 0x460   : > { %4371 = vmatmul.mubr.f32.gmra.mrb[72].mxu1 %v9385_v54 }
 0x461   : > { %4375 = vmatprep.mubr.f32.mxu1 %v9345_v44  ;;  %v9391_v44 = vld [vmem:[#allocation54_spill] sm:$0xff] }
 0x464   : > { %4376 = vmatmul.mubr.f32.gmra.mrb[74].mxu1 %v9386_v49 }
 0x465   : > { %4380 = vmatprep.mubr.f32.mxu1 %v9346_v16  ;;  %v9392_v16 = vld [vmem:[#allocation55_spill] sm:$0xff] }
 0x468   : > { %4381 = vmatmul.mubr.f32.gmra.mrb[76].mxu1 %v9387_v39 }
 0x469   : > { %4385 = vmatprep.mubr.f32.mxu1 %v9347_v41  ;;  %v9393_v41 = vld [vmem:[#allocation57_spill] sm:$0xff] }
 0x46c   : > { %4386 = vmatmul.mubr.f32.gmra.mrb[78].mxu1 %v9388_v56 }
 0x46d   : > { %4390 = vmatprep.mubr.f32.mxu1 %v8260_v35  ;;  %v3166_v35 = vrot.slane %v8439_v30, 2 }
 0x46f   : > { %v8571_v60 = vsel %vm670_vm1, %v3166_v35, %v3168_v53  ;;  %v6527_v53 = vld [vmem:[#allocation2 + $0x48] sm:$0xff] }
 0x470   : > { %4391 = vmatmul.mubr.f32.gmra.mrb[80].mxu1 %v9389_v25 }
 0x471   : > { %4395 = vmatprep.mubr.f32.mxu1 %v8265_v46  ;;  %v3165_v46 = vrot.slane %v8430_v11, 2 }
 0x473   : > { %v8562_v45 = vsel %vm670_vm1, %v3165_v46, %v3166_v35  ;;  %v6525_v46 = vld [vmem:[#allocation2 + $0x30] sm:$0xff]  ;;  %v9399_v35 = vld [vmem:[#allocation19_spill] sm:$0xff] }
 0x474   : > { %4396 = vmatmul.mubr.f32.gmra.mrb[82].mxu1 %v9390_v27 }
 0x475   : > { %4400 = vmatprep.mubr.f32.mxu1 %v8416_v29 }
 0x478   : > { %4401 = vmatmul.mubr.f32.gmra.mrb[84].mxu1 %v9391_v44 }
 0x479   : > { %4405 = vmatprep.mubr.f32.mxu1 %v8424_v47 }
 0x47c   : > { %4406 = vmatmul.mubr.f32.gmra.mrb[86].mxu1 %v9392_v16 }
 0x47d   : > { %4410 = vmatprep.mubr.f32.mxu1 %v8435_v38 }
 0x480   : > { %4411 = vmatmul.mubr.f32.gmra.mrb[88].mxu1 %v9393_v41 }
 0x481   : > { %4415 = vmatprep.mubr.f32.mxu1 %v8445_v4 }
 0x484   : > { %4416 = vmatmul.mubr.f32.gmra.mrb[90].mxu1 %v9394_v6 }
 0x485   : > { %4420 = vmatprep.mubr.f32.mxu1 %v8562_v45 }
 0x488   : > { %4421 = vmatmul.mubr.f32.gmra.mrb[92].mxu1 %v8567_v17 }
 0x489   : > { %4425 = vmatprep.mubr.f32.mxu1 %v8571_v60 }
 0x48c   : > { %4426 = vmatmul.mubr.f32.gmra.mrb[94].mxu1 %v8575_v9 }
 0x48d   : > { %4495 = vmatprep.mubr.f32.mxu1 %v9352_v3  ;;  %v9397_v3 = vld [vmem:[#allocation17_spill] sm:$0xff] }
 0x490   : > { %4496 = vmatmul.mubr.f32.vlgmr.msra.gmra.mrb[32].mxu1 %v6525_v46  ;;  %v9401_v46 = vld [vmem:[#allocation21_spill] sm:$0xff] }
 0x491   : > { %4500 = vmatprep.mubr.f32.mxu1 %v9354_v15  ;;  %5959 = vmatpush3.bf16.msra.mxu1 %v9380_v7  ;;  %v6528_v15 = vld [vmem:[#allocation2 + $0x50] sm:$0xff] }
 0x492   : > { %5952 = vmatprep.subr.bf16.mxu1 %v9395_v55  ;;  %v9398_v7 = vld [vmem:[#allocation18_spill] sm:$0xff] }
 0x494   : > { %4501 = vmatmul.mubr.f32.gmra.mrb[34].mxu1 %v6526_v32  ;;  %v6535_v32 = vld [vmem:[#allocation2 + $0xa8] sm:$0xff] }
 0x495   : > { %4505 = vmatprep.mubr.f32.mxu1 %v9356_v0  ;;  %5960 = vmatpush3.bf16.msra.mxu1 %v9395_v55  ;;  %v6529_v0 = vld [vmem:[#allocation2 + $0x60] sm:$0xff]  ;;  %v6533_v55 = vld [vmem:[#allocation2 + $0x90] sm:$0xff] }
 0x496   : > { %5953 = vmatprep.subr.bf16.mxu1 %v9396_v58 }
 0x498   : > { %4506 = vmatmul.mubr.f32.gmra.mrb[36].mxu1 %v6527_v53 }
 0x499   : > { %4510 = vmatprep.mubr.f32.mxu1 %v9358_v57  ;;  %5961 = vmatpush3.bf16.msra.mxu1 %v9396_v58  ;;  %v6530_v57 = vld [vmem:[#allocation2 + $0x68] sm:$0xff]  ;;  %v6537_v58 = vld [vmem:[#allocation2 + $0xc0] sm:$0xff] }
 0x49a   : > { %5954 = vmatprep.subr.bf16.mxu1 %v9397_v3 }
 0x49c   : > { %4511 = vmatmul.mubr.f32.gmra.mrb[38].mxu1 %v6528_v15 }
 0x49d   : > { %4515 = vmatprep.mubr.f32.mxu1 %v9360_v18  ;;  %5962 = vmatpush3.bf16.msra.mxu1 %v9397_v3  ;;  %v6531_v18 = vld [vmem:[#allocation2 + $0x78] sm:$0xff] }
 0x49e   : > { %5955 = vmatprep.subr.bf16.mxu1 %v9398_v7 }
 0x4a0   : > { %4516 = vmatmul.mubr.f32.gmra.mrb[40].mxu1 %v6529_v0 }
 0x4a1   : > { %4520 = vmatprep.mubr.f32.mxu1 %v9362_v28  ;;  %5963 = vmatpush3.bf16.msra.mxu1 %v9398_v7  ;;  %v6532_v28 = vld [vmem:[#allocation2 + $0x80] sm:$0xff] }
 0x4a2   : > { %5956 = vmatprep.subr.bf16.mxu1 %v9399_v35 }
 0x4a4   : > { %4521 = vmatmul.mubr.f32.gmra.mrb[42].mxu1 %v6530_v57 }
 0x4a5   : > { %4525 = vmatprep.mubr.f32.mxu1 %v9364_v5  ;;  %5964 = vmatpush3.bf16.msra.mxu1 %v9399_v35  ;;  %v6534_v5 = vld [vmem:[#allocation2 + $0x98] sm:$0xff] }
 0x4a6   : > { %5957 = vmatprep.subr.bf16.mxu1 %v9400_v24 }
 0x4a8   : > { %4526 = vmatmul.mubr.f32.gmra.mrb[44].mxu1 %v6531_v18 }
 0x4a9   : > { %4530 = vmatprep.mubr.f32.mxu1 %v9366_v34  ;;  %5965 = vmatpush3.bf16.msra.mxu1 %v9400_v24  ;;  %v6536_v34 = vld [vmem:[#allocation2 + $0xb0] sm:$0xff] }
 0x4aa   : > { %5958 = vmatprep.subr.bf16.mxu1 %v9401_v46 }
 0x4ac   : > { %4531 = vmatmul.mubr.f32.gmra.mrb[46].mxu1 %v6532_v28 }
 0x4ad   : > { %4535 = vmatprep.mubr.f32.mxu1 %v9368_v31  ;;  %5966 = vmatpush3.bf16.msra.mxu1 %v9401_v46  ;;  %v6538_v31 = vld [vmem:[#allocation2 + $0xc8] sm:$0xff] }
 0x4b0   : > { %4536 = vmatmul.mubr.f32.gmra.mrb[48].mxu1 %v6533_v55 }
 0x4b1   : > { %4540 = vmatprep.mubr.f32.mxu1 %v9370_v23  ;;  %v6539_v23 = vld [vmem:[#allocation2 + $0xd8] sm:$0xff] }
 0x4b4   : > { %4541 = vmatmul.mubr.f32.gmra.mrb[50].mxu1 %v6534_v5 }
 0x4b5   : > { %4545 = vmatprep.mubr.f32.mxu1 %v9372_v48  ;;  %v6540_v48 = vld [vmem:[#allocation2 + $0xe0] sm:$0xff] }
 0x4b8   : > { %4546 = vmatmul.mubr.f32.gmra.mrb[52].mxu1 %v6535_v32 }
 0x4b9   : > { %4550 = vmatprep.mubr.f32.mxu1 %v9374_v26  ;;  %v6541_v26 = vld [vmem:[#allocation2 + $0xf0] sm:$0xff] }
 0x4bc   : > { %4551 = vmatmul.mubr.f32.gmra.mrb[54].mxu1 %v6536_v34 }
 0x4bd   : > { %4555 = vmatprep.mubr.f32.mxu1 %v9376_v50  ;;  %v6542_v50 = vld [vmem:[#allocation2 + $0xf8] sm:$0xff] }
 0x4c0   : > { %4556 = vmatmul.mubr.f32.gmra.mrb[56].mxu1 %v6537_v58 }
 0x4c1   : > { %4560 = vmatprep.mubr.f32.mxu1 %v9378_v36  ;;  %v6543_v36 = vld [vmem:[#allocation2 + $0x108] sm:$0xff] }
 0x4c4   : > { %4561 = vmatmul.mubr.f32.gmra.mrb[58].mxu1 %v6538_v31 }
 0x4c5   : > { %4565 = vmatprep.mubr.f32.mxu1 %v9381_v21  ;;  %v6544_v21 = vld [vmem:[#allocation2 + $0x110] sm:$0xff] }
 0x4c8   : > { %4566 = vmatmul.mubr.f32.gmra.mrb[60].mxu1 %v6539_v23 }
 0x4c9   : > { %4570 = vmatprep.mubr.f32.mxu1 %v9382_v42 }
 0x4cc   : > { %4571 = vmatmul.mubr.f32.gmra.mrb[62].mxu1 %v6540_v48 }
 0x4cd   : > { %4575 = vmatprep.mubr.f32.mxu1 %v9383_v10 }
 0x4d0   : > { %4576 = vmatmul.mubr.f32.gmra.mrb[64].mxu1 %v6541_v26 }
 0x4d1   : > { %4580 = vmatprep.mubr.f32.mxu1 %v9384_v19 }
 0x4d4   : > { %4581 = vmatmul.mubr.f32.gmra.mrb[66].mxu1 %v6542_v50 }
 0x4d5   : > { %4585 = vmatprep.mubr.f32.mxu1 %v9385_v54 }
 0x4d8   : > { %4586 = vmatmul.mubr.f32.gmra.mrb[68].mxu1 %v6543_v36  ;;  %v9406_v36 = vld [vmem:[#allocation49_spill] sm:$0xff] }
 0x4d9   : > { %4590 = vmatprep.mubr.f32.mxu1 %v9386_v49 }
 0x4dc   : > { %4591 = vmatmul.mubr.f32.gmra.mrb[70].mxu1 %v6544_v21 }
 0x4dd   : > { %4595 = vmatprep.mubr.f32.mxu1 %v9387_v39 }
 0x4e0   : > { %4596 = vmatmul.mubr.f32.gmra.mrb[72].mxu1 %v8213_v43  ;;  %v9402_v43 = vld [vmem:[#allocation59_spill] sm:$0xff] }
 0x4e1   : > { %4600 = vmatprep.mubr.f32.mxu1 %v9388_v56 }
 0x4e4   : > { %4601 = vmatmul.mubr.f32.gmra.mrb[74].mxu1 %v8217_v8  ;;  %v3239_v8 = vrot.slane %v9402_v43, 1 }
 0x4e5   : > { %4605 = vmatprep.mubr.f32.mxu1 %v9389_v25 }
 0x4e8   : > { %4606 = vmatmul.mubr.f32.gmra.mrb[76].mxu1 %v8243_v40  ;;  %v2722_v40 = vld [vmem:[#allocation2 + $0x1a8] sm:$0x3] }
 0x4e9   : > { %4610 = vmatprep.mubr.f32.mxu1 %v9390_v27 }
 0x4ec   : > { %4611 = vmatmul.mubr.f32.gmra.mrb[78].mxu1 %v8247_v62  ;;  %v3242_v62 = vrot.slane %v2722_v40, 1 }
 0x4ed   : > { %4615 = vmatprep.mubr.f32.mxu1 %v9391_v44 }
 0x4f0   : > { %4616 = vmatmul.mubr.f32.gmra.mrb[80].mxu1 %v8274_v52  ;;  %v3243_v52 = vsel %vm525_vm0, %v3239_v8, %v3242_v62  ;;  %v9407_v62 = vld [vmem:[#allocation46_spill] sm:$0xff] }
 0x4f1   : > { %4620 = vmatprep.mubr.f32.mxu1 %v9392_v16 }
 0x4f4   : > { %4621 = vmatmul.mubr.f32.gmra.mrb[82].mxu1 %v8277_v13  ;;  %v3281_v13 = vrot.slane %v2722_v40, 2 }
 0x4f5   : > { %4625 = vmatprep.mubr.f32.mxu1 %v9393_v41 }
 0x4f8   : > { %4626 = vmatmul.mubr.f32.gmra.mrb[84].mxu1 %v8297_v61  ;;  %v3282_v61 = vsel %vm670_vm1, %v8319_v63, %v3281_v13 }
 0x4f9   : > { %4630 = vmatprep.mubr.f32.mxu1 %v9394_v6 }
 0x4fc   : > { %4631 = vmatmul.mubr.f32.gmra.mrb[86].mxu1 %v8299_v51  ;;  %v8649_v51 = vld [vmem:[%s9077_s4] ss:$0 sm:$0xff] }
 0x4fd   : > { %4635 = vmatprep.mubr.f32.mxu1 %v8567_v17 }
 0x500   : > { %4636 = vmatmul.mubr.f32.gmra.mrb[88].mxu1 %v8430_v11 }
 0x501   : > { %4640 = vmatprep.mubr.f32.mxu1 %v8575_v9 }
 0x504   : > { %4641 = vmatmul.mubr.f32.gmra.mrb[90].mxu1 %v8439_v30 }
 0x505   : > { %4645 = vmatprep.mubr.f32.mxu1 %v3239_v8 }
 0x508   : > { %4646 = vmatmul.mubr.f32.gmra.mrb[92].mxu1 %v9402_v43 }
 0x509   : > { %4650 = vmatprep.mubr.f32.mxu1 %v3243_v52 }
 0x50c   : > { %4651 = vmatmul.mubr.f32.gmra.mrb[94].mxu1 %v9402_v43 }
 0x50d   : > { %5491 = vmatprep.mubr.f32.mxu1 %v8416_v29 }
 0x510   : > { %5492 = vmatmul.mubr.f32.vlgmr.msra.gmra.mrb[96].mxu1 %v8424_v47 }
 0x511   : > { %5494 = vmatprep.mubr.f32.mxu1 %v8435_v38 }
 0x514   : > { %5495 = vmatmul.mubr.f32.gmra.mrb[98].mxu1 %v8445_v4 }
 0x515   : > { %5497 = vmatprep.mubr.f32.mxu1 %v8562_v45 }
 0x518   : > { %5498 = vmatmul.mubr.f32.gmra.mrb[100].mxu1 %v8571_v60 }
 0x519   : > { %5500 = vmatprep.mubr.f32.mxu1 %v8319_v63 }
 0x51c   : > { %5501 = vmatmul.mubr.f32.gmra.mrb[102].mxu1 %v3282_v61 }
 0x563   : > { %v4497_v29 = vpop.f32.mrb[32].mxu1 }
 0x564   : > { %v5999_v47 = vadd.f32 %v8649_v51, %v4497_v29  ;;  %v4499_v11 = vpop.f32.mrb[33].mxu1 }
 0x566   : > { %v8653_v38 = vadd.f32 %v5999_v47, %v8402_v20  ;;  %v9408_v47 = vld [vmem:[#allocation56_spill] sm:$0xff] }
 0x567   : > { %v4502_v30 = vpop.f32.mrb[34].mxu1 }
 0x568   : > { %v6000_v4 = vadd.f32 %v8649_v51, %v4502_v30  ;;  %v4504_v9 = vpop.f32.mrb[35].mxu1 }
 0x56a   : > { %v8657_v60 = vadd.f32 %v6000_v4, %v8399_v1 }
 0x56b   : > { %v4507_v63 = vpop.f32.mrb[36].mxu1 }
 0x56c   : > { %v6001_v17 = vadd.f32 %v8649_v51, %v4507_v63  ;;  %v4509_v42 = vpop.f32.mrb[37].mxu1  ;;  %v9409_v63 = vld [vmem:[#allocation50_spill] sm:$0xff] }
 0x56e   : > { %v8661_v10 = vadd.f32 %v6001_v17, %v8411_v2 }
 0x56f   : > { %v4512_v19 = vpop.f32.mrb[38].mxu1 }
 0x570   : > { %v6002_v54 = vadd.f32 %v8649_v51, %v4512_v19  ;;  %v4514_v49 = vpop.f32.mrb[39].mxu1 }
 0x571   : > { %v9410_v49 = vld [vmem:[#allocation23_spill] sm:$0xff] }
 0x572   : > { %v8665_v20 = vadd.f32 %v6002_v54, %v8407_v33 }
 0x573   : > { %v4517_v39 = vpop.f32.mrb[40].mxu1 }
 0x574   : > { %v6003_v56 = vadd.f32 %v8649_v51, %v4517_v39  ;;  %v4519_v25 = vpop.f32.mrb[41].mxu1 }
 0x576   : > { %v8669_v1 = vadd.f32 %v6003_v56, %v8428_v37 }
 0x577   : > { %v4522_v27 = vpop.f32.mrb[42].mxu1 }
 0x578   : > { %v6004_v44 = vadd.f32 %v8649_v51, %v4522_v27  ;;  %v4524_v16 = vpop.f32.mrb[43].mxu1 }
 0x57a   : > { %v8673_v2 = vadd.f32 %v6004_v44, %v8421_v22  ;;  %v9411_v44 = vld [vmem:[#allocation22_spill] sm:$0xff] }
 0x57b   : > { %v4527_v41 = vpop.f32.mrb[44].mxu1 }
 0x57c   : > { %v6005_v6 = vadd.f32 %v8649_v51, %v4527_v41  ;;  %v4529_v45 = vpop.f32.mrb[45].mxu1 }
 0x57e   : > { %v8677_v33 = vadd.f32 %v6005_v6, %v8448_v59  ;;  %v9403_v59 = vld [vmem:[#allocation41_spill] sm:$0xff] }
 0x57f   : > { %v4532_v53 = vpop.f32.mrb[46].mxu1 }
 0x580   : > { %v6006_v3 = vadd.f32 %v8649_v51, %v4532_v53  ;;  %v4534_v15 = vpop.f32.mrb[47].mxu1  ;;  %v9412_v53 = vld [vmem:[#allocation25_spill] sm:$0xff] }
 0x582   : > { %v8681_v37 = vadd.f32 %v6006_v3, %v8442_v12  ;;  %v9404_v12 = vld [vmem:[#allocation45_spill] sm:$0xff] }
 0x583   : > { %v4537_v7 = vpop.f32.mrb[48].mxu1 }
 0x584   : > { %v6007_v0 = vadd.f32 %v8649_v51, %v4537_v7  ;;  %v4539_v35 = vpop.f32.mrb[49].mxu1  ;;  %v4882_v7 = vld [vmem:[%s6930_s12 + $0x8] sm:$0xff] }
 0x586   : > { %v8685_v22 = vadd.f32 %v6007_v0, %v8457_v14  ;;  %v9405_v14 = vld [vmem:[#allocation42_spill] sm:$0xff] }
 0x587   : > { %v4542_v57 = vpop.f32.mrb[50].mxu1 }
 0x588   : > { %v6008_v24 = vadd.f32 %v8649_v51, %v4542_v57  ;;  %v4544_v18 = vpop.f32.mrb[51].mxu1  ;;  %v4881_v57 = vld [vmem:[%s6930_s12] sm:$0xff] }
 0x589   : > { %v9413_v18 = vld [vmem:[#allocation24_spill] sm:$0xff] }
 0x58a   : > { %v8689_v46 = vadd.f32 %v6008_v24, %v9403_v59  ;;  %v4883_v24 = vld [vmem:[%s6930_s12 + $0x10] sm:$0xff] }
 0x58b   : > { %v4547_v28 = vpop.f32.mrb[52].mxu1 }
 0x58c   : > { %v6009_v55 = vadd.f32 %v8649_v51, %v4547_v28  ;;  %v4549_v5 = vpop.f32.mrb[53].mxu1  ;;  %v4914_v28 = vadd.f32 %v4882_v7, %v8657_v60 }
 0x58d   : > { %v4884_v5 = vld [vmem:[%s6930_s12 + $0x18] sm:$0xff] }
 0x58e   : > { %v8693_v32 = vadd.f32 %v6009_v55, %v9404_v12 }
 0x58f   : > { %v4552_v34 = vpop.f32.mrb[54].mxu1 }
 0x590   : > { %v6010_v58 = vadd.f32 %v8649_v51, %v4552_v34  ;;  %v4554_v31 = vpop.f32.mrb[55].mxu1 }
 0x591   : > { %v4915_v31 = vadd.f32 %v4883_v24, %v8661_v10  ;;  %v4891_v24 = vld [vmem:[%s6930_s12 + $0x50] sm:$0xff] }
 0x592   : > { %v8697_v23 = vadd.f32 %v6010_v58, %v9405_v14  ;;  %v4913_v58 = vadd.f32 %v4881_v57, %v8653_v38  ;;  %v4885_v14 = vld [vmem:[%s6930_s12 + $0x20] sm:$0xff] }
 0x593   : > { %v4557_v48 = vpop.f32.mrb[56].mxu1  ;;  %v8750_v38 = vmax.f32 %v4915_v31, 0.0  ;;  %v4917_v10 = vadd.f32 %v4885_v14, %v8669_v1 }
 0x594   : > { %v6011_v26 = vadd.f32 %v8649_v51, %v4557_v48  ;;  %v4559_v50 = vpop.f32.mrb[57].mxu1  ;;  %v9414_v48 = vld [vmem:[#allocation27_spill] sm:$0xff] }
 0x595   : > { %v8743_v50 = vmax.f32 %v4914_v28, 0.0 }
 0x596   : > { %v8701_v21 = vadd.f32 %v6011_v26, %v9406_v36  ;;  %v4916_v36 = vadd.f32 %v4884_v5, %v8665_v20 }
 0x597   : > { %v4562_v43 = vpop.f32.mrb[58].mxu1 }
 0x598   : > { %v6012_v8 = vadd.f32 %v8649_v51, %v4562_v43  ;;  %v4564_v40 = vpop.f32.mrb[59].mxu1  ;;  %v4886_v43 = vld [vmem:[%s6930_s12 + $0x28] sm:$0xff]  ;;  %v8759_v20 = vmax.f32 %v4916_v36, 0.0  ;;  %v4923_v36 = vadd.f32 %v4891_v24, %v8693_v32 }
 0x59a   : > { %v8705_v52 = vadd.f32 %v6012_v8, %v9407_v62  ;;  %v8748_v62 = vmax.f32 %v4913_v58, 0.0  ;;  %v4892_v58 = vld [vmem:[%s6930_s12 + $0x58] sm:$0xff]  ;;  %v8815_v32 = vmax.f32 %v4923_v36, 0.0 }
 0x59b   : > { %v4567_v13 = vpop.f32.mrb[60].mxu1 }
 0x59c   : > { %v6013_v61 = vadd.f32 %v8649_v51, %v4567_v13  ;;  %v4569_v29 = vpop.f32.mrb[61].mxu1  ;;  %v4887_v13 = vld [vmem:[%s6930_s12 + $0x30] sm:$0xff]  ;;  %v4977_v1 = vmul.f32 %v8748_v62, %v8748_v62 }
 0x59e   : > { %v8709_v11 = vadd.f32 %v6013_v61, %v9408_v47  ;;  %v9415_v61 = vld [vmem:[#allocation26_spill] sm:$0xff]  ;;  %v4978_v47 = vmul.f32 %v8743_v50, %v8743_v50 }
 0x59f   : > { %v4572_v30 = vpop.f32.mrb[62].mxu1 }
 0x5a0   : > { %v6014_v4 = vadd.f32 %v8649_v51, %v4572_v30  ;;  %v4574_v9 = vpop.f32.mrb[63].mxu1  ;;  %v4918_v30 = vadd.f32 %v4886_v43, %v8673_v2 }
 0x5a1   : > { %v4888_v9 = vld [vmem:[%s6930_s12 + $0x38] sm:$0xff] }
 0x5a2   : > { %v8713_v17 = vadd.f32 %v6014_v4, %v9409_v63 }
 0x5a3   : > { %v4577_v42 = vpop.f32.mrb[64].mxu1 }
 0x5a4   : > { %v6015_v19 = vadd.f32 %v8649_v51, %v4577_v42  ;;  %v4579_v54 = vpop.f32.mrb[65].mxu1 }
 0x5a5   : > { %v8768_v54 = vmax.f32 %v4917_v10, 0.0 }
 0x5a6   : > { %v8717_v39 = vadd.f32 %v6015_v19, %v9410_v49  ;;  %v4979_v19 = vmul.f32 %v8750_v38, %v8750_v38  ;;  %v4919_v49 = vadd.f32 %v4887_v13, %v8677_v33  ;;  %v4894_v13 = vld [vmem:[%s6930_s12 + $0x68] sm:$0xff] }
 0x5a7   : > { %v4582_v56 = vpop.f32.mrb[66].mxu1  ;;  %v4981_v33 = vmul.f32 %v8768_v54, %v8768_v54 }
 0x5a8   : > { %v6016_v25 = vadd.f32 %v8649_v51, %v4582_v56  ;;  %v4584_v27 = vpop.f32.mrb[67].mxu1  ;;  %v4889_v56 = vld [vmem:[%s6930_s12 + $0x40] sm:$0xff] }
 0x5a9   : > { %v5009_v27 = vadd.f32 %v4978_v47, %v4977_v1  ;;  %v4921_v57 = vadd.f32 %v4889_v56, %v8685_v22  ;;  %v4926_v1 = vadd.f32 %v4894_v13, %v8705_v52 }
 0x5aa   : > { %v8721_v16 = vadd.f32 %v6016_v25, %v9411_v44  ;;  %v9416_v25 = vld [vmem:[#allocation29_spill] sm:$0xff]  ;;  %v4980_v44 = vmul.f32 %v8759_v20, %v8759_v20 }
 0x5ab   : > { %v4587_v41 = vpop.f32.mrb[68].mxu1  ;;  %v8835_v52 = vmax.f32 %v4926_v1, 0.0  ;;  %v4903_v1 = vld [vmem:[%s6930_s12 + $0xb0] sm:$0xff] }
 0x5ac   : > { %v6017_v6 = vadd.f32 %v8649_v51, %v4587_v41  ;;  %v4589_v45 = vpop.f32.mrb[69].mxu1  ;;  %v8777_v41 = vmax.f32 %v4918_v30, 0.0 }
 0x5ae   : > { %v8725_v3 = vadd.f32 %v6017_v6, %v9412_v53  ;;  %v4920_v6 = vadd.f32 %v4888_v9, %v8681_v37  ;;  %v4890_v53 = vld [vmem:[%s6930_s12 + $0x48] sm:$0xff]  ;;  %v4895_v9 = vld [vmem:[%s6930_s12 + $0x70] sm:$0xff] }
 0x5af   : > { %v4592_v15 = vpop.f32.mrb[70].mxu1 }
 0x5b0   : > { %v6018_v0 = vadd.f32 %v8649_v51, %v4592_v15  ;;  %v4594_v35 = vpop.f32.mrb[71].mxu1  ;;  %v8793_v5 = vmax.f32 %v4920_v6, 0.0  ;;  %v4897_v6 = vld [vmem:[%s6930_s12 + $0x80] sm:$0xff] }
 0x5b1   : > { %v8784_v35 = vmax.f32 %v4919_v49, 0.0  ;;  %v4896_v49 = vld [vmem:[%s6930_s12 + $0x78] sm:$0xff] }
 0x5b2   : > { %v8732_v59 = vadd.f32 %v6018_v0, %v9413_v18  ;;  %v5010_v0 = vadd.f32 %v5009_v27, %v4979_v19  ;;  %v9417_v18 = vld [vmem:[#allocation28_spill] sm:$0xff]  ;;  %v4987_v27 = vmul.f32 %v8815_v32, %v8815_v32 }
 0x5b3   : > { %v4597_v55 = vpop.f32.mrb[72].mxu1  ;;  %v4983_v22 = vmul.f32 %v8784_v35, %v8784_v35 }
 0x5b4   : > { %v6019_v12 = vadd.f32 %v8649_v51, %v4597_v55  ;;  %v4599_v34 = vpop.f32.mrb[73].mxu1  ;;  %v5011_v37 = vadd.f32 %v5010_v0, %v4980_v44  ;;  %v4982_v55 = vmul.f32 %v8777_v41, %v8777_v41  ;;  %v4927_v44 = vadd.f32 %v4895_v9, %v8709_v11  ;;  %v4898_v0 = vld [vmem:[%s6930_s12 + $0x88] sm:$0xff] }
 0x5b6   : > { %v8741_v26 = vadd.f32 %v6019_v12, %v9414_v48  ;;  %v4922_v12 = vadd.f32 %v4890_v53, %v8689_v46  ;;  %v5012_v14 = vadd.f32 %v5011_v37, %v4981_v33  ;;  %v8801_v48 = vmax.f32 %v4921_v57, 0.0  ;;  %v4899_v37 = vld [vmem:[%s6930_s12 + $0x90] sm:$0xff] }
 0x5b7   : > { %v4602_v60 = vpop.f32.mrb[74].mxu1  ;;  %v8843_v11 = vmax.f32 %v4927_v44, 0.0  ;;  %v4904_v44 = vld [vmem:[%s6930_s12 + $0xb8] sm:$0xff] }
 0x5b8   : > { %v6020_v8 = vadd.f32 %v8649_v51, %v4602_v60  ;;  %v4604_v40 = vpop.f32.mrb[75].mxu1  ;;  %v4893_v60 = vld [vmem:[%s6930_s12 + $0x60] sm:$0xff]  ;;  %v5013_v43 = vadd.f32 %v5012_v14, %v4982_v55  ;;  %v8807_v46 = vmax.f32 %v4922_v12, 0.0  ;;  %v4985_v30 = vmul.f32 %v8801_v48, %v8801_v48  ;;  %v4900_v14 = vld [vmem:[%s6930_s12 + $0x98] sm:$0xff] }
 0x5b9   : > { %v4924_v40 = vadd.f32 %v4892_v58, %v8697_v23  ;;  %v4990_v12 = vmul.f32 %v8835_v52, %v8835_v52  ;;  %v4930_v58 = vadd.f32 %v4898_v0, %v8721_v16 }
 0x5ba   : > { %v8755_v29 = vadd.f32 %v6020_v8, %v9415_v61  ;;  %v4984_v8 = vmul.f32 %v8793_v5, %v8793_v5  ;;  %v5014_v47 = vadd.f32 %v5013_v43, %v4983_v22  ;;  %v4931_v43 = vadd.f32 %v4899_v37, %v8725_v3 }
 0x5bb   : > { %v4607_v4 = vpop.f32.mrb[76].mxu1  ;;  %v8821_v23 = vmax.f32 %v4924_v40, 0.0  ;;  %v8863_v16 = vmax.f32 %v4930_v58, 0.0 }
 0x5bc   : > { %v6021_v63 = vadd.f32 %v8649_v51, %v4607_v4  ;;  %v4609_v42 = vpop.f32.mrb[77].mxu1  ;;  %v4925_v4 = vadd.f32 %v4893_v60, %v8701_v21  ;;  %v4991_v60 = vmul.f32 %v8843_v11, %v8843_v11 }
 0x5bd   : > { %v4986_v42 = vmul.f32 %v8807_v46, %v8807_v46  ;;  %v4988_v53 = vmul.f32 %v8821_v23, %v8821_v23 }
 0x5be   : > { %v8773_v2 = vadd.f32 %v6021_v63, %v9416_v25  ;;  %v5015_v63 = vadd.f32 %v5014_v47, %v4984_v8  ;;  %v8829_v21 = vmax.f32 %v4925_v4, 0.0  ;;  %v4901_v8 = vld [vmem:[%s6930_s12 + $0xa0] sm:$0xff] }
 0x5bf   : > { %v4612_v45 = vpop.f32.mrb[78].mxu1  ;;  %v4933_v3 = vadd.f32 %v4901_v8, %v8741_v26 }
 0x5c0   : > { %v6022_v15 = vadd.f32 %v8649_v51, %v4612_v45  ;;  %v4614_v7 = vpop.f32.mrb[79].mxu1  ;;  %v5016_v25 = vadd.f32 %v5015_v63, %v4985_v30  ;;  %v4989_v24 = vmul.f32 %v8829_v21, %v8829_v21  ;;  %v4902_v30 = vld [vmem:[%s6930_s12 + $0xa8] sm:$0xff]  ;;  %v4935_v26 = vadd.f32 %v4903_v1, %v8773_v2 }
 0x5c2   : > { %v8789_v28 = vadd.f32 %v6022_v15, %v9417_v18  ;;  %v5017_v45 = vadd.f32 %v5016_v25, %v4986_v42  ;;  %v4928_v15 = vadd.f32 %v4896_v49, %v8713_v17  ;;  %v4929_v18 = vadd.f32 %v4897_v6, %v8717_v39 }
 0x5c3   : > { %v8796_v34 = vpop.f32.mrb[80].mxu1  ;;  %v8869_v42 = vmax.f32 %v4931_v43, 0.0 }
 0x5c4   : > { %v4619_v31 = vpop.f32.mrb[81].mxu1  ;;  %v5018_v57 = vadd.f32 %v5017_v45, %v4987_v27  ;;  %v8849_v17 = vmax.f32 %v4928_v15, 0.0  ;;  %v8857_v39 = vmax.f32 %v4929_v18, 0.0  ;;  %v8881_v15 = vmax.f32 %v4933_v3, 0.0 }
 0x5c6   : > { %v5019_v55 = vadd.f32 %v5018_v57, %v4988_v53  ;;  %v4992_v13 = vmul.f32 %v8849_v17, %v8849_v17  ;;  %v4993_v63 = vmul.f32 %v8857_v39, %v8857_v39  ;;  %v4995_v53 = vmul.f32 %v8869_v42, %v8869_v42 }
 0x5c7   : > { %v8810_v10 = vpop.f32.mrb[82].mxu1 }
 0x5c8   : > { %v4624_v61 = vpop.f32.mrb[83].mxu1  ;;  %v5020_v36 = vadd.f32 %v5019_v55, %v4989_v24  ;;  %v4997_v55 = vmul.f32 %v8881_v15, %v8881_v15  ;;  %v6024_v2 = vadd.f32 %v8649_v51, %v8810_v10 }
 0x5c9   : > { %v4932_v61 = vadd.f32 %v4900_v14, %v8732_v59  ;;  %v4934_v59 = vadd.f32 %v4902_v30, %v8755_v29  ;;  %v4936_v29 = vadd.f32 %v4904_v44, %v8789_v28  ;;  %v6023_v28 = vadd.f32 %v8649_v51, %v8796_v34  ;;  %v4907_v44 = vld [vmem:[%s6930_s12 + $0xd0] sm:$0xff] }
 0x5ca   : > { %v5021_v40 = vadd.f32 %v5020_v36, %v4990_v12  ;;  %v8891_v12 = vmax.f32 %v4935_v26, 0.0 }
 0x5cb   : > { %v8824_v19 = vpop.f32.mrb[84].mxu1  ;;  %v8875_v25 = vmax.f32 %v4932_v61, 0.0  ;;  %v8886_v57 = vmax.f32 %v4934_v59, 0.0 }
 0x5cc   : > { %v4629_v56 = vpop.f32.mrb[85].mxu1  ;;  %v5022_v9 = vadd.f32 %v5021_v40, %v4991_v60  ;;  %v4906_v60 = vld [vmem:[%s6930_s12 + $0xc8] sm:$0xff]  ;;  %v4905_v40 = vld [vmem:[%s6930_s12 + $0xc0] sm:$0xff]  ;;  %v4999_v10 = vmul.f32 %v8891_v12, %v8891_v12 }
 0x5cd   : > { %v4994_v56 = vmul.f32 %v8863_v16, %v8863_v16  ;;  %v4998_v14 = vmul.f32 %v8886_v57, %v8886_v57 }
 0x5ce   : > { %v5023_v49 = vadd.f32 %v5022_v9, %v4992_v13 }
 0x5cf   : > { %v8838_v7 = vpop.f32.mrb[86].mxu1 }
 0x5d0   : > { %v4634_v33 = vpop.f32.mrb[87].mxu1  ;;  %v5024_v45 = vadd.f32 %v5023_v49, %v4993_v63  ;;  %v6026_v30 = vadd.f32 %v8649_v51, %v8838_v7  ;;  %v6025_v63 = vadd.f32 %v8649_v51, %v8824_v19  ;;  %v4908_v49 = vld [vmem:[%s6930_s12 + $0xd8] sm:$0xff] }
 0x5d1   : > { %v4996_v33 = vmul.f32 %v8875_v25, %v8875_v25 }
 0x5d2   : > { %v5025_v0 = vadd.f32 %v5024_v45, %v4994_v56 }
 0x5d3   : > { %v8852_v31 = vpop.f32.mrb[88].mxu1 }
 0x5d4   : > { %v4639_v22 = vpop.f32.mrb[89].mxu1  ;;  %v5026_v37 = vadd.f32 %v5025_v0, %v4995_v53  ;;  %v6027_v19 = vadd.f32 %v8649_v51, %v8852_v31 }
 0x5d5   : > { %v8897_v22 = vmax.f32 %v4936_v29, 0.0 }
 0x5d6   : > { %v5027_v58 = vadd.f32 %v5026_v37, %v4996_v33 }
 0x5d7   : > { %v4642_v47 = vpop.f32.mrb[90].mxu1  ;;  %v5000_v34 = vmul.f32 %v8897_v22, %v8897_v22 }
 0x5d8   : > { %v4644_v4 = vpop.f32.mrb[91].mxu1  ;;  %v5028_v13 = vadd.f32 %v5027_v58, %v4997_v55  ;;  %v6028_v26 = vadd.f32 %v8649_v51, %v4642_v47  ;;  %v4910_v55 = vld [vmem:[%s6930_s12 + $0xe8] sm:$0xff] }
 0x5da   : > { %v5029_v9 = vadd.f32 %v5028_v13, %v4998_v14 }
 0x5db   : > { %v4647_v27 = vpop.f32.mrb[92].mxu1 }
 0x5dc   : > { %v4649_v6 = vpop.f32.mrb[93].mxu1 }
 0x5dd   : > { %v5030_v6 = vadd.f32 %v5029_v9, %v4999_v10 }
 0x5df   : > { %v4652_v24 = vpop.f32.mrb[94].mxu1  ;;  %v5031_v29 = vadd.f32 %v5030_v6, %v5000_v34 }
 0x5e0   : > { %v4654_v18 = vpop.f32.mrb[95].mxu1 }
 0x5e3   : > { %v5493_v36 = vpop.f32.mrb[96].mxu1 }
 0x5e4   : > { %v4848_v43 = vadd.f32 %v6024_v2, %v5493_v36  ;;  %v4842_v8 = vpop.f32.mrb[97].mxu1 }
 0x5e5   : > { %v4843_v61 = vadd.f32 %v6023_v28, %v4842_v8  ;;  %v4909_v28 = vld [vmem:[%s6930_s12 + $0xe0] sm:$0xff] }
 0x5e6   : > { %v4938_v4 = vadd.f32 %v4906_v60, %v4848_v43  ;;  %v6030_v43 = vadd.f32 %v8649_v51, %v4652_v24 }
 0x5e7   : > { %v4937_v3 = vadd.f32 %v4905_v40, %v4843_v61  ;;  %v5496_v1 = vpop.f32.mrb[98].mxu1  ;;  %v6029_v40 = vadd.f32 %v8649_v51, %v4647_v27 }
 0x5e8   : > { %v4858_v56 = vadd.f32 %v6026_v30, %v5496_v1  ;;  %v4852_v59 = vpop.f32.mrb[99].mxu1  ;;  %v8913_v45 = vmax.f32 %v4938_v4, 0.0  ;;  %v4912_v4 = vld [vmem:[%s6930_s12 + $0xf8] sm:$0xff] }
 0x5e9   : > { %v8915_v7 = vmax.f32 %v4937_v3, 0.0  ;;  %v4853_v53 = vadd.f32 %v6025_v63, %v4852_v59  ;;  %v4911_v3 = vld [vmem:[%s6930_s12 + $0xf0] sm:$0xff]  ;;  %s6631_s12 = scalar_lea.vmem %s9013_s17, 4096 }
 0x5ea   : > { %v4940_v0 = vadd.f32 %v4908_v49, %v4858_v56  ;;  %v5002_v47 = vmul.f32 %v8913_v45, %v8913_v45  ;;  %p6632_p11 = scmp.ne.s32.totalorder %s9013_s17, %s6631_s12  ;;  %p6639_p9 = scmp.lt.s32.totalorder %s6637_s15, %s6631_s12 }
 0x5eb   : > { %v5001_v33 = vmul.f32 %v8915_v7, %v8915_v7  ;;  %v4939_v18 = vadd.f32 %v4907_v44, %v4853_v53  ;;  %v5499_v37 = vpop.f32.mrb[100].mxu1 }
 0x5ec   : > { %v8923_v2 = vmax.f32 %v4940_v0, 0.0  ;;  %v4868_v58 = vadd.f32 %v6028_v26, %v5499_v37  ;;  %v4862_v14 = vpop.f32.mrb[101].mxu1  ;;  %p6633_p2 = pnand %p6632_p11, %p9418_p0  ;;  %p6640_p12 = por %p6639_p9, %p6638_p7 }
 0x5ed   : > { %v5032_v36 = vadd.f32 %v5031_v29, %v5001_v33  ;;  %v8928_v60 = vmax.f32 %v4939_v18, 0.0  ;;  %v4863_v31 = vadd.f32 %v6027_v19, %v4862_v14 }
 0x5ee   : > { %v4942_v8 = vadd.f32 %v4910_v55, %v4868_v58  ;;  %v5004_v9 = vmul.f32 %v8923_v2, %v8923_v2  ;;  %p6634_p3 = pneg %p6633_p2 }
 0x5ef   : > { %v5003_v13 = vmul.f32 %v8928_v60, %v8928_v60  ;;  %v5033_v10 = vadd.f32 %v5032_v36, %v5002_v47  ;;  %v4941_v61 = vadd.f32 %v4909_v28, %v4863_v31  ;;  %v5502_v30 = vpop.f32.mrb[102].mxu1 }
 0x5f0   : > { %v4878_v34 = vadd.f32 %v6030_v43, %v5502_v30  ;;  %v4872_v63 = vpop.f32.mrb[103].mxu1  ;;  %v8938_v49 = vmax.f32 %v4942_v8, 0.0  ;;  %p6641_p1 = pnand %p6640_p12, %p6634_p3 }
 0x5f1   : > { %v5034_v1 = vadd.f32 %v5033_v10, %v5003_v13  ;;  %v8940_v24 = vmax.f32 %v4941_v61, 0.0  ;;  %v4873_v56 = vadd.f32 %v6029_v40, %v4872_v63 }
 0x5f2   : > { %v4944_v51 = vadd.f32 %v4912_v4, %v4878_v34  ;;  %v5006_v6 = vmul.f32 %v8938_v49, %v8938_v49 }
 0x5f3   : > { %v5005_v27 = vmul.f32 %v8940_v24, %v8940_v24  ;;  %v4943_v59 = vadd.f32 %v4911_v3, %v4873_v56  ;;  %v5035_v44 = vadd.f32 %v5034_v1, %v5004_v9 }
 0x5f4   : > { %v8946_v53 = vmax.f32 %v4944_v51, 0.0 }
 0x5f5   : > { %v8948_v26 = vmax.f32 %v4943_v59, 0.0  ;;  %v5036_v0 = vadd.f32 %v5035_v44, %v5005_v27 }
 0x5f6   : > { %v5008_v29 = vmul.f32 %v8946_v53, %v8946_v53 }
 0x5f7   : > { %v5007_v19 = vmul.f32 %v8948_v26, %v8948_v26  ;;  %v5037_v33 = vadd.f32 %v5036_v0, %v5006_v6 }
 0x5f9   : > { %v5038_v18 = vadd.f32 %v5037_v33, %v5007_v19 }
 0x5fb   : > { %v5039_v37 = vadd.f32 %v5038_v18, %v5008_v29 }
 0x5fd   : > { %5040 = vadd.xlane.f32.xlu0 %v5039_v37 }
 0x68a   : > { %v5041_v55 = vpop.xlane.xlu0 %5040 }
 0x68b   : > { %v5042_v58 = vrot.slane %v5041_v55, 4 }
 0x68d   : > { %v5043_v14 = vadd.f32 %v5042_v58, %v5041_v55 }
 0x68f   : > { %v5044_v28 = vrot.slane %v5043_v14, 2 }
 0x691   : > { %v5045_v47 = vadd.f32 %v5044_v28, %v5043_v14 }
 0x693   : > { %v5046_v36 = vrot.slane %v5045_v47, 1 }
 0x695   : > { %v5047_v31 = vadd.f32 %v5046_v36, %v5045_v47 }
 0x697   : > { %6415 = vpush %v5047_v31 }
 0x6c8   : > { %s6416_s10 = spop %6415 }
 0x6c9   : > { %s5049_s28 = sadd.f32 1e-05, %s6416_s10 }
 0x6cb   : > { %v5050_v43 = vstv %s5049_s28 }
 0x6cc   : > { %6492 = vrsqrt.f32 %v5050_v43 }
 0x6d6   : > { %v6493_v8 = vpop.eup %6492 }
 0x6d7   : > { %6417 = vpush %v6493_v8 }
 0x708   : > { %s6418_s13 = spop %6417 }
 0x709   : > { %s5053_s9 = smul.f32 45.254833, %s6418_s13 }
 0x70b   : > { %v5054_v40 = vstv %s5053_s9 }
 0x70c   : > { %v5055_v13 = vmul.f32 %v5054_v40, %v8748_v62  ;;  %v5056_v10 = vmul.f32 %v5054_v40, %v8743_v50  ;;  %v5057_v61 = vmul.f32 %v5054_v40, %v8750_v38  ;;  %v5058_v30 = vmul.f32 %v5054_v40, %v8759_v20 }
 0x70d   : > { %v5059_v4 = vmul.f32 %v5054_v40, %v8768_v54  ;;  %v5060_v9 = vmul.f32 %v5054_v40, %v8777_v41  ;;  %v5061_v34 = vmul.f32 %v5054_v40, %v8784_v35  ;;  %v5062_v63 = vmul.f32 %v5054_v40, %v8793_v5 }
 0x70e   : > { %v5063_v3 = vmul.f32 %v5054_v40, %v8801_v48  ;;  %v5064_v1 = vmul.f32 %v5054_v40, %v8807_v46  ;;  %v5065_v62 = vmul.f32 %v5054_v40, %v8815_v32  ;;  %v5066_v50 = vmul.f32 %v5054_v40, %v8821_v23  ;;  %5087 = vst [vmem:[%s8968_s30] sm:$0xff] %v5055_v13 }
 0x70f   : > { %5088 = vst [vmem:[%s8968_s30 + $0x8] sm:$0xff] %v5056_v10  ;;  %5089 = vst [vmem:[%s8968_s30 + $0x10] sm:$0xff] %v5057_v61  ;;  %v5067_v38 = vmul.f32 %v5054_v40, %v8829_v21  ;;  %v5068_v20 = vmul.f32 %v5054_v40, %v8835_v52  ;;  %v5069_v54 = vmul.f32 %v5054_v40, %v8843_v11 }
 0x710   : > { %5090 = vst [vmem:[%s8968_s30 + $0x18] sm:$0xff] %v5058_v30  ;;  %v5070_v41 = vmul.f32 %v5054_v40, %v8849_v17  ;;  %5091 = vst [vmem:[%s8968_s30 + $0x20] sm:$0xff] %v5059_v4  ;;  %v5071_v35 = vmul.f32 %v5054_v40, %v8857_v39  ;;  %v5072_v5 = vmul.f32 %v5054_v40, %v8863_v16 }
 0x711   : > { %5092 = vst [vmem:[%s8968_s30 + $0x28] sm:$0xff] %v5060_v9  ;;  %5093 = vst [vmem:[%s8968_s30 + $0x30] sm:$0xff] %v5061_v34  ;;  %v5073_v48 = vmul.f32 %v5054_v40, %v8869_v42  ;;  %v5074_v46 = vmul.f32 %v5054_v40, %v8875_v25  ;;  %v5075_v32 = vmul.f32 %v5054_v40, %v8881_v15 }
 0x712   : > { %5094 = vst [vmem:[%s8968_s30 + $0x38] sm:$0xff] %v5062_v63  ;;  %5095 = vst [vmem:[%s8968_s30 + $0x40] sm:$0xff] %v5063_v3  ;;  %v5076_v23 = vmul.f32 %v5054_v40, %v8886_v57  ;;  %v5077_v21 = vmul.f32 %v5054_v40, %v8891_v12  ;;  %v5078_v52 = vmul.f32 %v5054_v40, %v8897_v22 }
 0x713   : > { %5096 = vst [vmem:[%s8968_s30 + $0x48] sm:$0xff] %v5064_v1  ;;  %5097 = vst [vmem:[%s8968_s30 + $0x50] sm:$0xff] %v5065_v62  ;;  %v5079_v11 = vmul.f32 %v5054_v40, %v8915_v7  ;;  %v5080_v17 = vmul.f32 %v5054_v40, %v8913_v45  ;;  %v5081_v39 = vmul.f32 %v5054_v40, %v8928_v60 }
 0x714   : > { %5098 = vst [vmem:[%s8968_s30 + $0x58] sm:$0xff] %v5066_v50  ;;  %5099 = vst [vmem:[%s8968_s30 + $0x60] sm:$0xff] %v5067_v38  ;;  %v5082_v16 = vmul.f32 %v5054_v40, %v8923_v2  ;;  %v5083_v42 = vmul.f32 %v5054_v40, %v8940_v24  ;;  %v5084_v25 = vmul.f32 %v5054_v40, %v8938_v49 }
 0x715   : > { %5100 = vst [vmem:[%s8968_s30 + $0x68] sm:$0xff] %v5068_v20  ;;  %5101 = vst [vmem:[%s8968_s30 + $0x70] sm:$0xff] %v5069_v54  ;;  %v5085_v15 = vmul.f32 %v5054_v40, %v8948_v26  ;;  %v5086_v57 = vmul.f32 %v5054_v40, %v8946_v53 }
 0x716   : > { %5102 = vst [vmem:[%s8968_s30 + $0x78] sm:$0xff] %v5070_v41  ;;  %5103 = vst [vmem:[%s8968_s30 + $0x80] sm:$0xff] %v5071_v35 }
 0x717   : > { %5104 = vst [vmem:[%s8968_s30 + $0x88] sm:$0xff] %v5072_v5  ;;  %5105 = vst [vmem:[%s8968_s30 + $0x90] sm:$0xff] %v5073_v48 }
 0x718   : > { %5106 = vst [vmem:[%s8968_s30 + $0x98] sm:$0xff] %v5074_v46  ;;  %5107 = vst [vmem:[%s8968_s30 + $0xa0] sm:$0xff] %v5075_v32 }
 0x719   : > { %5108 = vst [vmem:[%s8968_s30 + $0xa8] sm:$0xff] %v5076_v23  ;;  %5109 = vst [vmem:[%s8968_s30 + $0xb0] sm:$0xff] %v5077_v21 }
 0x71a   : > { %5110 = vst [vmem:[%s8968_s30 + $0xb8] sm:$0xff] %v5078_v52  ;;  %5111 = vst [vmem:[%s8968_s30 + $0xc0] sm:$0xff] %v5079_v11 }
 0x71b   : > { %5112 = vst [vmem:[%s8968_s30 + $0xc8] sm:$0xff] %v5080_v17  ;;  %5113 = vst [vmem:[%s8968_s30 + $0xd0] sm:$0xff] %v5081_v39 }
 0x71c   : > { %5114 = vst [vmem:[%s8968_s30 + $0xd8] sm:$0xff] %v5082_v16  ;;  %5115 = vst [vmem:[%s8968_s30 + $0xe0] sm:$0xff] %v5083_v42 }
 0x71d   : > { %5116 = vst [vmem:[%s8968_s30 + $0xe8] sm:$0xff] %v5084_v25  ;;  %5117 = vst [vmem:[%s8968_s30 + $0xf0] sm:$0xff] %v5085_v15 }
 0x71e   : > { %5118 = vst [vmem:[%s8968_s30 + $0xf8] sm:$0xff] %v5086_v57 }
 0x71f   : > { %6644 = shalt.err (!%p6641_p1)
}
 0x720   : > { %s6645_s16 = scalar_lea.hbm %s9011_s6, 4096  ;;  %s6649_s13 = scalar_lea.hbm %s9078_s5, 8192 }
 0x721   : > { %p6646_p13 = scmp.ne.s32.totalorder %s9011_s6, %s6645_s16  ;;  %p6650_p4 = scmp.lt.u32.totalorder %s9011_s6, %s9078_s5 }
 0x722   : > { %p6651_p5 = scmp.lt.u32.totalorder %s6649_s13, %s6645_s16  ;;  %p6653_p11 = scmp.lt.u32.totalorder %s6645_s16, %s9011_s6 }
 0x723   : > { %p6647_p6 = pnand %p6646_p13, %p9418_p0 }
 0x724   : > { %p6652_p8 = por %p6651_p5, %p6650_p4 }
 0x725   : > { %p6648_p10 = pneg %p6647_p6 }
 0x726   : > { %p6654_p2 = por %p6653_p11, %p6652_p8 }
 0x728   : > { %p6655_p3 = pnand %p6654_p2, %p6648_p10 }
 0x72a   : > { %6658 = shalt.err (!%p6655_p3)
}
 0x72b   : > { %s6711_s11 = smov 128   ;;  %s6712_s22 = smov 8  }
 0x72c   : > { %6429 = dma.vmem_to_hbm [thread:$0]  (%p9418_p0), %s9013_s17, 4096, %s9011_s6, %s5120_s8, %s6711_s11, %s6711_s11, %s6712_s22  }
 0x72d PF: > { %s5148_s7 = sand.u32 1, %s6689_s18   ;;  %p9419_p7 = scmp.ne.s32.totalorder %s9230_s25, 0 }
 0x72e   : > { %p9420_p9 = scmp.ge.s32.totalorder %s6701_s21, 2  ;;  %s5149_s12 = scalar_lea.sflag [#allocation6], %s5148_s7 }
 0x730   : > { %p6443_p12 = pnand %p9420_p9, %p9419_p7 }
 0x732   : > { %6684 = dma.done.wait (!%p6443_p12), %s5149_s12, 4096  }
 0x733   : > { %6686 = vsyncadd (!%p6443_p12), %s5149_s12, 4294963200  ;;  %p19_p1 = scmp.ge.s32.totalorder %s6859_s29, 4   ;;  %s9421_s18 = smov %s6693_s19 }
 0x734   : > { %s9422_s19 = smov %s6697_s20  ;;  %s9423_s20 = smov %s6875_s27 }
 0x735   : > { %s9424_s21 = smov %s6859_s29  ;;  %21 = sbr.rel (!%p19_p1) target bundleno = 6 (0x6), region = 94 }
 0x73c   :  { %5154 = vsyncpa [#allocation5], 1 }
 0x73d   :  { %5156 = vsyncpa [#allocation5 + $0x1], 1 }
 0x73e   :  { %5157 = vsyncpa [#allocation8], 1 }
 0x73f   :  { %5158 = vsyncpa [#allocation6], 1 }
 0x740   :  { %5160 = vsyncpa [#allocation6 + $0x1], 1 }

</bundles_post_ra>
